<compile_context>
chip_gen: v7x
topology: tpu7x:2x2x1
jax: 0.10.0
libtpu: 0.0.40
codegen_flags: <defaults>
</compile_context>

<pallas_src>
import jax
import jax.numpy as jnp
from jax import lax
from jax.experimental import pallas as pl
from jax.experimental.pallas import tpu as pltpu


def _make_resblock_kernel(H, W, Cin, Cout):
    """Build the fused stride-1 Resblock kernel for static H, W, Cin, Cout."""
    HW = H * W
    # Flattened, zero-guarded image layout inside VMEM:
    #   scratch[G + r*W + c, :] = image[r, c, :]
    # G front-guard zeros (aligned to the 8-sublane tile) and W+1 back-guard
    # zeros implement the conv's zero padding for vertical taps; horizontal
    # wrap-around at row edges is cancelled by the ml/mr column masks.
    G = ((W + 1 + 7) // 8) * 8
    L = G + HW + W + 1

    def tap_start(ky, kx):
        # Start of the flat window holding image[i + ky - 1, j + kx - 1] for
        # every output pixel o = i*W + j (stride 1).
        return G - W - 1 + ky * W + kx

    def kernel(x_ref, w1_ref, b1_ref, w2_ref, b2_ref, ml_ref, mr_ref,
               o_ref, s1_ref, s2_ref):
        def conv3x3_relu(src_ref, w_ref, b_ref):
            # 3x3 / stride 1 / pad 1 conv as 9 accumulated MXU matmuls.
            acc = jnp.zeros((HW, Cout), jnp.float32)
            for ky in range(3):
                for kx in range(3):
                    patch = src_ref[pl.ds(tap_start(ky, kx), HW), :]
                    if kx == 0:      # dx = -1: left column would wrap -> zero it
                        patch = patch * ml_ref[...]
                    elif kx == 2:    # dx = +1: right column would wrap -> zero it
                        patch = patch * mr_ref[...]
                    acc = acc + jnp.dot(patch, w_ref[ky * 3 + kx],
                                        preferred_element_type=jnp.float32)
            return jnp.maximum(acc + b_ref[...], 0.0)

        x = x_ref[0].astype(jnp.float32)            # (H*W, Cin)

        # conv1 + bias + ReLU
        s1_ref[...] = jnp.zeros_like(s1_ref)
        s1_ref[pl.ds(G, HW), :] = x
        h1 = conv3x3_relu(s1_ref, w1_ref, b1_ref)

        # conv2 + bias + ReLU (conv1 activation re-guarded in VMEM, not HBM)
        s2_ref[...] = jnp.zeros_like(s2_ref)
        s2_ref[pl.ds(G, HW), :] = h1
        h2 = conv3x3_relu(s2_ref, w2_ref, b2_ref)

        # Residual add: downsample is the identity for stride == 1.
        o_ref[0] = (h2 + x).astype(o_ref.dtype)

    return kernel, L


def resblock_forward(x_nchw, w1, b1, w2, b2, *, stride=1):
    """JAX/Pallas equivalent of Resblock(in_c, out_c, stride).forward(x).

    x_nchw : (N, Cin, H, W)                 activations (NCHW, like torch)
    w1, b1 : (Cout, Cin, 3, 3), (Cout,)     first 3x3 conv  (stride, pad=1)
    w2, b2 : (Cout, Cout, 3, 3), (Cout,)    second 3x3 conv (stride 1, pad=1)
    """
    if stride != 1:
        # TODO(synk): stride != 1 branch (strided conv1 + 1x1 strided downsample
        # conv) is not implemented; only the module's default stride=1
        # configuration (identity downsample) is supported by this kernel.
        raise NotImplementedError("Pallas Resblock kernel supports stride=1 only")

    N, Cin, H, W = x_nchw.shape
    Cout = w1.shape[0]
    assert w1.shape == (Cout, Cin, 3, 3)
    assert w2.shape == (Cout, Cout, 3, 3)
    assert b1.shape == (Cout,) and b2.shape == (Cout,)
    assert Cin == Cout, "stride==1 Resblock needs in_channel == out_channel"

    HW = H * W
    kernel, L = _make_resblock_kernel(H, W, Cin, Cout)

    # Layout plumbing (cheap, done once by XLA outside the kernel):
    #   NCHW -> (N, H*W, C): channels on lanes, flattened spatial on sublanes.
    x2d = jnp.transpose(x_nchw, (0, 2, 3, 1)).reshape(N, HW, Cin)
    #   OIHW -> (tap, Cin, Cout): w_ref[tap] is a ready-to-use matmul operand.
    w1k = jnp.transpose(w1, (2, 3, 1, 0)).reshape(9, Cin, Cout).astype(jnp.float32)
    w2k = jnp.transpose(w2, (2, 3, 1, 0)).reshape(9, Cout, Cout).astype(jnp.float32)
    b1k = b1.reshape(1, Cout).astype(jnp.float32)
    b2k = b2.reshape(1, Cout).astype(jnp.float32)

    # Column masks cancelling horizontal wrap-around of the flat tap windows.
    col = jnp.arange(HW, dtype=jnp.int32) % W
    mask_l = (col != 0).astype(jnp.float32).reshape(HW, 1)
    mask_r = (col != W - 1).astype(jnp.float32).reshape(HW, 1)

    out2d = pl.pallas_call(
        kernel,
        out_shape=jax.ShapeDtypeStruct((N, HW, Cout), x_nchw.dtype),
        grid=(N,),
        in_specs=[
            pl.BlockSpec((1, HW, Cin), lambda n: (n, 0, 0)),
            pl.BlockSpec((9, Cin, Cout), lambda n: (0, 0, 0)),
            pl.BlockSpec((1, Cout), lambda n: (0, 0)),
            pl.BlockSpec((9, Cout, Cout), lambda n: (0, 0, 0)),
            pl.BlockSpec((1, Cout), lambda n: (0, 0)),
            pl.BlockSpec((HW, 1), lambda n: (0, 0)),
            pl.BlockSpec((HW, 1), lambda n: (0, 0)),
        ],
        out_specs=pl.BlockSpec((1, HW, Cout), lambda n: (n, 0, 0)),
        scratch_shapes=[
            pltpu.VMEM((L, Cin), jnp.float32),   # guarded input image
            pltpu.VMEM((L, Cout), jnp.float32),  # guarded conv1 activation
        ],
        compiler_params=pltpu.CompilerParams(
            dimension_semantics=("parallel",),
        ),
    )(x2d, w1k, b1k, w2k, b2k, mask_l, mask_r)

    # (N, H*W, C) -> NCHW, matching the torch module's output layout.
    return jnp.transpose(out2d.reshape(N, H, W, Cout), (0, 3, 1, 2))


def resblock_reference(x_nchw, w1, b1, w2, b2):
    """Pure-JAX (XLA conv) reference with torch Resblock semantics (stride=1)."""
    dn = ("NCHW", "OIHW", "NCHW")
    y = lax.conv_general_dilated(
        x_nchw, w1, (1, 1), ((1, 1), (1, 1)),
        dimension_numbers=dn, precision=lax.Precision.HIGHEST)
    y = jnp.maximum(y + b1[None, :, None, None], 0.0)
    y = lax.conv_general_dilated(
        y, w2, (1, 1), ((1, 1), (1, 1)),
        dimension_numbers=dn, precision=lax.Precision.HIGHEST)
    y = jnp.maximum(y + b2[None, :, None, None], 0.0)
    return y + x_nchw                      # identity downsample (stride == 1)


def _run_case(key, N, C, H, W):
    kx, k1, k2, k3, k4 = jax.random.split(key, 5)
    x = jax.random.normal(kx, (N, C, H, W), dtype=jnp.float32)
    w1 = 0.1 * jax.random.normal(k1, (C, C, 3, 3), dtype=jnp.float32)
    b1 = 0.1 * jax.random.normal(k2, (C,), dtype=jnp.float32)
    w2 = 0.1 * jax.random.normal(k3, (C, C, 3, 3), dtype=jnp.float32)
    b2 = 0.1 * jax.random.normal(k4, (C,), dtype=jnp.float32)

    out = resblock_forward(x, w1, b1, w2, b2, stride=1)
    out = jax.block_until_ready(out)

    ref = resblock_reference(x, w1, b1, w2, b2)
    assert out.shape == ref.shape == (N, C, H, W), (out.shape, ref.shape)
    assert out.dtype == x.dtype
    max_err = float(jnp.max(jnp.abs(out - ref)))
    assert max_err < 2e-2, f"max abs error too large: {max_err}"


if __name__ == "__main__":
    key = jax.random.PRNGKey(0)
    k_a, k_b = jax.random.split(key, 2)
    # Shapes consistent with the module defaults (stride=1 => in_c == out_c):
    _run_case(k_a, N=2, C=4, H=16, W=16)   # batch=2, channels=4, 16x16
    _run_case(k_b, N=2, C=4, H=8, W=8)     # second small config
    print("KERNEL_OK")
</pallas_src>

<mosaic_0001>
module attributes {stable_mosaic.version = 11 : i64} {
  func.func @kernel(%arg0: i32, %arg1: memref<1x256x4xf32, #tpu.memory_space<vmem>>, %arg2: memref<9x4x4xf32, #tpu.memory_space<vmem>>, %arg3: memref<1x4xf32, #tpu.memory_space<vmem>>, %arg4: memref<9x4x4xf32, #tpu.memory_space<vmem>>, %arg5: memref<1x4xf32, #tpu.memory_space<vmem>>, %arg6: memref<256x1xf32, #tpu.memory_space<vmem>>, %arg7: memref<256x1xf32, #tpu.memory_space<vmem>>, %arg8: memref<1x256x4xf32, #tpu.memory_space<vmem>>, %arg9: memref<297x4xf32, #tpu.memory_space<vmem>>, %arg10: memref<297x4xf32, #tpu.memory_space<vmem>>) attributes {dimension_semantics = [#tpu.dimension_semantics<parallel>], iteration_bounds = array<i64: 2>, scalar_prefetch = 0 : i64, scratch_operands = 2 : i64, tpu.core_type = #tpu.core_type<tc>, window_params = [{transform_indices = @transform_0, window_bounds = array<i64: 1, 256, 4>}, {pipeline_mode = #tpu.pipeline_mode<synchronous>, transform_indices = @transform_1, window_bounds = array<i64: 9, 4, 4>}, {pipeline_mode = #tpu.pipeline_mode<synchronous>, transform_indices = @transform_2, window_bounds = array<i64: 1, 4>}, {pipeline_mode = #tpu.pipeline_mode<synchronous>, transform_indices = @transform_3, window_bounds = array<i64: 9, 4, 4>}, {pipeline_mode = #tpu.pipeline_mode<synchronous>, transform_indices = @transform_4, window_bounds = array<i64: 1, 4>}, {pipeline_mode = #tpu.pipeline_mode<synchronous>, transform_indices = @transform_5, window_bounds = array<i64: 256, 1>}, {pipeline_mode = #tpu.pipeline_mode<synchronous>, transform_indices = @transform_6, window_bounds = array<i64: 256, 1>}, {transform_indices = @transform_7, window_bounds = array<i64: 1, 256, 4>}]} {
    %c0 = arith.constant 0 : index
    %c0_0 = arith.constant 0 : index
    %c0_1 = arith.constant 0 : index
    %0 = vector.load %arg1[%c0, %c0_0, %c0_1] : memref<1x256x4xf32, #tpu.memory_space<vmem>>, vector<1x256x4xf32>
    %1 = vector.shape_cast %0 : vector<1x256x4xf32> to vector<256x4xf32>
    %cst = arith.constant 0.000000e+00 : f32
    %2 = vector.broadcast %cst : f32 to vector<297x4xf32>
    %c0_2 = arith.constant 0 : index
    %c0_3 = arith.constant 0 : index
    %3 = vector.load %arg9[%c0_2, %c0_3] : memref<297x4xf32, #tpu.memory_space<vmem>>, vector<297x4xf32>
    tpu.vector_store %arg9[%c0_2, %c0_3], %2 {strides = array<i32>} : memref<297x4xf32, #tpu.memory_space<vmem>>, vector<297x4xf32>,
    %c24 = arith.constant 24 : index
    %c0_4 = arith.constant 0 : index
    %4 = vector.load %arg9[%c24, %c0_4] : memref<297x4xf32, #tpu.memory_space<vmem>>, vector<256x4xf32>
    tpu.vector_store %arg9[%c24, %c0_4], %1 {strides = array<i32>} : memref<297x4xf32, #tpu.memory_space<vmem>>, vector<256x4xf32>,
    %cst_5 = arith.constant 0.000000e+00 : f32
    %5 = vector.broadcast %cst_5 : f32 to vector<256x4xf32>
    %c7 = arith.constant 7 : index
    %c0_6 = arith.constant 0 : index
    %6 = vector.load %arg9[%c7, %c0_6] : memref<297x4xf32, #tpu.memory_space<vmem>>, vector<256x4xf32>
    %c0_7 = arith.constant 0 : index
    %c0_8 = arith.constant 0 : index
    %7 = vector.load %arg6[%c0_7, %c0_8] : memref<256x1xf32, #tpu.memory_space<vmem>>, vector<256x1xf32>
    %8 = vector.broadcast %7 : vector<256x1xf32> to vector<256x4xf32>
    %9 = arith.mulf %6, %8 : vector<256x4xf32>
    %c0_9 = arith.constant 0 : index
    %c0_10 = arith.constant 0 : index
    %c0_11 = arith.constant 0 : index
    %10 = vector.load %arg2[%c0_9, %c0_10, %c0_11] : memref<9x4x4xf32, #tpu.memory_space<vmem>>, vector<1x4x4xf32>
    %11 = vector.shape_cast %10 : vector<1x4x4xf32> to vector<4x4xf32>
    %cst_12 = arith.constant dense<0.000000e+00> : vector<256x4xf32>
    %12 = tpu.matmul %9, %11, %cst_12 {dimension_numbers = #tpu.dot_dimension_numbers<[1], [0], [0], [1], [0, 0, 1, 1], [], []>} : vector<256x4xf32>, vector<4x4xf32>, vector<256x4xf32> -> vector<256x4xf32>
    %13 = arith.addf %5, %12 : vector<256x4xf32>
    %c8 = arith.constant 8 : index
    %c0_13 = arith.constant 0 : index
    %14 = vector.load %arg9[%c8, %c0_13] : memref<297x4xf32, #tpu.memory_space<vmem>>, vector<256x4xf32>
    %c1 = arith.constant 1 : index
    %c0_14 = arith.constant 0 : index
    %c0_15 = arith.constant 0 : index
    %15 = vector.load %arg2[%c1, %c0_14, %c0_15] : memref<9x4x4xf32, #tpu.memory_space<vmem>>, vector<1x4x4xf32>
    %16 = vector.shape_cast %15 : vector<1x4x4xf32> to vector<4x4xf32>
    %cst_16 = arith.constant dense<0.000000e+00> : vector<256x4xf32>
    %17 = tpu.matmul %14, %16, %cst_16 {dimension_numbers = #tpu.dot_dimension_numbers<[1], [0], [0], [1], [0, 0, 1, 1], [], []>} : vector<256x4xf32>, vector<4x4xf32>, vector<256x4xf32> -> vector<256x4xf32>
    %18 = arith.addf %13, %17 : vector<256x4xf32>
    %c9 = arith.constant 9 : index
    %c0_17 = arith.constant 0 : index
    %19 = vector.load %arg9[%c9, %c0_17] : memref<297x4xf32, #tpu.memory_space<vmem>>, vector<256x4xf32>
    %c0_18 = arith.constant 0 : index
    %c0_19 = arith.constant 0 : index
    %20 = vector.load %arg7[%c0_18, %c0_19] : memref<256x1xf32, #tpu.memory_space<vmem>>, vector<256x1xf32>
    %21 = vector.broadcast %20 : vector<256x1xf32> to vector<256x4xf32>
    %22 = arith.mulf %19, %21 : vector<256x4xf32>
    %c2 = arith.constant 2 : index
    %c0_20 = arith.constant 0 : index
    %c0_21 = arith.constant 0 : index
    %23 = vector.load %arg2[%c2, %c0_20, %c0_21] : memref<9x4x4xf32, #tpu.memory_space<vmem>>, vector<1x4x4xf32>
    %24 = vector.shape_cast %23 : vector<1x4x4xf32> to vector<4x4xf32>
    %cst_22 = arith.constant dense<0.000000e+00> : vector<256x4xf32>
    %25 = tpu.matmul %22, %24, %cst_22 {dimension_numbers = #tpu.dot_dimension_numbers<[1], [0], [0], [1], [0, 0, 1, 1], [], []>} : vector<256x4xf32>, vector<4x4xf32>, vector<256x4xf32> -> vector<256x4xf32>
    %26 = arith.addf %18, %25 : vector<256x4xf32>
    %c23 = arith.constant 23 : index
    %c0_23 = arith.constant 0 : index
    %27 = vector.load %arg9[%c23, %c0_23] : memref<297x4xf32, #tpu.memory_space<vmem>>, vector<256x4xf32>
    %c0_24 = arith.constant 0 : index
    %c0_25 = arith.constant 0 : index
    %28 = vector.load %arg6[%c0_24, %c0_25] : memref<256x1xf32, #tpu.memory_space<vmem>>, vector<256x1xf32>
    %29 = vector.broadcast %28 : vector<256x1xf32> to vector<256x4xf32>
    %30 = arith.mulf %27, %29 : vector<256x4xf32>
    %c3 = arith.constant 3 : index
    %c0_26 = arith.constant 0 : index
    %c0_27 = arith.constant 0 : index
    %31 = vector.load %arg2[%c3, %c0_26, %c0_27] : memref<9x4x4xf32, #tpu.memory_space<vmem>>, vector<1x4x4xf32>
    %32 = vector.shape_cast %31 : vector<1x4x4xf32> to vector<4x4xf32>
    %cst_28 = arith.constant dense<0.000000e+00> : vector<256x4xf32>
    %33 = tpu.matmul %30, %32, %cst_28 {dimension_numbers = #tpu.dot_dimension_numbers<[1], [0], [0], [1], [0, 0, 1, 1], [], []>} : vector<256x4xf32>, vector<4x4xf32>, vector<256x4xf32> -> vector<256x4xf32>
    %34 = arith.addf %26, %33 : vector<256x4xf32>
    %c24_29 = arith.constant 24 : index
    %c0_30 = arith.constant 0 : index
    %35 = vector.load %arg9[%c24_29, %c0_30] : memref<297x4xf32, #tpu.memory_space<vmem>>, vector<256x4xf32>
    %c4 = arith.constant 4 : index
    %c0_31 = arith.constant 0 : index
    %c0_32 = arith.constant 0 : index
    %36 = vector.load %arg2[%c4, %c0_31, %c0_32] : memref<9x4x4xf32, #tpu.memory_space<vmem>>, vector<1x4x4xf32>
    %37 = vector.shape_cast %36 : vector<1x4x4xf32> to vector<4x4xf32>
    %cst_33 = arith.constant dense<0.000000e+00> : vector<256x4xf32>
    %38 = tpu.matmul %35, %37, %cst_33 {dimension_numbers = #tpu.dot_dimension_numbers<[1], [0], [0], [1], [0, 0, 1, 1], [], []>} : vector<256x4xf32>, vector<4x4xf32>, vector<256x4xf32> -> vector<256x4xf32>
    %39 = arith.addf %34, %38 : vector<256x4xf32>
    %c25 = arith.constant 25 : index
    %c0_34 = arith.constant 0 : index
    %40 = vector.load %arg9[%c25, %c0_34] : memref<297x4xf32, #tpu.memory_space<vmem>>, vector<256x4xf32>
    %c0_35 = arith.constant 0 : index
    %c0_36 = arith.constant 0 : index
    %41 = vector.load %arg7[%c0_35, %c0_36] : memref<256x1xf32, #tpu.memory_space<vmem>>, vector<256x1xf32>
    %42 = vector.broadcast %41 : vector<256x1xf32> to vector<256x4xf32>
    %43 = arith.mulf %40, %42 : vector<256x4xf32>
    %c5 = arith.constant 5 : index
    %c0_37 = arith.constant 0 : index
    %c0_38 = arith.constant 0 : index
    %44 = vector.load %arg2[%c5, %c0_37, %c0_38] : memref<9x4x4xf32, #tpu.memory_space<vmem>>, vector<1x4x4xf32>
    %45 = vector.shape_cast %44 : vector<1x4x4xf32> to vector<4x4xf32>
    %cst_39 = arith.constant dense<0.000000e+00> : vector<256x4xf32>
    %46 = tpu.matmul %43, %45, %cst_39 {dimension_numbers = #tpu.dot_dimension_numbers<[1], [0], [0], [1], [0, 0, 1, 1], [], []>} : vector<256x4xf32>, vector<4x4xf32>, vector<256x4xf32> -> vector<256x4xf32>
    %47 = arith.addf %39, %46 : vector<256x4xf32>
    %c39 = arith.constant 39 : index
    %c0_40 = arith.constant 0 : index
    %48 = vector.load %arg9[%c39, %c0_40] : memref<297x4xf32, #tpu.memory_space<vmem>>, vector<256x4xf32>
    %c0_41 = arith.constant 0 : index
    %c0_42 = arith.constant 0 : index
    %49 = vector.load %arg6[%c0_41, %c0_42] : memref<256x1xf32, #tpu.memory_space<vmem>>, vector<256x1xf32>
    %50 = vector.broadcast %49 : vector<256x1xf32> to vector<256x4xf32>
    %51 = arith.mulf %48, %50 : vector<256x4xf32>
    %c6 = arith.constant 6 : index
    %c0_43 = arith.constant 0 : index
    %c0_44 = arith.constant 0 : index
    %52 = vector.load %arg2[%c6, %c0_43, %c0_44] : memref<9x4x4xf32, #tpu.memory_space<vmem>>, vector<1x4x4xf32>
    %53 = vector.shape_cast %52 : vector<1x4x4xf32> to vector<4x4xf32>
    %cst_45 = arith.constant dense<0.000000e+00> : vector<256x4xf32>
    %54 = tpu.matmul %51, %53, %cst_45 {dimension_numbers = #tpu.dot_dimension_numbers<[1], [0], [0], [1], [0, 0, 1, 1], [], []>} : vector<256x4xf32>, vector<4x4xf32>, vector<256x4xf32> -> vector<256x4xf32>
    %55 = arith.addf %47, %54 : vector<256x4xf32>
    %c40 = arith.constant 40 : index
    %c0_46 = arith.constant 0 : index
    %56 = vector.load %arg9[%c40, %c0_46] : memref<297x4xf32, #tpu.memory_space<vmem>>, vector<256x4xf32>
    %c7_47 = arith.constant 7 : index
    %c0_48 = arith.constant 0 : index
    %c0_49 = arith.constant 0 : index
    %57 = vector.load %arg2[%c7_47, %c0_48, %c0_49] : memref<9x4x4xf32, #tpu.memory_space<vmem>>, vector<1x4x4xf32>
    %58 = vector.shape_cast %57 : vector<1x4x4xf32> to vector<4x4xf32>
    %cst_50 = arith.constant dense<0.000000e+00> : vector<256x4xf32>
    %59 = tpu.matmul %56, %58, %cst_50 {dimension_numbers = #tpu.dot_dimension_numbers<[1], [0], [0], [1], [0, 0, 1, 1], [], []>} : vector<256x4xf32>, vector<4x4xf32>, vector<256x4xf32> -> vector<256x4xf32>
    %60 = arith.addf %55, %59 : vector<256x4xf32>
    %c41 = arith.constant 41 : index
    %c0_51 = arith.constant 0 : index
    %61 = vector.load %arg9[%c41, %c0_51] : memref<297x4xf32, #tpu.memory_space<vmem>>, vector<256x4xf32>
    %c0_52 = arith.constant 0 : index
    %c0_53 = arith.constant 0 : index
    %62 = vector.load %arg7[%c0_52, %c0_53] : memref<256x1xf32, #tpu.memory_space<vmem>>, vector<256x1xf32>
    %63 = vector.broadcast %62 : vector<256x1xf32> to vector<256x4xf32>
    %64 = arith.mulf %61, %63 : vector<256x4xf32>
    %c8_54 = arith.constant 8 : index
    %c0_55 = arith.constant 0 : index
    %c0_56 = arith.constant 0 : index
    %65 = vector.load %arg2[%c8_54, %c0_55, %c0_56] : memref<9x4x4xf32, #tpu.memory_space<vmem>>, vector<1x4x4xf32>
    %66 = vector.shape_cast %65 : vector<1x4x4xf32> to vector<4x4xf32>
    %cst_57 = arith.constant dense<0.000000e+00> : vector<256x4xf32>
    %67 = tpu.matmul %64, %66, %cst_57 {dimension_numbers = #tpu.dot_dimension_numbers<[1], [0], [0], [1], [0, 0, 1, 1], [], []>} : vector<256x4xf32>, vector<4x4xf32>, vector<256x4xf32> -> vector<256x4xf32>
    %68 = arith.addf %60, %67 : vector<256x4xf32>
    %c0_58 = arith.constant 0 : index
    %c0_59 = arith.constant 0 : index
    %69 = vector.load %arg3[%c0_58, %c0_59] : memref<1x4xf32, #tpu.memory_space<vmem>>, vector<1x4xf32>
    %70 = vector.broadcast %69 : vector<1x4xf32> to vector<256x4xf32>
    %71 = arith.addf %68, %70 : vector<256x4xf32>
    %cst_60 = arith.constant 0.000000e+00 : f32
    %72 = vector.broadcast %cst_60 : f32 to vector<256x4xf32>
    %73 = arith.maximumf %71, %72 : vector<256x4xf32>
    %cst_61 = arith.constant 0.000000e+00 : f32
    %74 = vector.broadcast %cst_61 : f32 to vector<297x4xf32>
    %c0_62 = arith.constant 0 : index
    %c0_63 = arith.constant 0 : index
    %75 = vector.load %arg10[%c0_62, %c0_63] : memref<297x4xf32, #tpu.memory_space<vmem>>, vector<297x4xf32>
    tpu.vector_store %arg10[%c0_62, %c0_63], %74 {strides = array<i32>} : memref<297x4xf32, #tpu.memory_space<vmem>>, vector<297x4xf32>,
    %c24_64 = arith.constant 24 : index
    %c0_65 = arith.constant 0 : index
    %76 = vector.load %arg10[%c24_64, %c0_65] : memref<297x4xf32, #tpu.memory_space<vmem>>, vector<256x4xf32>
    tpu.vector_store %arg10[%c24_64, %c0_65], %73 {strides = array<i32>} : memref<297x4xf32, #tpu.memory_space<vmem>>, vector<256x4xf32>,
    %cst_66 = arith.constant 0.000000e+00 : f32
    %77 = vector.broadcast %cst_66 : f32 to vector<256x4xf32>
    %c7_67 = arith.constant 7 : index
    %c0_68 = arith.constant 0 : index
    %78 = vector.load %arg10[%c7_67, %c0_68] : memref<297x4xf32, #tpu.memory_space<vmem>>, vector<256x4xf32>
    %c0_69 = arith.constant 0 : index
    %c0_70 = arith.constant 0 : index
    %79 = vector.load %arg6[%c0_69, %c0_70] : memref<256x1xf32, #tpu.memory_space<vmem>>, vector<256x1xf32>
    %80 = vector.broadcast %79 : vector<256x1xf32> to vector<256x4xf32>
    %81 = arith.mulf %78, %80 : vector<256x4xf32>
    %c0_71 = arith.constant 0 : index
    %c0_72 = arith.constant 0 : index
    %c0_73 = arith.constant 0 : index
    %82 = vector.load %arg4[%c0_71, %c0_72, %c0_73] : memref<9x4x4xf32, #tpu.memory_space<vmem>>, vector<1x4x4xf32>
    %83 = vector.shape_cast %82 : vector<1x4x4xf32> to vector<4x4xf32>
    %cst_74 = arith.constant dense<0.000000e+00> : vector<256x4xf32>
    %84 = tpu.matmul %81, %83, %cst_74 {dimension_numbers = #tpu.dot_dimension_numbers<[1], [0], [0], [1], [0, 0, 1, 1], [], []>} : vector<256x4xf32>, vector<4x4xf32>, vector<256x4xf32> -> vector<256x4xf32>
    %85 = arith.addf %77, %84 : vector<256x4xf32>
    %c8_75 = arith.constant 8 : index
    %c0_76 = arith.constant 0 : index
    %86 = vector.load %arg10[%c8_75, %c0_76] : memref<297x4xf32, #tpu.memory_space<vmem>>, vector<256x4xf32>
    %c1_77 = arith.constant 1 : index
    %c0_78 = arith.constant 0 : index
    %c0_79 = arith.constant 0 : index
    %87 = vector.load %arg4[%c1_77, %c0_78, %c0_79] : memref<9x4x4xf32, #tpu.memory_space<vmem>>, vector<1x4x4xf32>
    %88 = vector.shape_cast %87 : vector<1x4x4xf32> to vector<4x4xf32>
    %cst_80 = arith.constant dense<0.000000e+00> : vector<256x4xf32>
    %89 = tpu.matmul %86, %88, %cst_80 {dimension_numbers = #tpu.dot_dimension_numbers<[1], [0], [0], [1], [0, 0, 1, 1], [], []>} : vector<256x4xf32>, vector<4x4xf32>, vector<256x4xf32> -> vector<256x4xf32>
    %90 = arith.addf %85, %89 : vector<256x4xf32>
    %c9_81 = arith.constant 9 : index
    %c0_82 = arith.constant 0 : index
    %91 = vector.load %arg10[%c9_81, %c0_82] : memref<297x4xf32, #tpu.memory_space<vmem>>, vector<256x4xf32>
    %c0_83 = arith.constant 0 : index
    %c0_84 = arith.constant 0 : index
    %92 = vector.load %arg7[%c0_83, %c0_84] : memref<256x1xf32, #tpu.memory_space<vmem>>, vector<256x1xf32>
    %93 = vector.broadcast %92 : vector<256x1xf32> to vector<256x4xf32>
    %94 = arith.mulf %91, %93 : vector<256x4xf32>
    %c2_85 = arith.constant 2 : index
    %c0_86 = arith.constant 0 : index
    %c0_87 = arith.constant 0 : index
    %95 = vector.load %arg4[%c2_85, %c0_86, %c0_87] : memref<9x4x4xf32, #tpu.memory_space<vmem>>, vector<1x4x4xf32>
    %96 = vector.shape_cast %95 : vector<1x4x4xf32> to vector<4x4xf32>
    %cst_88 = arith.constant dense<0.000000e+00> : vector<256x4xf32>
    %97 = tpu.matmul %94, %96, %cst_88 {dimension_numbers = #tpu.dot_dimension_numbers<[1], [0], [0], [1], [0, 0, 1, 1], [], []>} : vector<256x4xf32>, vector<4x4xf32>, vector<256x4xf32> -> vector<256x4xf32>
    %98 = arith.addf %90, %97 : vector<256x4xf32>
    %c23_89 = arith.constant 23 : index
    %c0_90 = arith.constant 0 : index
    %99 = vector.load %arg10[%c23_89, %c0_90] : memref<297x4xf32, #tpu.memory_space<vmem>>, vector<256x4xf32>
    %c0_91 = arith.constant 0 : index
    %c0_92 = arith.constant 0 : index
    %100 = vector.load %arg6[%c0_91, %c0_92] : memref<256x1xf32, #tpu.memory_space<vmem>>, vector<256x1xf32>
    %101 = vector.broadcast %100 : vector<256x1xf32> to vector<256x4xf32>
    %102 = arith.mulf %99, %101 : vector<256x4xf32>
    %c3_93 = arith.constant 3 : index
    %c0_94 = arith.constant 0 : index
    %c0_95 = arith.constant 0 : index
    %103 = vector.load %arg4[%c3_93, %c0_94, %c0_95] : memref<9x4x4xf32, #tpu.memory_space<vmem>>, vector<1x4x4xf32>
    %104 = vector.shape_cast %103 : vector<1x4x4xf32> to vector<4x4xf32>
    %cst_96 = arith.constant dense<0.000000e+00> : vector<256x4xf32>
    %105 = tpu.matmul %102, %104, %cst_96 {dimension_numbers = #tpu.dot_dimension_numbers<[1], [0], [0], [1], [0, 0, 1, 1], [], []>} : vector<256x4xf32>, vector<4x4xf32>, vector<256x4xf32> -> vector<256x4xf32>
    %106 = arith.addf %98, %105 : vector<256x4xf32>
    %c24_97 = arith.constant 24 : index
    %c0_98 = arith.constant 0 : index
    %107 = vector.load %arg10[%c24_97, %c0_98] : memref<297x4xf32, #tpu.memory_space<vmem>>, vector<256x4xf32>
    %c4_99 = arith.constant 4 : index
    %c0_100 = arith.constant 0 : index
    %c0_101 = arith.constant 0 : index
    %108 = vector.load %arg4[%c4_99, %c0_100, %c0_101] : memref<9x4x4xf32, #tpu.memory_space<vmem>>, vector<1x4x4xf32>
    %109 = vector.shape_cast %108 : vector<1x4x4xf32> to vector<4x4xf32>
    %cst_102 = arith.constant dense<0.000000e+00> : vector<256x4xf32>
    %110 = tpu.matmul %107, %109, %cst_102 {dimension_numbers = #tpu.dot_dimension_numbers<[1], [0], [0], [1], [0, 0, 1, 1], [], []>} : vector<256x4xf32>, vector<4x4xf32>, vector<256x4xf32> -> vector<256x4xf32>
    %111 = arith.addf %106, %110 : vector<256x4xf32>
    %c25_103 = arith.constant 25 : index
    %c0_104 = arith.constant 0 : index
    %112 = vector.load %arg10[%c25_103, %c0_104] : memref<297x4xf32, #tpu.memory_space<vmem>>, vector<256x4xf32>
    %c0_105 = arith.constant 0 : index
    %c0_106 = arith.constant 0 : index
    %113 = vector.load %arg7[%c0_105, %c0_106] : memref<256x1xf32, #tpu.memory_space<vmem>>, vector<256x1xf32>
    %114 = vector.broadcast %113 : vector<256x1xf32> to vector<256x4xf32>
    %115 = arith.mulf %112, %114 : vector<256x4xf32>
    %c5_107 = arith.constant 5 : index
    %c0_108 = arith.constant 0 : index
    %c0_109 = arith.constant 0 : index
    %116 = vector.load %arg4[%c5_107, %c0_108, %c0_109] : memref<9x4x4xf32, #tpu.memory_space<vmem>>, vector<1x4x4xf32>
    %117 = vector.shape_cast %116 : vector<1x4x4xf32> to vector<4x4xf32>
    %cst_110 = arith.constant dense<0.000000e+00> : vector<256x4xf32>
    %118 = tpu.matmul %115, %117, %cst_110 {dimension_numbers = #tpu.dot_dimension_numbers<[1], [0], [0], [1], [0, 0, 1, 1], [], []>} : vector<256x4xf32>, vector<4x4xf32>, vector<256x4xf32> -> vector<256x4xf32>
    %119 = arith.addf %111, %118 : vector<256x4xf32>
    %c39_111 = arith.constant 39 : index
    %c0_112 = arith.constant 0 : index
    %120 = vector.load %arg10[%c39_111, %c0_112] : memref<297x4xf32, #tpu.memory_space<vmem>>, vector<256x4xf32>
    %c0_113 = arith.constant 0 : index
    %c0_114 = arith.constant 0 : index
    %121 = vector.load %arg6[%c0_113, %c0_114] : memref<256x1xf32, #tpu.memory_space<vmem>>, vector<256x1xf32>
    %122 = vector.broadcast %121 : vector<256x1xf32> to vector<256x4xf32>
    %123 = arith.mulf %120, %122 : vector<256x4xf32>
    %c6_115 = arith.constant 6 : index
    %c0_116 = arith.constant 0 : index
    %c0_117 = arith.constant 0 : index
    %124 = vector.load %arg4[%c6_115, %c0_116, %c0_117] : memref<9x4x4xf32, #tpu.memory_space<vmem>>, vector<1x4x4xf32>
    %125 = vector.shape_cast %124 : vector<1x4x4xf32> to vector<4x4xf32>
    %cst_118 = arith.constant dense<0.000000e+00> : vector<256x4xf32>
    %126 = tpu.matmul %123, %125, %cst_118 {dimension_numbers = #tpu.dot_dimension_numbers<[1], [0], [0], [1], [0, 0, 1, 1], [], []>} : vector<256x4xf32>, vector<4x4xf32>, vector<256x4xf32> -> vector<256x4xf32>
    %127 = arith.addf %119, %126 : vector<256x4xf32>
    %c40_119 = arith.constant 40 : index
    %c0_120 = arith.constant 0 : index
    %128 = vector.load %arg10[%c40_119, %c0_120] : memref<297x4xf32, #tpu.memory_space<vmem>>, vector<256x4xf32>
    %c7_121 = arith.constant 7 : index
    %c0_122 = arith.constant 0 : index
    %c0_123 = arith.constant 0 : index
    %129 = vector.load %arg4[%c7_121, %c0_122, %c0_123] : memref<9x4x4xf32, #tpu.memory_space<vmem>>, vector<1x4x4xf32>
    %130 = vector.shape_cast %129 : vector<1x4x4xf32> to vector<4x4xf32>
    %cst_124 = arith.constant dense<0.000000e+00> : vector<256x4xf32>
    %131 = tpu.matmul %128, %130, %cst_124 {dimension_numbers = #tpu.dot_dimension_numbers<[1], [0], [0], [1], [0, 0, 1, 1], [], []>} : vector<256x4xf32>, vector<4x4xf32>, vector<256x4xf32> -> vector<256x4xf32>
    %132 = arith.addf %127, %131 : vector<256x4xf32>
    %c41_125 = arith.constant 41 : index
    %c0_126 = arith.constant 0 : index
    %133 = vector.load %arg10[%c41_125, %c0_126] : memref<297x4xf32, #tpu.memory_space<vmem>>, vector<256x4xf32>
    %c0_127 = arith.constant 0 : index
    %c0_128 = arith.constant 0 : index
    %134 = vector.load %arg7[%c0_127, %c0_128] : memref<256x1xf32, #tpu.memory_space<vmem>>, vector<256x1xf32>
    %135 = vector.broadcast %134 : vector<256x1xf32> to vector<256x4xf32>
    %136 = arith.mulf %133, %135 : vector<256x4xf32>
    %c8_129 = arith.constant 8 : index
    %c0_130 = arith.constant 0 : index
    %c0_131 = arith.constant 0 : index
    %137 = vector.load %arg4[%c8_129, %c0_130, %c0_131] : memref<9x4x4xf32, #tpu.memory_space<vmem>>, vector<1x4x4xf32>
    %138 = vector.shape_cast %137 : vector<1x4x4xf32> to vector<4x4xf32>
    %cst_132 = arith.constant dense<0.000000e+00> : vector<256x4xf32>
    %139 = tpu.matmul %136, %138, %cst_132 {dimension_numbers = #tpu.dot_dimension_numbers<[1], [0], [0], [1], [0, 0, 1, 1], [], []>} : vector<256x4xf32>, vector<4x4xf32>, vector<256x4xf32> -> vector<256x4xf32>
    %140 = arith.addf %132, %139 : vector<256x4xf32>
    %c0_133 = arith.constant 0 : index
    %c0_134 = arith.constant 0 : index
    %141 = vector.load %arg5[%c0_133, %c0_134] : memref<1x4xf32, #tpu.memory_space<vmem>>, vector<1x4xf32>
    %142 = vector.broadcast %141 : vector<1x4xf32> to vector<256x4xf32>
    %143 = arith.addf %140, %142 : vector<256x4xf32>
    %cst_135 = arith.constant 0.000000e+00 : f32
    %144 = vector.broadcast %cst_135 : f32 to vector<256x4xf32>
    %145 = arith.maximumf %143, %144 : vector<256x4xf32>
    %146 = arith.addf %145, %1 : vector<256x4xf32>
    %c0_136 = arith.constant 0 : index
    %c0_137 = arith.constant 0 : index
    %c0_138 = arith.constant 0 : index
    %147 = vector.load %arg8[%c0_136, %c0_137, %c0_138] : memref<1x256x4xf32, #tpu.memory_space<vmem>>, vector<1x256x4xf32>
    %148 = vector.shape_cast %147 : vector<1x256x4xf32> to vector<256x4xf32>
    %149 = vector.shape_cast %146 : vector<256x4xf32> to vector<1x256x4xf32>
    tpu.vector_store %arg8[%c0_136, %c0_137, %c0_138], %149 {strides = array<i32>} : memref<1x256x4xf32, #tpu.memory_space<vmem>>, vector<1x256x4xf32>,
    return
  }
  func.func @transform_0(%arg0: i32) -> (i32, i32, i32) {
    %c0_i32 = arith.constant 0 : i32
    %c0_i32_0 = arith.constant 0 : i32
    %c0_i32_1 = arith.constant 0 : i32
    return %arg0, %c0_i32, %c0_i32_0 : i32, i32, i32
  }
  func.func @transform_1(%arg0: i32) -> (i32, i32, i32) {
    %c0_i32 = arith.constant 0 : i32
    %c0_i32_0 = arith.constant 0 : i32
    %c0_i32_1 = arith.constant 0 : i32
    %c0_i32_2 = arith.constant 0 : i32
    return %c0_i32, %c0_i32_0, %c0_i32_1 : i32, i32, i32
  }
  func.func @transform_2(%arg0: i32) -> (i32, i32) {
    %c0_i32 = arith.constant 0 : i32
    %c0_i32_0 = arith.constant 0 : i32
    %c0_i32_1 = arith.constant 0 : i32
    return %c0_i32, %c0_i32_0 : i32, i32
  }
  func.func @transform_3(%arg0: i32) -> (i32, i32, i32) {
    %c0_i32 = arith.constant 0 : i32
    %c0_i32_0 = arith.constant 0 : i32
    %c0_i32_1 = arith.constant 0 : i32
    %c0_i32_2 = arith.constant 0 : i32
    return %c0_i32, %c0_i32_0, %c0_i32_1 : i32, i32, i32
  }
  func.func @transform_4(%arg0: i32) -> (i32, i32) {
    %c0_i32 = arith.constant 0 : i32
    %c0_i32_0 = arith.constant 0 : i32
    %c0_i32_1 = arith.constant 0 : i32
    return %c0_i32, %c0_i32_0 : i32, i32
  }
  func.func @transform_5(%arg0: i32) -> (i32, i32) {
    %c0_i32 = arith.constant 0 : i32
    %c0_i32_0 = arith.constant 0 : i32
    %c0_i32_1 = arith.constant 0 : i32
    return %c0_i32, %c0_i32_0 : i32, i32
  }
  func.func @transform_6(%arg0: i32) -> (i32, i32) {
    %c0_i32 = arith.constant 0 : i32
    %c0_i32_0 = arith.constant 0 : i32
    %c0_i32_1 = arith.constant 0 : i32
    return %c0_i32, %c0_i32_0 : i32, i32
  }
  func.func @transform_7(%arg0: i32) -> (i32, i32, i32) {
    %c0_i32 = arith.constant 0 : i32
    %c0_i32_0 = arith.constant 0 : i32
    %c0_i32_1 = arith.constant 0 : i32
    return %arg0, %c0_i32, %c0_i32_0 : i32, i32, i32
  }
}

</mosaic_0001>

<bundles_post_ra>
// kernel: tpu_custom_call.1
= control target key start
LH: loop header
LB: loop body
LE: loop exit
PB: predicated region body
PF: predicated region fallthrough
CT: control target
= control target key end

     0   :  { %s11473_s24 = smov 0   ;;  %s14489_s0 = inlined_call_operand.vmem [shape: f32[2,256,4], index: 0, kind: input, shape index: {}]   ;;  %s14490_s1 = inlined_call_operand.vmem [shape: f32[9,4,4], index: 1, kind: input, shape index: {}]   ;;  %s14491_s2 = inlined_call_operand.vmem [shape: f32[1,4], index: 2, kind: input, shape index: {}]   ;;  %s14492_s3 = inlined_call_operand.vmem [shape: f32[9,4,4], index: 3, kind: input, shape index: {}]   ;;  %s14493_s4 = inlined_call_operand.vmem [shape: f32[1,4], index: 4, kind: input, shape index: {}]   ;;  %s14494_s5 = inlined_call_operand.vmem [shape: f32[256,1], index: 5, kind: input, shape index: {}]   ;;  %s14495_s6 = inlined_call_operand.vmem [shape: f32[256,1], index: 6, kind: input, shape index: {}]   ;;  %s14496_s7 = inlined_call_operand.vmem [shape: f32[2,256,4], index: 7, kind: output, shape index: {}]  }
   0x1 LB: > { %s8757_s25 = sadd.s32 4294967295, %s11429_s24   ;;  %p8761_p0 = scmp.ge.s32.totalorder %s11429_s24, 1  ;;  %s11429_s24 = sphi %s11473_s24, %s17_s24  }
   0x2   : > { %p237_p1 = scmp.lt.s32.totalorder %s11429_s24, 3 }
   0x4   : > { %p238_p2 = pnand %p8761_p0, %p237_p1 }
   0x6   : > { %241 = sbr.rel (%p238_p2) target bundleno = 1624 (0x658), region = 48 }
   0xd   : > { %v11484_v0 = vld [vmem:[%s14494_s5 + $0x10] sm:$0xff]  ;;  %v11489_v1 = vld [vmem:[%s14494_s5] sm:$0xff]  ;;  %vm311_vm0 = vcmask 31744   ;;  %v11431_v2 = vmov 0   ;;  %p11493_p3 = scmp.lt.s32.totalorder %s8757_s25, 1  ;;  %v11432_v3 = vmov 0.0  }
   0xe   : > { %11399 = vset.pattern.permute.xlu1 %v11431_v2  ;;  %11398 = vset.pattern.permute.xlu0 %v11431_v2  ;;  %313 = vst.msk [vmem:[#allocation2 + $0x8] sm:$0xff] %vm311_vm0, %v11432_v3  ;;  %312 = vst.msk [vmem:[#allocation2] sm:$0xff] %vm311_vm0, %v11432_v3  ;;  %v11650_v4 = vld [vmem:[%s14494_s5 + $0x18] sm:$0xff]  ;;  %v11655_v5 = vld [vmem:[%s14494_s5 + $0x8] sm:$0xff]  ;;  %vm770_vm1 = vcmask 1043456   ;;  %vm349_vm2 = vcmask 24576  }
   0xf   : > { %459 = vperm.xlu1 %11399, %v11484_v0   ;;  %449 = vperm.xlu0 %11398, %v11489_v1   ;;  %314 = vst.msk [vmem:[#allocation2 + $0x10] sm:$0xff] %vm311_vm0, %v11432_v3  ;;  %315 = vst.msk [vmem:[#allocation2 + $0x18] sm:$0xff] %vm311_vm0, %v11432_v3  ;;  %s15252_s25 = smov (!%p11493_p3, %s8757_s25), 1  ;;  %v11668_v6 = vld [vmem:[%s14494_s5 + $0x28] sm:$0xff]  ;;  %v11673_v7 = vld [vmem:[%s14494_s5 + $0x20] sm:$0xff] }
  0x10   : > { %316 = vst.msk [vmem:[#allocation2 + $0x20] sm:$0xff] %vm311_vm0, %v11432_v3  ;;  %317 = vst.msk [vmem:[#allocation2 + $0x28] sm:$0xff] %vm311_vm0, %v11432_v3  ;;  %s9380_s16 = sshll.u32 %s15252_s25, 8  ;;  %v11681_v8 = vld [vmem:[%s14494_s5 + $0x38] sm:$0xff]  ;;  %v11686_v9 = vld [vmem:[%s14494_s5 + $0x30] sm:$0xff] }
  0x11   : > { %318 = vst.msk [vmem:[#allocation2 + $0x30] sm:$0xff] %vm311_vm0, %v11432_v3  ;;  %319 = vst.msk [vmem:[#allocation2 + $0x38] sm:$0xff] %vm311_vm0, %v11432_v3  ;;  %v8766_v10 = vld [vmem:[%s14490_s1 + $0x4] sm:$0xf]  ;;  %s11696_s27 = scalar_lea.vmem %s14489_s0, %s9380_s16  ;;  %v639_v13 = vld [vmem:[%s14490_s1] sm:$0xf]  ;;  %s14358_s30 = scalar_lea.vmem %s14496_s7, %s9380_s16 }
  0x12   : > { %320 = vst.msk [vmem:[#allocation2 + $0x40] sm:$0xff] %vm311_vm0, %v11432_v3  ;;  %321 = vst.msk [vmem:[#allocation2 + $0x48] sm:$0xff] %vm311_vm0, %v11432_v3  ;;  %9976 = vmatprep.subr.msk.mxu0 %vm770_vm1, %v8766_v10  ;;  %v11709_v14 = vld [vmem:[%s14494_s5 + $0x48] sm:$0xff]  ;;  %v11712_v15 = vld [vmem:[%s11696_s27] sm:$0xff] }
  0x13   : > { %322 = vst.msk [vmem:[#allocation2 + $0x50] sm:$0xff] %vm311_vm0, %v11432_v3  ;;  %323 = vst.msk [vmem:[#allocation2 + $0x58] sm:$0xff] %vm311_vm0, %v11432_v3  ;;  %464 = vperm.xlu1 %11399, %v11650_v4   ;;  %454 = vperm.xlu0 %11398, %v11655_v5   ;;  %v11715_v16 = vld [vmem:[%s11696_s27 + $0x8] sm:$0xff]  ;;  %v11720_v17 = vld [vmem:[%s14494_s5 + $0x40] sm:$0xff] }
  0x14   : > { %324 = vst.msk [vmem:[#allocation2 + $0x60] sm:$0xff] %vm311_vm0, %v11432_v3  ;;  %325 = vst.msk [vmem:[#allocation2 + $0x68] sm:$0xff] %vm311_vm0, %v11432_v3  ;;  %9977 = vmatpush3.msk.msra.mxu0 %vm770_vm1, %v8766_v10  ;;  %v11729_v18 = vld [vmem:[%s11696_s27 + $0x10] sm:$0xff]  ;;  %v11732_v19 = vld [vmem:[%s11696_s27 + $0x18] sm:$0xff] }
  0x15   : > { %326 = vst.msk [vmem:[#allocation2 + $0x70] sm:$0xff] %vm311_vm0, %v11432_v3  ;;  %327 = vst.msk [vmem:[#allocation2 + $0x78] sm:$0xff] %vm311_vm0, %v11432_v3  ;;  %v640_v11 = vld [vmem:[#allocation2 + $0x8] sm:$0xff]  ;;  %10026 = vmatprep.subr.msk.mxu0 %vm770_vm1, %v639_v13  ;;  %v11740_v20 = vld [vmem:[%s11696_s27 + $0x20] sm:$0xff] }
  0x16   : > { %328 = vst.msk [vmem:[#allocation2 + $0x80] sm:$0xff] %vm311_vm0, %v11432_v3  ;;  %329 = vst.msk [vmem:[#allocation2 + $0x88] sm:$0xff] %vm311_vm0, %v11432_v3  ;;  %v641_v12 = vld [vmem:[#allocation2 + $0x10] sm:$0xff]  ;;  %9978 = vmatprep.mubr.msk.f32.mxu0 %vm311_vm0, %v640_v11  ;;  %v11745_v21 = vld [vmem:[%s11696_s27 + $0x28] sm:$0xff] }
  0x17   : > { %330 = vst.msk [vmem:[#allocation2 + $0x90] sm:$0xff] %vm311_vm0, %v11432_v3  ;;  %331 = vst.msk [vmem:[#allocation2 + $0x98] sm:$0xff] %vm311_vm0, %v11432_v3  ;;  %474 = vperm.xlu1 %11399, %v11668_v6   ;;  %469 = vperm.xlu0 %11398, %v11673_v7   ;;  %v11752_v22 = vld [vmem:[%s14494_s5 + $0x58] sm:$0xff]  ;;  %v11757_v23 = vld [vmem:[%s11696_s27 + $0x30] sm:$0xff] }
  0x18   : > { %332 = vst.msk [vmem:[#allocation2 + $0xa0] sm:$0xff] %vm311_vm0, %v11432_v3  ;;  %333 = vst.msk [vmem:[#allocation2 + $0xa8] sm:$0xff] %vm311_vm0, %v11432_v3  ;;  %9979 = vmatmul.mubr.msk.f32.vlgmr.msra.gmra.mrb[0].mxu0 %vm311_vm0, %v641_v12  ;;  %v11760_v24 = vld [vmem:[%s11696_s27 + $0x38] sm:$0xff]  ;;  %v11765_v25 = vld [vmem:[%s14494_s5 + $0x50] sm:$0xff] }
  0x19   : > { %334 = vst.msk [vmem:[#allocation2 + $0xb0] sm:$0xff] %vm311_vm0, %v11432_v3  ;;  %335 = vst.msk [vmem:[#allocation2 + $0xb8] sm:$0xff] %vm311_vm0, %v11432_v3  ;;  %10027 = vmatpush3.msk.msra.mxu0 %vm770_vm1, %v639_v13  ;;  %v11772_v26 = vld [vmem:[%s11696_s27 + $0x40] sm:$0xff]  ;;  %v11775_v27 = vld [vmem:[%s11696_s27 + $0x48] sm:$0xff] }
  0x1a   : > { %336 = vst.msk [vmem:[#allocation2 + $0xc0] sm:$0xff] %vm311_vm0, %v11432_v3  ;;  %337 = vst.msk [vmem:[#allocation2 + $0xc8] sm:$0xff] %vm311_vm0, %v11432_v3  ;;  %v11782_v28 = vld [vmem:[%s11696_s27 + $0x50] sm:$0xff]  ;;  %v11787_v29 = vld [vmem:[%s14494_s5 + $0x68] sm:$0xff] }
  0x1b   : > { %338 = vst.msk [vmem:[#allocation2 + $0xd0] sm:$0xff] %vm311_vm0, %v11432_v3  ;;  %339 = vst.msk [vmem:[#allocation2 + $0xd8] sm:$0xff] %vm311_vm0, %v11432_v3  ;;  %484 = vperm.xlu1 %11399, %v11681_v8   ;;  %479 = vperm.xlu0 %11398, %v11686_v9   ;;  %v11792_v30 = vld [vmem:[%s11696_s27 + $0x58] sm:$0xff]  ;;  %v11799_v33 = vld [vmem:[%s11696_s27 + $0x60] sm:$0xff] }
  0x1c   : > { %340 = vst.msk [vmem:[#allocation2 + $0xe0] sm:$0xff] %vm311_vm0, %v11432_v3  ;;  %341 = vst.msk [vmem:[#allocation2 + $0xe8] sm:$0xff] %vm311_vm0, %v11432_v3  ;;  %v11804_v34 = vld [vmem:[%s14494_s5 + $0x60] sm:$0xff]  ;;  %v11810_v36 = vld [vmem:[%s11696_s27 + $0x68] sm:$0xff] }
  0x1d   : > { %342 = vst.msk [vmem:[#allocation2 + $0xf0] sm:$0xff] %vm311_vm0, %v11432_v3  ;;  %343 = vst.msk [vmem:[#allocation2 + $0xf8] sm:$0xff] %vm311_vm0, %v11432_v3  ;;  %v11817_v38 = vld [vmem:[%s11696_s27 + $0x70] sm:$0xff]  ;;  %v11820_v39 = vld [vmem:[%s11696_s27 + $0x78] sm:$0xff] }
  0x1e   : > { %344 = vst.msk [vmem:[#allocation2 + $0x100] sm:$0xff] %vm311_vm0, %v11432_v3  ;;  %345 = vst.msk [vmem:[#allocation2 + $0x108] sm:$0xff] %vm311_vm0, %v11432_v3  ;;  %v11831_v41 = vld [vmem:[%s14494_s5 + $0x78] sm:$0xff]  ;;  %v11836_v42 = vld [vmem:[%s14494_s5 + $0x70] sm:$0xff] }
  0x1f   : > { %346 = vst.msk [vmem:[#allocation2 + $0x110] sm:$0xff] %vm311_vm0, %v11432_v3  ;;  %347 = vst.msk [vmem:[#allocation2 + $0x118] sm:$0xff] %vm311_vm0, %v11432_v3  ;;  %494 = vperm.xlu1 %11399, %v11709_v14   ;;  %489 = vperm.xlu0 %11398, %v11720_v17   ;;  %v11840_v43 = vld [vmem:[%s11696_s27 + $0x80] sm:$0xff]  ;;  %v11843_v44 = vld [vmem:[%s11696_s27 + $0x88] sm:$0xff] }
  0x20   : > { %348 = vst.msk [vmem:[#allocation2 + $0x120] sm:$0xff] %vm311_vm0, %v11432_v3  ;;  %4476 = vst.msk [vmem:[#allocation3] sm:$0xff] %vm311_vm0, %v11432_v3  ;;  %v11853_v47 = vld [vmem:[%s11696_s27 + $0x90] sm:$0xff]  ;;  %v11856_v48 = vld [vmem:[%s11696_s27 + $0x98] sm:$0xff] }
  0x21   : > { %4477 = vst.msk [vmem:[#allocation3 + $0x8] sm:$0xff] %vm311_vm0, %v11432_v3  ;;  %4478 = vst.msk [vmem:[#allocation3 + $0x10] sm:$0xff] %vm311_vm0, %v11432_v3  ;;  %v11861_v49 = vld [vmem:[%s14494_s5 + $0x88] sm:$0xff]  ;;  %v11866_v50 = vld [vmem:[%s14494_s5 + $0x80] sm:$0xff] }
  0x22   : > { %4479 = vst.msk [vmem:[#allocation3 + $0x18] sm:$0xff] %vm311_vm0, %v11432_v3  ;;  %4480 = vst.msk [vmem:[#allocation3 + $0x20] sm:$0xff] %vm311_vm0, %v11432_v3  ;;  %v11874_v51 = vld [vmem:[%s11696_s27 + $0xa0] sm:$0xff]  ;;  %v11877_v52 = vld [vmem:[%s11696_s27 + $0xa8] sm:$0xff] }
  0x23   : > { %4481 = vst.msk [vmem:[#allocation3 + $0x28] sm:$0xff] %vm311_vm0, %v11432_v3  ;;  %4482 = vst.msk [vmem:[#allocation3 + $0x30] sm:$0xff] %vm311_vm0, %v11432_v3  ;;  %504 = vperm.xlu1 %11399, %v11752_v22   ;;  %499 = vperm.xlu0 %11398, %v11765_v25   ;;  %v11882_v53 = vld [vmem:[%s14494_s5 + $0x98] sm:$0xff]  ;;  %v11892_v56 = vld [vmem:[%s11696_s27 + $0xb0] sm:$0xff] }
  0x24   : > { %4483 = vst.msk [vmem:[#allocation3 + $0x38] sm:$0xff] %vm311_vm0, %v11432_v3  ;;  %4484 = vst.msk [vmem:[#allocation3 + $0x40] sm:$0xff] %vm311_vm0, %v11432_v3  ;;  %v11895_v57 = vld [vmem:[%s11696_s27 + $0xb8] sm:$0xff]  ;;  %v11900_v58 = vld [vmem:[%s14494_s5 + $0x90] sm:$0xff] }
  0x25   : > { %4485 = vst.msk [vmem:[#allocation3 + $0x48] sm:$0xff] %vm311_vm0, %v11432_v3  ;;  %4486 = vst.msk [vmem:[#allocation3 + $0x50] sm:$0xff] %vm311_vm0, %v11432_v3  ;;  %v11907_v59 = vld [vmem:[%s11696_s27 + $0xc0] sm:$0xff]  ;;  %v11910_v60 = vld [vmem:[%s11696_s27 + $0xc8] sm:$0xff] }
  0x26   : > { %4487 = vst.msk [vmem:[#allocation3 + $0x58] sm:$0xff] %vm311_vm0, %v11432_v3  ;;  %4488 = vst.msk [vmem:[#allocation3 + $0x60] sm:$0xff] %vm311_vm0, %v11432_v3  ;;  %v11919_v62 = vld [vmem:[%s11696_s27 + $0xd0] sm:$0xff]  ;;  %v11922_v63 = vld [vmem:[%s11696_s27 + $0xd8] sm:$0xff] }
  0x27   : > { %4489 = vst.msk [vmem:[#allocation3 + $0x68] sm:$0xff] %vm311_vm0, %v11432_v3  ;;  %4490 = vst.msk [vmem:[#allocation3 + $0x70] sm:$0xff] %vm311_vm0, %v11432_v3  ;;  %514 = vperm.xlu1 %11399, %v11787_v29   ;;  %509 = vperm.xlu0 %11398, %v11804_v34   ;;  %v436_v10 = vld [vmem:[%s14494_s5 + $0xa8] sm:$0xff]  ;;  %v435_v11 = vld [vmem:[%s14494_s5 + $0xa0] sm:$0xff] }
  0x28   : > { %4491 = vst.msk [vmem:[#allocation3 + $0x78] sm:$0xff] %vm311_vm0, %v11432_v3  ;;  %4492 = vst.msk [vmem:[#allocation3 + $0x80] sm:$0xff] %vm311_vm0, %v11432_v3  ;;  %v11938_v12 = vld [vmem:[%s11696_s27 + $0xe0] sm:$0xff] }
  0x29   : > { %4493 = vst.msk [vmem:[#allocation3 + $0x88] sm:$0xff] %vm311_vm0, %v11432_v3  ;;  %4494 = vst.msk [vmem:[#allocation3 + $0x90] sm:$0xff] %vm311_vm0, %v11432_v3 }
  0x2a   : > { %4495 = vst.msk [vmem:[#allocation3 + $0x98] sm:$0xff] %vm311_vm0, %v11432_v3  ;;  %4496 = vst.msk [vmem:[#allocation3 + $0xa0] sm:$0xff] %vm311_vm0, %v11432_v3 }
  0x2b   : > { %4497 = vst.msk [vmem:[#allocation3 + $0xa8] sm:$0xff] %vm311_vm0, %v11432_v3  ;;  %4498 = vst.msk [vmem:[#allocation3 + $0xb0] sm:$0xff] %vm311_vm0, %v11432_v3  ;;  %524 = vperm.xlu1 %11399, %v11831_v41   ;;  %519 = vperm.xlu0 %11398, %v11836_v42  }
  0x2c   : > { %4499 = vst.msk [vmem:[#allocation3 + $0xb8] sm:$0xff] %vm311_vm0, %v11432_v3  ;;  %4500 = vst.msk [vmem:[#allocation3 + $0xc0] sm:$0xff] %vm311_vm0, %v11432_v3 }
  0x2d   : > { %4501 = vst.msk [vmem:[#allocation3 + $0xc8] sm:$0xff] %vm311_vm0, %v11432_v3  ;;  %4502 = vst.msk [vmem:[#allocation3 + $0xd0] sm:$0xff] %vm311_vm0, %v11432_v3 }
  0x2e   : > { %4503 = vst.msk [vmem:[#allocation3 + $0xd8] sm:$0xff] %vm311_vm0, %v11432_v3  ;;  %4504 = vst.msk [vmem:[#allocation3 + $0xe0] sm:$0xff] %vm311_vm0, %v11432_v3 }
  0x2f   : > { %4505 = vst.msk [vmem:[#allocation3 + $0xe8] sm:$0xff] %vm311_vm0, %v11432_v3  ;;  %4506 = vst.msk [vmem:[#allocation3 + $0xf0] sm:$0xff] %vm311_vm0, %v11432_v3  ;;  %534 = vperm.xlu1 %11399, %v11861_v49   ;;  %529 = vperm.xlu0 %11398, %v11866_v50  }
  0x30   : > { %4507 = vst.msk [vmem:[#allocation3 + $0xf8] sm:$0xff] %vm311_vm0, %v11432_v3  ;;  %4508 = vst.msk [vmem:[#allocation3 + $0x100] sm:$0xff] %vm311_vm0, %v11432_v3 }
  0x31   : > { %4509 = vst.msk [vmem:[#allocation3 + $0x108] sm:$0xff] %vm311_vm0, %v11432_v3  ;;  %4510 = vst.msk [vmem:[#allocation3 + $0x110] sm:$0xff] %vm311_vm0, %v11432_v3 }
  0x32   : > { %4511 = vst.msk [vmem:[#allocation3 + $0x118] sm:$0xff] %vm311_vm0, %v11432_v3  ;;  %4512 = vst.msk [vmem:[#allocation3 + $0x120] sm:$0xff] %vm311_vm0, %v11432_v3 }
  0x33   : > { %14744 = vst [vmem:[#allocation4_spill] sm:$0xff] %v11712_v15  ;;  %14745 = vst [vmem:[#allocation5_spill] sm:$0xff] %v11715_v16  ;;  %544 = vperm.xlu1 %11399, %v11882_v53   ;;  %539 = vperm.xlu0 %11398, %v11900_v58  }
  0x34   : > { %351 = vst.msk [vmem:[#allocation2 + $0x18] sm:$0xff] %vm311_vm0, %v11712_v15  ;;  %352 = vst.msk [vmem:[#allocation2 + $0x20] sm:$0xff] %vm311_vm0, %v11715_v16 }
  0x35   : > { %14746 = vst [vmem:[#allocation6_spill] sm:$0xff] %v11729_v18  ;;  %14747 = vst [vmem:[#allocation7_spill] sm:$0xff] %v11732_v19 }
  0x36   : > { %353 = vst.msk [vmem:[#allocation2 + $0x28] sm:$0xff] %vm311_vm0, %v11729_v18  ;;  %354 = vst.msk [vmem:[#allocation2 + $0x30] sm:$0xff] %vm311_vm0, %v11732_v19  ;;  %v4606_v18 = vld [vmem:[%s14494_s5 + $0xe0] sm:$0xff] }
  0x37   : > { %14748 = vst [vmem:[#allocation8_spill] sm:$0xff] %v11740_v20  ;;  %355 = vst.msk [vmem:[#allocation2 + $0x38] sm:$0xff] %vm311_vm0, %v11740_v20  ;;  %554 = vperm.xlu1 %11399, %v436_v10   ;;  %549 = vperm.xlu0 %11398, %v435_v11   ;;  %v442_v10 = vld [vmem:[%s14494_s5 + $0xd8] sm:$0xff]  ;;  %v441_v11 = vld [vmem:[%s14494_s5 + $0xd0] sm:$0xff] }
  0x38   : > { %14749 = vst [vmem:[#allocation9_spill] sm:$0xff] %v11745_v21  ;;  %356 = vst.msk [vmem:[#allocation2 + $0x40] sm:$0xff] %vm311_vm0, %v11745_v21 }
  0x39   : > { %14750 = vst [vmem:[#allocation10_spill] sm:$0xff] %v11757_v23  ;;  %14751 = vst [vmem:[#allocation11_spill] sm:$0xff] %v11760_v24 }
  0x3a   : > { %357 = vst.msk [vmem:[#allocation2 + $0x48] sm:$0xff] %vm311_vm0, %v11757_v23  ;;  %358 = vst.msk [vmem:[#allocation2 + $0x50] sm:$0xff] %vm311_vm0, %v11760_v24  ;;  %v4604_v23 = vld [vmem:[%s14494_s5 + $0xd0] sm:$0xff] }
  0x3b   : > { %14752 = vst [vmem:[#allocation12_spill] sm:$0xff] %v11772_v26  ;;  %14753 = vst [vmem:[#allocation13_spill] sm:$0xff] %v11775_v27  ;;  %v642_v31 = vld [vmem:[#allocation2 + $0x18] sm:$0xff]  ;;  %v643_v32 = vld [vmem:[#allocation2 + $0x20] sm:$0xff] }
  0x3c   : > { %359 = vst.msk [vmem:[#allocation2 + $0x58] sm:$0xff] %vm311_vm0, %v11772_v26  ;;  %360 = vst.msk [vmem:[#allocation2 + $0x60] sm:$0xff] %vm311_vm0, %v11775_v27  ;;  %9981 = vmatprep.mubr.msk.f32.mxu0 %vm311_vm0, %v642_v31  ;;  %v11944_v31 = vld [vmem:[%s11696_s27 + $0xe8] sm:$0xff] }
  0x3d   : > { %14754 = vst [vmem:[#allocation14_spill] sm:$0xff] %v11782_v28  ;;  %361 = vst.msk [vmem:[#allocation2 + $0x68] sm:$0xff] %vm311_vm0, %v11782_v28  ;;  %v644_v35 = vld [vmem:[#allocation2 + $0x28] sm:$0xff]  ;;  %9982 = vmatmul.mubr.msk.f32.gmra.mrb[2].mxu0 %vm311_vm0, %v643_v32  ;;  %v645_v37 = vld [vmem:[#allocation2 + $0x30] sm:$0xff] }
  0x3e   : > { %14755 = vst [vmem:[#allocation15_spill] sm:$0xff] %v11792_v30  ;;  %362 = vst.msk [vmem:[#allocation2 + $0x70] sm:$0xff] %vm311_vm0, %v11792_v30  ;;  %9984 = vmatprep.mubr.msk.f32.mxu0 %vm311_vm0, %v644_v35  ;;  %v646_v40 = vld [vmem:[#allocation2 + $0x38] sm:$0xff]  ;;  %v4602_v28 = vld [vmem:[%s14494_s5 + $0xc0] sm:$0xff] }
  0x3f   : > { %14756 = vst [vmem:[#allocation16_spill] sm:$0xff] %v11799_v33  ;;  %363 = vst.msk [vmem:[#allocation2 + $0x78] sm:$0xff] %vm311_vm0, %v11799_v33  ;;  %v647_v45 = vld [vmem:[#allocation2 + $0x40] sm:$0xff]  ;;  %v438_v35 = vld [vmem:[%s14494_s5 + $0xb8] sm:$0xff] }
  0x40   : > { %14757 = vst [vmem:[#allocation17_spill] sm:$0xff] %v11810_v36  ;;  %364 = vst.msk [vmem:[#allocation2 + $0x80] sm:$0xff] %vm311_vm0, %v11810_v36  ;;  %564 = vperm.xlu1 %11399, %v438_v35   ;;  %v444_v35 = vld [vmem:[%s14494_s5 + $0xe8] sm:$0xff] }
  0x41   : > { %14758 = vst [vmem:[#allocation18_spill] sm:$0xff] %v11817_v38  ;;  %14759 = vst [vmem:[#allocation19_spill] sm:$0xff] %v11820_v39  ;;  %9985 = vmatmul.mubr.msk.f32.gmra.mrb[4].mxu0 %vm311_vm0, %v645_v37  ;;  %v648_v46 = vld [vmem:[#allocation2 + $0x48] sm:$0xff]  ;;  %v649_v54 = vld [vmem:[#allocation2 + $0x50] sm:$0xff] }
  0x42   : > { %365 = vst.msk [vmem:[#allocation2 + $0x88] sm:$0xff] %vm311_vm0, %v11817_v38  ;;  %366 = vst.msk [vmem:[#allocation2 + $0x90] sm:$0xff] %vm311_vm0, %v11820_v39  ;;  %9987 = vmatprep.mubr.msk.f32.mxu0 %vm311_vm0, %v646_v40  ;;  %v437_v37 = vld [vmem:[%s14494_s5 + $0xb0] sm:$0xff]  ;;  %v11958_v40 = vld [vmem:[%s14490_s1 + $0x8] sm:$0xf] }
  0x43   : > { %14760 = vst [vmem:[#allocation20_spill] sm:$0xff] %v11840_v43  ;;  %14761 = vst [vmem:[#allocation21_spill] sm:$0xff] %v11843_v44  ;;  %v650_v55 = vld [vmem:[#allocation2 + $0x58] sm:$0xff]  ;;  %v651_v61 = vld [vmem:[#allocation2 + $0x60] sm:$0xff]  ;;  %10076 = vmatprep.subr.msk.mxu0 %vm770_vm1, %v11958_v40  ;;  %559 = vperm.xlu0 %11398, %v437_v37  }
  0x44   : > { %367 = vst.msk [vmem:[#allocation2 + $0x98] sm:$0xff] %vm311_vm0, %v11840_v43  ;;  %368 = vst.msk [vmem:[#allocation2 + $0xa0] sm:$0xff] %vm311_vm0, %v11843_v44  ;;  %v652_v2 = vld [vmem:[#allocation2 + $0x68] sm:$0xff]  ;;  %v443_v37 = vld [vmem:[%s14494_s5 + $0xe0] sm:$0xff] }
  0x45   : > { %14762 = vst [vmem:[#allocation22_spill] sm:$0xff] %v11853_v47  ;;  %14763 = vst [vmem:[#allocation23_spill] sm:$0xff] %v11856_v48  ;;  %9988 = vmatmul.mubr.msk.f32.gmra.mrb[6].mxu0 %vm311_vm0, %v647_v45  ;;  %v653_v13 = vld [vmem:[#allocation2 + $0x70] sm:$0xff] }
  0x46   : > { %369 = vst.msk [vmem:[#allocation2 + $0xa8] sm:$0xff] %vm311_vm0, %v11853_v47  ;;  %370 = vst.msk [vmem:[#allocation2 + $0xb0] sm:$0xff] %vm311_vm0, %v11856_v48  ;;  %9990 = vmatprep.mubr.msk.f32.mxu0 %vm311_vm0, %v648_v46  ;;  %v654_v32 = vld [vmem:[#allocation2 + $0x78] sm:$0xff]  ;;  %v4600_v38 = vld [vmem:[%s14494_s5 + $0xb0] sm:$0xff] }
  0x47   : > { %14764 = vst [vmem:[#allocation24_spill] sm:$0xff] %v11874_v51  ;;  %14765 = vst [vmem:[#allocation25_spill] sm:$0xff] %v11877_v52  ;;  %v655_v45 = vld [vmem:[#allocation2 + $0x80] sm:$0xff] }
  0x48   : > { %371 = vst.msk [vmem:[#allocation2 + $0xb8] sm:$0xff] %vm311_vm0, %v11874_v51  ;;  %372 = vst.msk [vmem:[#allocation2 + $0xc0] sm:$0xff] %vm311_vm0, %v11877_v52 }
  0x49   : > { %14766 = vst [vmem:[#allocation26_spill] sm:$0xff] %v11892_v56  ;;  %14767 = vst [vmem:[#allocation27_spill] sm:$0xff] %v11895_v57  ;;  %9991 = vmatmul.mubr.msk.f32.gmra.mrb[8].mxu0 %vm311_vm0, %v649_v54  ;;  %v656_v46 = vld [vmem:[#allocation2 + $0x88] sm:$0xff] }
  0x4a   : > { %373 = vst.msk [vmem:[#allocation2 + $0xc8] sm:$0xff] %vm311_vm0, %v11892_v56  ;;  %374 = vst.msk [vmem:[#allocation2 + $0xd0] sm:$0xff] %vm311_vm0, %v11895_v57  ;;  %9993 = vmatprep.mubr.msk.f32.mxu0 %vm311_vm0, %v650_v55  ;;  %v440_v54 = vld [vmem:[%s14494_s5 + $0xc8] sm:$0xff]  ;;  %v439_v55 = vld [vmem:[%s14494_s5 + $0xc0] sm:$0xff] }
  0x4b   : > { %14768 = vst [vmem:[#allocation28_spill] sm:$0xff] %v11907_v59  ;;  %14769 = vst [vmem:[#allocation29_spill] sm:$0xff] %v11910_v60  ;;  %574 = vperm.xlu1 %11399, %v440_v54   ;;  %569 = vperm.xlu0 %11398, %v439_v55  }
  0x4c   : > { %375 = vst.msk [vmem:[#allocation2 + $0xd8] sm:$0xff] %vm311_vm0, %v11907_v59  ;;  %376 = vst.msk [vmem:[#allocation2 + $0xe0] sm:$0xff] %vm311_vm0, %v11910_v60 }
  0x4d   : > { %14770 = vst [vmem:[#allocation30_spill] sm:$0xff] %v11919_v62  ;;  %14771 = vst [vmem:[#allocation31_spill] sm:$0xff] %v11922_v63  ;;  %9994 = vmatmul.mubr.msk.f32.gmra.mrb[10].mxu0 %vm311_vm0, %v651_v61  ;;  %v657_v61 = vld [vmem:[#allocation2 + $0x90] sm:$0xff]  ;;  %v12277_v48 = vld [vmem:[#allocation2 + $0xa7] sm:$0xff] }
  0x4e   : > { %377 = vst.msk [vmem:[#allocation2 + $0xe8] sm:$0xff] %vm311_vm0, %v11919_v62  ;;  %378 = vst.msk [vmem:[#allocation2 + $0xf0] sm:$0xff] %vm311_vm0, %v11922_v63  ;;  %9996 = vmatprep.mubr.msk.f32.mxu0 %vm311_vm0, %v652_v2  ;;  %v658_v2 = vld [vmem:[#allocation2 + $0x98] sm:$0xff]  ;;  %v661_v54 = vld [vmem:[#allocation2 + $0xb0] sm:$0xff] }
  0x4f   : > { %14772 = vst [vmem:[#allocation32_spill] sm:$0xff] %v11938_v12  ;;  %379 = vst.msk [vmem:[#allocation2 + $0xf8] sm:$0xff] %vm311_vm0, %v11938_v12  ;;  %584 = vperm.xlu1 %11399, %v442_v10   ;;  %579 = vperm.xlu0 %11398, %v441_v11   ;;  %v662_v55 = vld [vmem:[#allocation2 + $0xb8] sm:$0xff]  ;;  %v663_v10 = vld [vmem:[#allocation2 + $0xc0] sm:$0xff] }
  0x50   : > { %14773 = vst [vmem:[#allocation33_spill] sm:$0xff] %v11944_v31  ;;  %380 = vst.msk [vmem:[#allocation2 + $0x100] sm:$0xff] %vm311_vm0, %v11944_v31  ;;  %v12295_v39 = vld [vmem:[#allocation2 + $0xaf] sm:$0xff]  ;;  %v12315_v30 = vld [vmem:[#allocation2 + $0xbf] sm:$0xff] }
  0x51   : > { %9997 = vmatmul.mubr.msk.f32.gmra.mrb[12].mxu0 %vm311_vm0, %v653_v13  ;;  %v659_v13 = vld [vmem:[#allocation2 + $0xa0] sm:$0xff]  ;;  %v664_v11 = vld [vmem:[#allocation2 + $0xc8] sm:$0xff]  ;;  %350 = vst.msk [vmem:[#allocation2 + $0x128] sm:$0x1] %vm349_vm2, %v11432_v3  ;;  %4513 = vst.msk [vmem:[#allocation3 + $0x128] sm:$0x1] %vm349_vm2, %v11432_v3 }
  0x52   : > { %9999 = vmatprep.mubr.msk.f32.mxu0 %vm311_vm0, %v654_v32  ;;  %v660_v32 = vld [vmem:[#allocation2 + $0xa8] sm:$0xff]  ;;  %14779 = vst [vmem:[#allocation39_spill] sm:$0xff] %v12315_v30 }
  0x53   : > { %594 = vperm.xlu1 %11399, %v444_v35   ;;  %589 = vperm.xlu0 %11398, %v443_v37   ;;  %v665_v35 = vld [vmem:[#allocation2 + $0xd0] sm:$0xff]  ;;  %v666_v37 = vld [vmem:[#allocation2 + $0xd8] sm:$0xff] }
  0x54   : > { %v384_v3 = vld [vmem:[#allocation2 + $0xf] sm:$0xff]  ;;  %v12355_v19 = vld [vmem:[#allocation2 + $0xdf] sm:$0xff] }
  0x55   : > { %10000 = vmatmul.mubr.msk.f32.gmra.mrb[14].mxu0 %vm311_vm0, %v655_v45  ;;  %v11987_v45 = vld [vmem:[%s11696_s27 + $0xf0] sm:$0xff]  ;;  %14787 = vst [vmem:[#allocation47_spill] sm:$0xff] %v12355_v19 }
  0x56   : > { %10002 = vmatprep.mubr.msk.f32.mxu0 %vm311_vm0, %v656_v46  ;;  %14774 = vst [vmem:[#allocation34_spill] sm:$0xff] %v11987_v45  ;;  %v11990_v46 = vld [vmem:[%s11696_s27 + $0xf8] sm:$0xff]  ;;  %381 = vst.msk [vmem:[#allocation2 + $0x108] sm:$0xff] %vm311_vm0, %v11987_v45  ;;  %v12175_v45 = vld [vmem:[#allocation2 + $0x47] sm:$0xff] }
  0x57   : > { %14775 = vst [vmem:[#allocation35_spill] sm:$0xff] %v11990_v46  ;;  %382 = vst.msk [vmem:[#allocation2 + $0x110] sm:$0xff] %vm311_vm0, %v11990_v46  ;;  %v12335_v24 = vld [vmem:[#allocation2 + $0xcf] sm:$0xff] }
  0x58   : > { %14783 = vst [vmem:[#allocation43_spill] sm:$0xff] %v12335_v24 }
  0x59   : > { %10003 = vmatmul.mubr.msk.f32.gmra.mrb[16].mxu0 %vm311_vm0, %v657_v61  ;;  %v446_v61 = vld [vmem:[%s14494_s5 + $0xf8] sm:$0xff] }
  0x5a   : > { %10005 = vmatprep.mubr.msk.f32.mxu0 %vm311_vm0, %v658_v2  ;;  %v445_v2 = vld [vmem:[%s14494_s5 + $0xf0] sm:$0xff]  ;;  %604 = vperm.xlu1 %11399, %v446_v61   ;;  %v667_v61 = vld [vmem:[#allocation2 + $0xe0] sm:$0xff] }
  0x5b   : > { %599 = vperm.xlu0 %11398, %v445_v2   ;;  %v668_v2 = vld [vmem:[#allocation2 + $0xe8] sm:$0xff] }
  0x5d   : > { %10006 = vmatmul.mubr.msk.f32.gmra.mrb[18].mxu0 %vm311_vm0, %v659_v13  ;;  %v1356_v13 = vld [vmem:[%s14495_s6 + $0x8] sm:$0xff] }
  0x5e   : > { %10008 = vmatprep.mubr.msk.f32.mxu0 %vm311_vm0, %v660_v32  ;;  %v1355_v32 = vld [vmem:[%s14495_s6] sm:$0xff]  ;;  %1394 = vperm.xlu1 %11399, %v1356_v13   ;;  %v669_v13 = vld [vmem:[#allocation2 + $0xf0] sm:$0xff] }
  0x5f   : > { %1389 = vperm.xlu0 %11398, %v1355_v32   ;;  %v670_v32 = vld [vmem:[#allocation2 + $0xf8] sm:$0xff] }
  0x61   : > { %10009 = vmatmul.mubr.msk.f32.gmra.mrb[20].mxu0 %vm311_vm0, %v661_v54  ;;  %v1358_v54 = vld [vmem:[%s14495_s6 + $0x18] sm:$0xff] }
  0x62   : > { %10011 = vmatprep.mubr.msk.f32.mxu0 %vm311_vm0, %v662_v55  ;;  %v1357_v55 = vld [vmem:[%s14495_s6 + $0x10] sm:$0xff]  ;;  %1404 = vperm.xlu1 %11399, %v1358_v54   ;;  %v671_v54 = vld [vmem:[#allocation2 + $0x100] sm:$0xff] }
  0x63   : > { %1399 = vperm.xlu0 %11398, %v1357_v55   ;;  %v1364_v55 = vld [vmem:[%s14495_s6 + $0x48] sm:$0xff] }
  0x65   : > { %10012 = vmatmul.mubr.msk.f32.gmra.mrb[22].mxu0 %vm311_vm0, %v663_v10  ;;  %v1360_v10 = vld [vmem:[%s14495_s6 + $0x28] sm:$0xff] }
  0x66   : > { %10014 = vmatprep.mubr.msk.f32.mxu0 %vm311_vm0, %v664_v11  ;;  %v1359_v11 = vld [vmem:[%s14495_s6 + $0x20] sm:$0xff]  ;;  %1414 = vperm.xlu1 %11399, %v1360_v10   ;;  %v1365_v10 = vld [vmem:[%s14495_s6 + $0x50] sm:$0xff] }
  0x67   : > { %1409 = vperm.xlu0 %11398, %v1359_v11   ;;  %v1368_v11 = vld [vmem:[%s14495_s6 + $0x68] sm:$0xff] }
  0x69   : > { %10015 = vmatmul.mubr.msk.f32.gmra.mrb[24].mxu0 %vm311_vm0, %v665_v35  ;;  %v1362_v35 = vld [vmem:[%s14495_s6 + $0x38] sm:$0xff] }
  0x6a   : > { %10017 = vmatprep.mubr.msk.f32.mxu0 %vm311_vm0, %v666_v37  ;;  %v1361_v37 = vld [vmem:[%s14495_s6 + $0x30] sm:$0xff]  ;;  %1424 = vperm.xlu1 %11399, %v1362_v35  }
  0x6b   : > { %1419 = vperm.xlu0 %11398, %v1361_v37   ;;  %v1369_v35 = vld [vmem:[%s14495_s6 + $0x70] sm:$0xff]  ;;  %v1372_v37 = vld [vmem:[%s14495_s6 + $0x88] sm:$0xff] }
  0x6d   : > { %10018 = vmatmul.mubr.msk.f32.gmra.mrb[26].mxu0 %vm311_vm0, %v667_v61  ;;  %v1363_v61 = vld [vmem:[%s14495_s6 + $0x40] sm:$0xff] }
  0x6e   : > { %10020 = vmatprep.mubr.msk.f32.mxu0 %vm311_vm0, %v668_v2  ;;  %1434 = vperm.xlu1 %11399, %v1364_v55   ;;  %v1366_v2 = vld [vmem:[%s14495_s6 + $0x58] sm:$0xff] }
  0x6f   : > { %1429 = vperm.xlu0 %11398, %v1363_v61   ;;  %v1374_v55 = vld [vmem:[%s14495_s6 + $0x98] sm:$0xff]  ;;  %v1373_v61 = vld [vmem:[%s14495_s6 + $0x90] sm:$0xff] }
  0x71   : > { %10021 = vmatmul.mubr.msk.f32.gmra.mrb[28].mxu0 %vm311_vm0, %v669_v13  ;;  %v1367_v13 = vld [vmem:[%s14495_s6 + $0x60] sm:$0xff] }
  0x72   : > { %10023 = vmatprep.mubr.msk.f32.mxu0 %vm311_vm0, %v670_v32  ;;  %1444 = vperm.xlu1 %11399, %v1366_v2   ;;  %v1370_v32 = vld [vmem:[%s14495_s6 + $0x78] sm:$0xff]  ;;  %v1376_v2 = vld [vmem:[%s14495_s6 + $0xa8] sm:$0xff] }
  0x73   : > { %1439 = vperm.xlu0 %11398, %v1365_v10   ;;  %v1375_v10 = vld [vmem:[%s14495_s6 + $0xa0] sm:$0xff] }
  0x75   : > { %10024 = vmatmul.mubr.msk.f32.gmra.mrb[30].mxu0 %vm311_vm0, %v671_v54  ;;  %v1371_v54 = vld [vmem:[%s14495_s6 + $0x80] sm:$0xff] }
  0x76   : > { %1454 = vperm.xlu1 %11399, %v1368_v11   ;;  %v1378_v11 = vld [vmem:[%s14495_s6 + $0xb8] sm:$0xff] }
  0x77   : > { %1449 = vperm.xlu0 %11398, %v1367_v13   ;;  %v1377_v13 = vld [vmem:[%s14495_s6 + $0xb0] sm:$0xff] }
  0x7a   : > { %1464 = vperm.xlu1 %11399, %v1370_v32   ;;  %v1380_v32 = vld [vmem:[%s14495_s6 + $0xc8] sm:$0xff] }
  0x7b   : > { %1459 = vperm.xlu0 %11398, %v1369_v35   ;;  %v1379_v35 = vld [vmem:[%s14495_s6 + $0xc0] sm:$0xff] }
  0x7e   : > { %1474 = vperm.xlu1 %11399, %v1372_v37   ;;  %v1382_v37 = vld [vmem:[%s14495_s6 + $0xd8] sm:$0xff] }
  0x7f   : > { %1469 = vperm.xlu0 %11398, %v1371_v54   ;;  %v1381_v54 = vld [vmem:[%s14495_s6 + $0xd0] sm:$0xff] }
  0x82   : > { %1484 = vperm.xlu1 %11399, %v1374_v55   ;;  %v1384_v55 = vld [vmem:[%s14495_s6 + $0xe8] sm:$0xff] }
  0x83   : > { %1479 = vperm.xlu0 %11398, %v1373_v61   ;;  %v1383_v61 = vld [vmem:[%s14495_s6 + $0xe0] sm:$0xff] }
  0x86   : > { %1494 = vperm.xlu1 %11399, %v1376_v2   ;;  %v1386_v2 = vld [vmem:[%s14495_s6 + $0xf8] sm:$0xff] }
  0x87   : > { %1489 = vperm.xlu0 %11398, %v1375_v10   ;;  %v1385_v10 = vld [vmem:[%s14495_s6 + $0xf0] sm:$0xff] }
  0x8a   : > { %1504 = vperm.xlu1 %11399, %v1378_v11   ;;  %v383_v11 = vld [vmem:[#allocation2 + $0x7] sm:$0xff] }
  0x8b   : > { %1499 = vperm.xlu0 %11398, %v1377_v13  }
  0x8e   : > { %1514 = vperm.xlu1 %11399, %v1380_v32   ;;  %v12112_v13 = vpop.permute.xlu1 %459  ;;  %v12114_v32 = vpop.permute.xlu0 %449 }
  0x8f   : > { %1509 = vperm.xlu0 %11398, %v1379_v35   ;;  %v607_v35 = vmul.f32 %v12114_v32, %v383_v11 }
  0x91   : > { %10028 = vmatprep.mubr.msk.f32.mxu0 %vm311_vm0, %v607_v35 }
  0x92   : > { %1524 = vperm.xlu1 %11399, %v1382_v37   ;;  %v12119_v37 = vld [vmem:[#allocation2 + $0x17] sm:$0xff] }
  0x93   : > { %1519 = vperm.xlu0 %11398, %v1381_v54   ;;  %v609_v54 = vmul.f32 %v12112_v13, %v12119_v37 }
  0x96   : > { %1534 = vperm.xlu1 %11399, %v1384_v55   ;;  %v12124_v55 = vpop.permute.xlu1 %464 }
  0x97   : > { %1529 = vperm.xlu0 %11398, %v1383_v61   ;;  %v12126_v61 = vpop.permute.xlu0 %454 }
  0x9a   : > { %1544 = vperm.xlu1 %11399, %v1386_v2   ;;  %v608_v2 = vmul.f32 %v12126_v61, %v384_v3  ;;  %v12143_v11 = vpop.permute.xlu1 %474  ;;  %v12159_v3 = vld [vmem:[#allocation2 + $0x2f] sm:$0xff] }
  0x9b   : > { %1539 = vperm.xlu0 %11398, %v1385_v10   ;;  %v12130_v10 = vld [vmem:[#allocation2 + $0x1f] sm:$0xff]  ;;  %v12145_v35 = vpop.permute.xlu0 %469 }
  0x9c   : > { %10029 = vmatmul.mubr.msk.f32.vlgmr.msra.gmra.mrb[0].mxu0 %vm311_vm0, %v608_v2 }
  0x9d   : > { %10077 = vmatpush3.msk.msra.mxu0 %vm770_vm1, %v11958_v40  ;;  %10031 = vmatprep.mubr.msk.f32.mxu0 %vm311_vm0, %v609_v54  ;;  %v12157_v40 = vld [vmem:[#allocation2 + $0x37] sm:$0xff] }
  0x9e   : > { %4617 = vperm.xlu1 %11399, %v11655_v5   ;;  %v12139_v5 = vld [vmem:[#allocation2 + $0x27] sm:$0xff]  ;;  %v12161_v54 = vpop.permute.xlu1 %484 }
  0x9f   : > { %4612 = vperm.xlu0 %11398, %v11489_v1   ;;  %v12137_v1 = vld [vmem:[%s14490_s1 + $0xc] sm:$0xf]  ;;  %v12163_v2 = vpop.permute.xlu0 %479 }
  0xa0   : > { %10126 = vmatprep.subr.msk.mxu0 %vm770_vm1, %v12137_v1 }
  0xa2   : > { %4627 = vperm.xlu1 %11399, %v11650_v4   ;;  %v611_v4 = vmul.f32 %v12139_v5, %v12145_v35  ;;  %v12177_v46 = vpop.permute.xlu1 %494 }
  0xa3   : > { %4622 = vperm.xlu0 %11398, %v11484_v0   ;;  %v610_v0 = vmul.f32 %v12124_v55, %v12130_v10  ;;  %v12179_v12 = vpop.permute.xlu0 %489 }
  0xa5   : > { %10032 = vmatmul.mubr.msk.f32.gmra.mrb[2].mxu0 %vm311_vm0, %v610_v0  ;;  %v12173_v0 = vld [vmem:[#allocation2 + $0x3f] sm:$0xff] }
  0xa6   : > { %4637 = vperm.xlu1 %11399, %v11668_v6   ;;  %10034 = vmatprep.mubr.msk.f32.mxu0 %vm311_vm0, %v611_v4  ;;  %v612_v6 = vmul.f32 %v12159_v3, %v12143_v11  ;;  %v614_v4 = vmul.f32 %v12173_v0, %v12161_v54  ;;  %v12193_v31 = vpop.permute.xlu1 %504 }
  0xa7   : > { %4632 = vperm.xlu0 %11398, %v11673_v7   ;;  %v613_v7 = vmul.f32 %v12157_v40, %v12163_v2  ;;  %v12195_v62 = vpop.permute.xlu0 %499 }
  0xa9   : > { %10035 = vmatmul.mubr.msk.f32.gmra.mrb[4].mxu0 %vm311_vm0, %v612_v6  ;;  %v12191_v6 = vld [vmem:[#allocation2 + $0x57] sm:$0xff] }
  0xaa   : > { %4647 = vperm.xlu1 %11399, %v11681_v8   ;;  %10037 = vmatprep.mubr.msk.f32.mxu0 %vm311_vm0, %v613_v7  ;;  %v615_v8 = vmul.f32 %v12175_v45, %v12179_v12  ;;  %v12209_v63 = vpop.permute.xlu1 %514 }
  0xab   : > { %4642 = vperm.xlu0 %11398, %v11686_v9   ;;  %v12189_v9 = vld [vmem:[#allocation2 + $0x4f] sm:$0xff]  ;;  %v12211_v59 = vpop.permute.xlu0 %509 }
  0xac   : > { %v616_v7 = vmul.f32 %v12189_v9, %v12177_v46 }
  0xad   : > { %10038 = vmatmul.mubr.msk.f32.gmra.mrb[6].mxu0 %vm311_vm0, %v614_v4  ;;  %v12207_v4 = vld [vmem:[#allocation2 + $0x67] sm:$0xff] }
  0xae   : > { %4657 = vperm.xlu1 %11399, %v11709_v14   ;;  %10040 = vmatprep.mubr.msk.f32.mxu0 %vm311_vm0, %v615_v8  ;;  %v617_v14 = vmul.f32 %v12191_v6, %v12195_v62  ;;  %v12225_v60 = vpop.permute.xlu1 %524 }
  0xaf   : > { %4652 = vperm.xlu0 %11398, %v11720_v17   ;;  %v12205_v17 = vld [vmem:[#allocation2 + $0x5f] sm:$0xff]  ;;  %v12227_v56 = vpop.permute.xlu0 %519 }
  0xb0   : > { %v618_v8 = vmul.f32 %v12205_v17, %v12193_v31 }
  0xb1   : > { %10041 = vmatmul.mubr.msk.f32.gmra.mrb[8].mxu0 %vm311_vm0, %v616_v7  ;;  %v12223_v7 = vld [vmem:[#allocation2 + $0x77] sm:$0xff] }
  0xb2   : > { %4667 = vperm.xlu1 %11399, %v11752_v22   ;;  %10043 = vmatprep.mubr.msk.f32.mxu0 %vm311_vm0, %v617_v14  ;;  %v619_v22 = vmul.f32 %v12207_v4, %v12211_v59  ;;  %v12241_v57 = vpop.permute.xlu1 %534 }
  0xb3   : > { %4662 = vperm.xlu0 %11398, %v11765_v25   ;;  %v12221_v25 = vld [vmem:[#allocation2 + $0x6f] sm:$0xff]  ;;  %v12243_v51 = vpop.permute.xlu0 %529 }
  0xb4   : > { %v620_v14 = vmul.f32 %v12221_v25, %v12209_v63 }
  0xb5   : > { %10044 = vmatmul.mubr.msk.f32.gmra.mrb[10].mxu0 %vm311_vm0, %v618_v8  ;;  %v12239_v8 = vld [vmem:[#allocation2 + $0x87] sm:$0xff] }
  0xb6   : > { %4677 = vperm.xlu1 %11399, %v11787_v29   ;;  %10046 = vmatprep.mubr.msk.f32.mxu0 %vm311_vm0, %v619_v22  ;;  %v621_v29 = vmul.f32 %v12223_v7, %v12227_v56  ;;  %v12257_v52 = vpop.permute.xlu1 %544 }
  0xb7   : > { %4672 = vperm.xlu0 %11398, %v11804_v34   ;;  %v12237_v34 = vld [vmem:[#allocation2 + $0x7f] sm:$0xff]  ;;  %v12259_v47 = vpop.permute.xlu0 %539 }
  0xb8   : > { %v622_v22 = vmul.f32 %v12237_v34, %v12225_v60 }
  0xb9   : > { %10047 = vmatmul.mubr.msk.f32.gmra.mrb[12].mxu0 %vm311_vm0, %v620_v14  ;;  %v12255_v14 = vld [vmem:[#allocation2 + $0x97] sm:$0xff] }
  0xba   : > { %4687 = vperm.xlu1 %11399, %v11831_v41   ;;  %10049 = vmatprep.mubr.msk.f32.mxu0 %vm311_vm0, %v621_v29  ;;  %v623_v41 = vmul.f32 %v12239_v8, %v12243_v51  ;;  %v12279_v43 = vpop.permute.xlu1 %554 }
  0xbb   : > { %4682 = vperm.xlu0 %11398, %v11836_v42   ;;  %v12253_v42 = vld [vmem:[#allocation2 + $0x8f] sm:$0xff]  ;;  %14776 = vst [vmem:[#allocation36_spill] sm:$0xff] %v12279_v43  ;;  %v12281_v44 = vpop.permute.xlu0 %549 }
  0xbc   : > { %v624_v29 = vmul.f32 %v12253_v42, %v12241_v57 }
  0xbd   : > { %10050 = vmatmul.mubr.msk.f32.gmra.mrb[14].mxu0 %vm311_vm0, %v622_v22  ;;  %v4598_v22 = vld [vmem:[%s14494_s5 + $0xa0] sm:$0xff] }
  0xbe   : > { %4697 = vperm.xlu1 %11399, %v11861_v49   ;;  %10052 = vmatprep.mubr.msk.f32.mxu0 %vm311_vm0, %v623_v41  ;;  %v625_v49 = vmul.f32 %v12255_v14, %v12259_v47  ;;  %v12275_v41 = vld [vmem:[#allocation2 + $0x9f] sm:$0xff] }
  0xbf   : > { %4692 = vperm.xlu0 %11398, %v11866_v50   ;;  %v4599_v50 = vld [vmem:[%s14494_s5 + $0xa8] sm:$0xff]  ;;  %v12299_v33 = vpop.permute.xlu1 %564 }
  0xc0   : > { %14777 = vst [vmem:[#allocation37_spill] sm:$0xff] %v12299_v33 }
  0xc1   : > { %10053 = vmatmul.mubr.msk.f32.gmra.mrb[16].mxu0 %vm311_vm0, %v624_v29  ;;  %v4601_v29 = vld [vmem:[%s14494_s5 + $0xb8] sm:$0xff] }
  0xc2   : > { %4707 = vperm.xlu1 %11399, %v11882_v53   ;;  %10055 = vmatprep.mubr.msk.f32.mxu0 %vm311_vm0, %v625_v49  ;;  %v626_v53 = vmul.f32 %v12275_v41, %v12257_v52  ;;  %v12297_v49 = vld [vmem:[#allocation2 + $0xb7] sm:$0xff]  ;;  %v12301_v36 = vpop.permute.xlu0 %559 }
  0xc3   : > { %4702 = vperm.xlu0 %11398, %v11900_v58   ;;  %v627_v58 = vmul.f32 %v12277_v48, %v12281_v44  ;;  %14778 = vst [vmem:[#allocation38_spill] sm:$0xff] %v12301_v36 }
  0xc5   : > { %10056 = vmatmul.mubr.msk.f32.gmra.mrb[18].mxu0 %vm311_vm0, %v626_v53  ;;  %v4603_v53 = vld [vmem:[%s14494_s5 + $0xc8] sm:$0xff] }
  0xc6   : > { %4717 = vperm.xlu1 %11399, %v4599_v50   ;;  %10058 = vmatprep.mubr.msk.f32.mxu0 %vm311_vm0, %v627_v58  ;;  %v628_v50 = vmul.f32 %v12295_v39, %v12279_v43  ;;  %v12317_v58 = vld [vmem:[#allocation2 + $0xc7] sm:$0xff] }
  0xc7   : > { %4712 = vperm.xlu0 %11398, %v4598_v22   ;;  %v629_v22 = vmul.f32 %v12297_v49, %v12301_v36  ;;  %14780 = vst [vmem:[#allocation40_spill] sm:$0xff] %v12317_v58  ;;  %v5522_v43 = vld [vmem:[%s14495_s6 + $0x28] sm:$0xff] }
  0xc9   : > { %10059 = vmatmul.mubr.msk.f32.gmra.mrb[20].mxu0 %vm311_vm0, %v628_v50  ;;  %v4605_v50 = vld [vmem:[%s14494_s5 + $0xd8] sm:$0xff] }
  0xca   : > { %4727 = vperm.xlu1 %11399, %v4601_v29   ;;  %v12319_v26 = vpop.permute.xlu1 %574  ;;  %v12321_v27 = vpop.permute.xlu0 %569  ;;  %10061 = vmatprep.mubr.msk.f32.mxu0 %vm311_vm0, %v629_v22  ;;  %v12337_v22 = vld [vmem:[#allocation2 + $0xd7] sm:$0xff] }
  0xcb   : > { %4722 = vperm.xlu0 %11398, %v4600_v38   ;;  %14781 = vst [vmem:[#allocation41_spill] sm:$0xff] %v12319_v26  ;;  %14782 = vst [vmem:[#allocation42_spill] sm:$0xff] %v12321_v27  ;;  %v630_v38 = vmul.f32 %v12315_v30, %v12299_v33  ;;  %v631_v29 = vmul.f32 %v12317_v58, %v12321_v27  ;;  %v2749_v27 = vld [vmem:[#allocation2 + $0x19] sm:$0xff]  ;;  %v1324_v33 = vld [vmem:[#allocation2 + $0x11] sm:$0xff] }
  0xcc   : > { %14784 = vst [vmem:[#allocation44_spill] sm:$0xff] %v12337_v22  ;;  %v3986_v30 = vld [vmem:[#allocation2 + $0x41] sm:$0xff] }
  0xcd   : > { %10062 = vmatmul.mubr.msk.f32.gmra.mrb[22].mxu0 %vm311_vm0, %v630_v38  ;;  %v4607_v38 = vld [vmem:[%s14494_s5 + $0xe8] sm:$0xff] }
  0xce   : > { %4737 = vperm.xlu1 %11399, %v4603_v53   ;;  %v12339_v20 = vpop.permute.xlu1 %584  ;;  %v12341_v21 = vpop.permute.xlu0 %579  ;;  %10064 = vmatprep.mubr.msk.f32.mxu0 %vm311_vm0, %v631_v29  ;;  %v12357_v29 = vld [vmem:[#allocation2 + $0xe7] sm:$0xff] }
  0xcf   : > { %4732 = vperm.xlu0 %11398, %v4602_v28   ;;  %14785 = vst [vmem:[#allocation45_spill] sm:$0xff] %v12339_v20  ;;  %14786 = vst [vmem:[#allocation46_spill] sm:$0xff] %v12341_v21  ;;  %v632_v28 = vmul.f32 %v12335_v24, %v12319_v26  ;;  %v633_v53 = vmul.f32 %v12337_v22, %v12341_v21  ;;  %v4608_v21 = vld [vmem:[%s14494_s5 + $0xf0] sm:$0xff]  ;;  %v5518_v22 = vld [vmem:[%s14495_s6 + $0x8] sm:$0xff] }
  0xd0   : > { %14788 = vst [vmem:[#allocation48_spill] sm:$0xff] %v12357_v29  ;;  %v12375_v26 = vld [vmem:[#allocation2 + $0xef] sm:$0xff] }
  0xd1   : > { %10065 = vmatmul.mubr.msk.f32.gmra.mrb[24].mxu0 %vm311_vm0, %v632_v28  ;;  %v4609_v28 = vld [vmem:[%s14494_s5 + $0xf8] sm:$0xff]  ;;  %14791 = vst [vmem:[#allocation51_spill] sm:$0xff] %v12375_v26 }
  0xd2   : > { %4747 = vperm.xlu1 %11399, %v4605_v50   ;;  %v12359_v15 = vpop.permute.xlu1 %594  ;;  %v12361_v16 = vpop.permute.xlu0 %589  ;;  %10067 = vmatprep.mubr.msk.f32.mxu0 %vm311_vm0, %v633_v53  ;;  %v12377_v53 = vld [vmem:[#allocation2 + $0xf7] sm:$0xff] }
  0xd3   : > { %4742 = vperm.xlu0 %11398, %v4604_v23   ;;  %14789 = vst [vmem:[#allocation49_spill] sm:$0xff] %v12359_v15  ;;  %14790 = vst [vmem:[#allocation50_spill] sm:$0xff] %v12361_v16  ;;  %v634_v23 = vmul.f32 %v12355_v19, %v12339_v20  ;;  %v635_v50 = vmul.f32 %v12357_v29, %v12361_v16  ;;  %v12388_v16 = vld [vmem:[#allocation2 + $0x31] sm:$0xff]  ;;  %v1323_v29 = vld [vmem:[#allocation2 + $0x9] sm:$0xff] }
  0xd4   : > { %14792 = vst [vmem:[#allocation52_spill] sm:$0xff] %v12377_v53 }
  0xd5   : > { %10068 = vmatmul.mubr.msk.f32.gmra.mrb[26].mxu0 %vm311_vm0, %v634_v23  ;;  %v2750_v23 = vld [vmem:[#allocation2 + $0x21] sm:$0xff] }
  0xd6   : > { %4757 = vperm.xlu1 %11399, %v4607_v38   ;;  %10070 = vmatprep.mubr.msk.f32.mxu0 %vm311_vm0, %v635_v50  ;;  %v3983_v50 = vld [vmem:[#allocation2 + $0x29] sm:$0xff] }
  0xd7   : > { %4752 = vperm.xlu0 %11398, %v4606_v18   ;;  %v636_v18 = vmul.f32 %v12375_v26, %v12359_v15  ;;  %v5517_v15 = vld [vmem:[%s14495_s6] sm:$0xff] }
  0xd8   : > { %v12397_v26 = vld [vmem:[#allocation2 + $0xff] sm:$0xff] }
  0xd9   : > { %v12379_v20 = vpop.permute.xlu1 %604  ;;  %10071 = vmatmul.mubr.msk.f32.gmra.mrb[28].mxu0 %vm311_vm0, %v636_v18  ;;  %14795 = vst [vmem:[#allocation55_spill] sm:$0xff] %v12397_v26 }
  0xda   : > { %14793 = vst [vmem:[#allocation53_spill] sm:$0xff] %v12379_v20  ;;  %v12381_v19 = vpop.permute.xlu0 %599  ;;  %4767 = vperm.xlu1 %11399, %v4609_v28  }
  0xdb   : > { %14794 = vst [vmem:[#allocation54_spill] sm:$0xff] %v12381_v19  ;;  %v637_v38 = vmul.f32 %v12377_v53, %v12381_v19  ;;  %4762 = vperm.xlu0 %11398, %v4608_v21   ;;  %v638_v21 = vmul.f32 %v12397_v26, %v12379_v20  ;;  %v3985_v20 = vld [vmem:[#allocation2 + $0x39] sm:$0xff]  ;;  %v3988_v26 = vld [vmem:[#allocation2 + $0x51] sm:$0xff] }
  0xdd   : > { %v1395_v28 = vpop.permute.xlu1 %1394  ;;  %10073 = vmatprep.mubr.msk.f32.mxu0 %vm311_vm0, %v637_v38  ;;  %v5520_v38 = vld [vmem:[%s14495_s6 + $0x18] sm:$0xff] }
  0xde   : > { %v1390_v19 = vpop.permute.xlu0 %1389  ;;  %v12402_v53 = vmul.f32 %v2750_v23, %v1395_v28  ;;  %v12405_v24 = vmul.f32 %v12388_v16, %v1395_v28  ;;  %5556 = vperm.xlu1 %11399, %v5518_v22   ;;  %10074 = vmatmul.mubr.msk.f32.gmra.mrb[30].mxu0 %vm311_vm0, %v638_v21 }
  0xdf   : > { %v1547_v18 = vmul.f32 %v1390_v19, %v1323_v29  ;;  %v12407_v58 = vmul.f32 %v2749_v27, %v1390_v19  ;;  %v12409_v36 = vmul.f32 %v3983_v50, %v1390_v19  ;;  %5551 = vperm.xlu0 %11398, %v5517_v15  }
  0xe0   : > { %14796 = vst [vmem:[#allocation56_spill] sm:$0xff] %v12402_v53  ;;  %14797 = vst [vmem:[#allocation57_spill] sm:$0xff] %v12405_v24  ;;  %v5519_v24 = vld [vmem:[%s14495_s6 + $0x10] sm:$0xff]  ;;  %v1548_v53 = vmul.f32 %v1395_v28, %v1324_v33  ;;  %v5521_v28 = vld [vmem:[%s14495_s6 + $0x20] sm:$0xff] }
  0xe1   : > { %14798 = vst [vmem:[#allocation58_spill] sm:$0xff] %v12407_v58  ;;  %14799 = vst [vmem:[#allocation59_spill] sm:$0xff] %v12409_v36  ;;  %v1405_v29 = vpop.permute.xlu1 %1404  ;;  %10078 = vmatprep.mubr.msk.f32.mxu0 %vm311_vm0, %v1547_v18  ;;  %v3987_v33 = vld [vmem:[#allocation2 + $0x49] sm:$0xff] }
  0xe2   : > { %v1400_v22 = vpop.permute.xlu0 %1399  ;;  %v12420_v19 = vmul.f32 %v12388_v16, %v1405_v29  ;;  %v12422_v15 = vmul.f32 %v3986_v30, %v1405_v29  ;;  %5566 = vperm.xlu1 %11399, %v5520_v38   ;;  %10079 = vmatmul.mubr.msk.f32.vlgmr.msra.gmra.mrb[0].mxu0 %vm311_vm0, %v1548_v53  ;;  %v1550_v38 = vmul.f32 %v2750_v23, %v1405_v29 }
  0xe3   : > { %v1549_v36 = vmul.f32 %v2749_v27, %v1400_v22  ;;  %v12424_v58 = vmul.f32 %v3983_v50, %v1400_v22  ;;  %v12426_v21 = vmul.f32 %v3985_v20, %v1400_v22  ;;  %5561 = vperm.xlu0 %11398, %v5519_v24   ;;  %v12438_v27 = vld [vmem:[%s14490_s1 + $0x10] sm:$0xf]  ;;  %10127 = vmatpush3.msk.msra.mxu0 %vm770_vm1, %v12137_v1  ;;  %v5524_v1 = vld [vmem:[%s14495_s6 + $0x38] sm:$0xff] }
  0xe4   : > { %14800 = vst [vmem:[#allocation60_spill] sm:$0xff] %v12420_v19  ;;  %14801 = vst [vmem:[#allocation61_spill] sm:$0xff] %v12422_v15  ;;  %10176 = vmatprep.subr.msk.mxu0 %vm770_vm1, %v12438_v27 }
  0xe5   : > { %14802 = vst [vmem:[#allocation62_spill] sm:$0xff] %v12424_v58  ;;  %14803 = vst [vmem:[#allocation63_spill] sm:$0xff] %v12426_v21  ;;  %v1415_v24 = vpop.permute.xlu1 %1414  ;;  %10081 = vmatprep.mubr.msk.f32.mxu0 %vm311_vm0, %v1549_v36  ;;  %v3990_v58 = vld [vmem:[#allocation2 + $0x61] sm:$0xff]  ;;  %v3989_v36 = vld [vmem:[#allocation2 + $0x59] sm:$0xff] }
  0xe6   : > { %v1410_v18 = vpop.permute.xlu0 %1409  ;;  %v12443_v22 = vmul.f32 %v3986_v30, %v1415_v24  ;;  %v12445_v53 = vmul.f32 %v3988_v26, %v1415_v24  ;;  %5576 = vperm.xlu1 %11399, %v5522_v43   ;;  %10082 = vmatmul.mubr.msk.f32.gmra.mrb[2].mxu0 %vm311_vm0, %v1550_v38  ;;  %v5523_v43 = vld [vmem:[%s14495_s6 + $0x30] sm:$0xff]  ;;  %v1552_v29 = vmul.f32 %v12388_v16, %v1415_v24  ;;  %v5525_v16 = vld [vmem:[%s14495_s6 + $0x40] sm:$0xff] }
  0xe7   : > { %v1551_v15 = vmul.f32 %v3983_v50, %v1410_v18  ;;  %v12447_v21 = vmul.f32 %v3985_v20, %v1410_v18  ;;  %v12449_v19 = vmul.f32 %v3987_v33, %v1410_v18  ;;  %5571 = vperm.xlu0 %11398, %v5521_v28  }
  0xe8   : > { %14804 = vst [vmem:[#allocation64_spill] sm:$0xff] %v12443_v22  ;;  %14805 = vst [vmem:[#allocation65_spill] sm:$0xff] %v12445_v53  ;;  %v3992_v22 = vld [vmem:[#allocation2 + $0x71] sm:$0xff] }
  0xe9   : > { %14806 = vst [vmem:[#allocation66_spill] sm:$0xff] %v12447_v21  ;;  %14807 = vst [vmem:[#allocation67_spill] sm:$0xff] %v12449_v19  ;;  %v1425_v23 = vpop.permute.xlu1 %1424  ;;  %10084 = vmatprep.mubr.msk.f32.mxu0 %vm311_vm0, %v1551_v15  ;;  %v5526_v21 = vld [vmem:[%s14495_s6 + $0x48] sm:$0xff] }
  0xea   : > { %v1420_v50 = vpop.permute.xlu0 %1419  ;;  %v12462_v28 = vmul.f32 %v3988_v26, %v1425_v23  ;;  %v12464_v18 = vmul.f32 %v3990_v58, %v1425_v23  ;;  %5586 = vperm.xlu1 %11399, %v5524_v1   ;;  %10085 = vmatmul.mubr.msk.f32.gmra.mrb[4].mxu0 %vm311_vm0, %v1552_v29  ;;  %v3991_v15 = vld [vmem:[#allocation2 + $0x69] sm:$0xff]  ;;  %v1554_v1 = vmul.f32 %v3986_v30, %v1425_v23  ;;  %v3994_v29 = vld [vmem:[#allocation2 + $0x81] sm:$0xff] }
  0xeb   : > { %v1553_v53 = vmul.f32 %v3985_v20, %v1420_v50  ;;  %v12466_v19 = vmul.f32 %v3987_v33, %v1420_v50  ;;  %v12468_v38 = vmul.f32 %v3989_v36, %v1420_v50  ;;  %5581 = vperm.xlu0 %11398, %v5523_v43   ;;  %v5527_v30 = vld [vmem:[%s14495_s6 + $0x50] sm:$0xff] }
  0xec   : > { %14808 = vst [vmem:[#allocation68_spill] sm:$0xff] %v12462_v28  ;;  %14809 = vst [vmem:[#allocation69_spill] sm:$0xff] %v12464_v18 }
  0xed   : > { %14810 = vst [vmem:[#allocation70_spill] sm:$0xff] %v12466_v19  ;;  %14811 = vst [vmem:[#allocation71_spill] sm:$0xff] %v12468_v38  ;;  %v1435_v24 = vpop.permute.xlu1 %1434  ;;  %10087 = vmatprep.mubr.msk.f32.mxu0 %vm311_vm0, %v1553_v53  ;;  %v5528_v19 = vld [vmem:[%s14495_s6 + $0x58] sm:$0xff] }
  0xee   : > { %v1430_v20 = vpop.permute.xlu0 %1429  ;;  %v12478_v50 = vmul.f32 %v3990_v58, %v1435_v24  ;;  %v12480_v43 = vmul.f32 %v3992_v22, %v1435_v24  ;;  %5596 = vperm.xlu1 %11399, %v5526_v21   ;;  %10088 = vmatmul.mubr.msk.f32.gmra.mrb[6].mxu0 %vm311_vm0, %v1554_v1  ;;  %v3993_v53 = vld [vmem:[#allocation2 + $0x79] sm:$0xff]  ;;  %v1556_v21 = vmul.f32 %v3988_v26, %v1435_v24  ;;  %v3996_v1 = vld [vmem:[#allocation2 + $0x91] sm:$0xff] }
  0xef   : > { %v1555_v18 = vmul.f32 %v3987_v33, %v1430_v20  ;;  %v12482_v38 = vmul.f32 %v3989_v36, %v1430_v20  ;;  %v12484_v28 = vmul.f32 %v3991_v15, %v1430_v20  ;;  %5591 = vperm.xlu0 %11398, %v5525_v16   ;;  %v5529_v26 = vld [vmem:[%s14495_s6 + $0x60] sm:$0xff] }
  0xf0   : > { %14812 = vst [vmem:[#allocation72_spill] sm:$0xff] %v12478_v50  ;;  %14813 = vst [vmem:[#allocation73_spill] sm:$0xff] %v12480_v43 }
  0xf1   : > { %14814 = vst [vmem:[#allocation74_spill] sm:$0xff] %v12482_v38  ;;  %14815 = vst [vmem:[#allocation75_spill] sm:$0xff] %v12484_v28  ;;  %v1445_v23 = vpop.permute.xlu1 %1444  ;;  %10090 = vmatprep.mubr.msk.f32.mxu0 %vm311_vm0, %v1555_v18  ;;  %v5530_v38 = vld [vmem:[%s14495_s6 + $0x68] sm:$0xff] }
  0xf2   : > { %v1440_v33 = vpop.permute.xlu0 %1439  ;;  %v12494_v20 = vmul.f32 %v3992_v22, %v1445_v23  ;;  %v12496_v16 = vmul.f32 %v3994_v29, %v1445_v23  ;;  %5606 = vperm.xlu1 %11399, %v5528_v19   ;;  %10091 = vmatmul.mubr.msk.f32.gmra.mrb[8].mxu0 %vm311_vm0, %v1556_v21  ;;  %v3995_v18 = vld [vmem:[#allocation2 + $0x89] sm:$0xff]  ;;  %v1558_v19 = vmul.f32 %v3990_v58, %v1445_v23  ;;  %v3998_v21 = vld [vmem:[#allocation2 + $0xa1] sm:$0xff] }
  0xf3   : > { %v1557_v43 = vmul.f32 %v3989_v36, %v1440_v33  ;;  %v12498_v28 = vmul.f32 %v3991_v15, %v1440_v33  ;;  %v12500_v50 = vmul.f32 %v3993_v53, %v1440_v33  ;;  %5601 = vperm.xlu0 %11398, %v5527_v30   ;;  %v5531_v58 = vld [vmem:[%s14495_s6 + $0x70] sm:$0xff] }
  0xf4   : > { %14816 = vst [vmem:[#allocation76_spill] sm:$0xff] %v12494_v20  ;;  %14817 = vst [vmem:[#allocation77_spill] sm:$0xff] %v12496_v16 }
  0xf5   : > { %14818 = vst [vmem:[#allocation78_spill] sm:$0xff] %v12498_v28  ;;  %14819 = vst [vmem:[#allocation79_spill] sm:$0xff] %v12500_v50  ;;  %v1455_v24 = vpop.permute.xlu1 %1454  ;;  %10093 = vmatprep.mubr.msk.f32.mxu0 %vm311_vm0, %v1557_v43  ;;  %v5532_v28 = vld [vmem:[%s14495_s6 + $0x78] sm:$0xff] }
  0xf6   : > { %v1450_v36 = vpop.permute.xlu0 %1449  ;;  %v12510_v33 = vmul.f32 %v3994_v29, %v1455_v24  ;;  %v12512_v30 = vmul.f32 %v3996_v1, %v1455_v24  ;;  %5616 = vperm.xlu1 %11399, %v5530_v38   ;;  %10094 = vmatmul.mubr.msk.f32.gmra.mrb[10].mxu0 %vm311_vm0, %v1558_v19  ;;  %v3997_v43 = vld [vmem:[#allocation2 + $0x99] sm:$0xff]  ;;  %v1560_v38 = vmul.f32 %v3992_v22, %v1455_v24  ;;  %v4000_v19 = vld [vmem:[#allocation2 + $0xb1] sm:$0xff] }
  0xf7   : > { %v1559_v16 = vmul.f32 %v3991_v15, %v1450_v36  ;;  %v12514_v50 = vmul.f32 %v3993_v53, %v1450_v36  ;;  %v12516_v20 = vmul.f32 %v3995_v18, %v1450_v36  ;;  %5611 = vperm.xlu0 %11398, %v5529_v26   ;;  %v5533_v22 = vld [vmem:[%s14495_s6 + $0x80] sm:$0xff] }
  0xf8   : > { %14820 = vst [vmem:[#allocation80_spill] sm:$0xff] %v12510_v33  ;;  %14821 = vst [vmem:[#allocation81_spill] sm:$0xff] %v12512_v30 }
  0xf9   : > { %14822 = vst [vmem:[#allocation82_spill] sm:$0xff] %v12514_v50  ;;  %14823 = vst [vmem:[#allocation83_spill] sm:$0xff] %v12516_v20  ;;  %v1465_v23 = vpop.permute.xlu1 %1464  ;;  %10096 = vmatprep.mubr.msk.f32.mxu0 %vm311_vm0, %v1559_v16  ;;  %v5534_v50 = vld [vmem:[%s14495_s6 + $0x88] sm:$0xff] }
  0xfa   : > { %v1460_v15 = vpop.permute.xlu0 %1459  ;;  %v12526_v36 = vmul.f32 %v3996_v1, %v1465_v23  ;;  %v12528_v26 = vmul.f32 %v3998_v21, %v1465_v23  ;;  %5626 = vperm.xlu1 %11399, %v5532_v28   ;;  %10097 = vmatmul.mubr.msk.f32.gmra.mrb[12].mxu0 %vm311_vm0, %v1560_v38  ;;  %v3999_v16 = vld [vmem:[#allocation2 + $0xa9] sm:$0xff]  ;;  %v1562_v28 = vmul.f32 %v3994_v29, %v1465_v23  ;;  %v4002_v38 = vld [vmem:[#allocation2 + $0xc1] sm:$0xff] }
  0xfb   : > { %v1561_v30 = vmul.f32 %v3993_v53, %v1460_v15  ;;  %v12530_v20 = vmul.f32 %v3995_v18, %v1460_v15  ;;  %v12532_v33 = vmul.f32 %v3997_v43, %v1460_v15  ;;  %5621 = vperm.xlu0 %11398, %v5531_v58   ;;  %v5535_v29 = vld [vmem:[%s14495_s6 + $0x90] sm:$0xff] }
  0xfc   : > { %14824 = vst [vmem:[#allocation84_spill] sm:$0xff] %v12526_v36  ;;  %14825 = vst [vmem:[#allocation85_spill] sm:$0xff] %v12528_v26 }
  0xfd   : > { %14826 = vst [vmem:[#allocation86_spill] sm:$0xff] %v12530_v20  ;;  %14827 = vst [vmem:[#allocation87_spill] sm:$0xff] %v12532_v33  ;;  %v1475_v24 = vpop.permute.xlu1 %1474  ;;  %10099 = vmatprep.mubr.msk.f32.mxu0 %vm311_vm0, %v1561_v30  ;;  %v5536_v20 = vld [vmem:[%s14495_s6 + $0x98] sm:$0xff] }
  0xfe   : > { %v1470_v53 = vpop.permute.xlu0 %1469  ;;  %v12542_v15 = vmul.f32 %v3998_v21, %v1475_v24  ;;  %v12544_v58 = vmul.f32 %v4000_v19, %v1475_v24  ;;  %5636 = vperm.xlu1 %11399, %v5534_v50   ;;  %10100 = vmatmul.mubr.msk.f32.gmra.mrb[14].mxu0 %vm311_vm0, %v1562_v28  ;;  %v4001_v30 = vld [vmem:[#allocation2 + $0xb9] sm:$0xff]  ;;  %v1564_v50 = vmul.f32 %v3996_v1, %v1475_v24  ;;  %v4004_v28 = vld [vmem:[#allocation2 + $0xd1] sm:$0xff] }
  0xff   : > { %v1563_v26 = vmul.f32 %v3995_v18, %v1470_v53  ;;  %v12546_v33 = vmul.f32 %v3997_v43, %v1470_v53  ;;  %v12548_v36 = vmul.f32 %v3999_v16, %v1470_v53  ;;  %5631 = vperm.xlu0 %11398, %v5533_v22   ;;  %v5537_v1 = vld [vmem:[%s14495_s6 + $0xa0] sm:$0xff] }
 0x100   : > { %14828 = vst [vmem:[#allocation88_spill] sm:$0xff] %v12542_v15  ;;  %14829 = vst [vmem:[#allocation89_spill] sm:$0xff] %v12544_v58 }
 0x101   : > { %14830 = vst [vmem:[#allocation90_spill] sm:$0xff] %v12546_v33  ;;  %14831 = vst [vmem:[#allocation91_spill] sm:$0xff] %v12548_v36  ;;  %v1485_v23 = vpop.permute.xlu1 %1484  ;;  %10102 = vmatprep.mubr.msk.f32.mxu0 %vm311_vm0, %v1563_v26  ;;  %v5538_v33 = vld [vmem:[%s14495_s6 + $0xa8] sm:$0xff] }
 0x102   : > { %v1480_v18 = vpop.permute.xlu0 %1479  ;;  %v12558_v53 = vmul.f32 %v4000_v19, %v1485_v23  ;;  %v12560_v22 = vmul.f32 %v4002_v38, %v1485_v23  ;;  %5646 = vperm.xlu1 %11399, %v5536_v20   ;;  %10103 = vmatmul.mubr.msk.f32.gmra.mrb[16].mxu0 %vm311_vm0, %v1564_v50  ;;  %v4003_v26 = vld [vmem:[#allocation2 + $0xc9] sm:$0xff]  ;;  %v1566_v20 = vmul.f32 %v3998_v21, %v1485_v23  ;;  %v4006_v50 = vld [vmem:[#allocation2 + $0xe1] sm:$0xff] }
 0x103   : > { %v1565_v58 = vmul.f32 %v3997_v43, %v1480_v18  ;;  %v12562_v36 = vmul.f32 %v3999_v16, %v1480_v18  ;;  %v12564_v15 = vmul.f32 %v4001_v30, %v1480_v18  ;;  %5641 = vperm.xlu0 %11398, %v5535_v29   ;;  %v5539_v21 = vld [vmem:[%s14495_s6 + $0xb0] sm:$0xff] }
 0x104   : > { %14832 = vst [vmem:[#allocation92_spill] sm:$0xff] %v12558_v53  ;;  %14833 = vst [vmem:[#allocation93_spill] sm:$0xff] %v12560_v22 }
 0x105   : > { %14834 = vst [vmem:[#allocation94_spill] sm:$0xff] %v12562_v36  ;;  %14835 = vst [vmem:[#allocation95_spill] sm:$0xff] %v12564_v15  ;;  %v1495_v24 = vpop.permute.xlu1 %1494  ;;  %10105 = vmatprep.mubr.msk.f32.mxu0 %vm311_vm0, %v1565_v58  ;;  %v5540_v36 = vld [vmem:[%s14495_s6 + $0xb8] sm:$0xff] }
 0x106   : > { %v1490_v43 = vpop.permute.xlu0 %1489  ;;  %v12574_v18 = vmul.f32 %v4002_v38, %v1495_v24  ;;  %v12576_v29 = vmul.f32 %v4004_v28, %v1495_v24  ;;  %5656 = vperm.xlu1 %11399, %v5538_v33   ;;  %10106 = vmatmul.mubr.msk.f32.gmra.mrb[18].mxu0 %vm311_vm0, %v1566_v20  ;;  %v4005_v58 = vld [vmem:[#allocation2 + $0xd9] sm:$0xff]  ;;  %v1568_v33 = vmul.f32 %v4000_v19, %v1495_v24  ;;  %v4008_v20 = vld [vmem:[#allocation2 + $0xf1] sm:$0xff] }
 0x107   : > { %v1567_v22 = vmul.f32 %v3999_v16, %v1490_v43  ;;  %v12578_v15 = vmul.f32 %v4001_v30, %v1490_v43  ;;  %v12580_v53 = vmul.f32 %v4003_v26, %v1490_v43  ;;  %5651 = vperm.xlu0 %11398, %v5537_v1   ;;  %v5541_v19 = vld [vmem:[%s14495_s6 + $0xc0] sm:$0xff] }
 0x108   : > { %14836 = vst [vmem:[#allocation96_spill] sm:$0xff] %v12574_v18  ;;  %14837 = vst [vmem:[#allocation97_spill] sm:$0xff] %v12576_v29 }
 0x109   : > { %14838 = vst [vmem:[#allocation98_spill] sm:$0xff] %v12578_v15  ;;  %14839 = vst [vmem:[#allocation99_spill] sm:$0xff] %v12580_v53  ;;  %v1505_v23 = vpop.permute.xlu1 %1504  ;;  %10108 = vmatprep.mubr.msk.f32.mxu0 %vm311_vm0, %v1567_v22  ;;  %v5542_v15 = vld [vmem:[%s14495_s6 + $0xc8] sm:$0xff] }
 0x10a   : > { %v1500_v16 = vpop.permute.xlu0 %1499  ;;  %v12590_v43 = vmul.f32 %v4004_v28, %v1505_v23  ;;  %v12592_v1 = vmul.f32 %v4006_v50, %v1505_v23  ;;  %5666 = vperm.xlu1 %11399, %v5540_v36   ;;  %10109 = vmatmul.mubr.msk.f32.gmra.mrb[20].mxu0 %vm311_vm0, %v1568_v33  ;;  %v4007_v22 = vld [vmem:[#allocation2 + $0xe9] sm:$0xff]  ;;  %v1570_v36 = vmul.f32 %v4002_v38, %v1505_v23  ;;  %v4010_v33 = vld [vmem:[#allocation2 + $0x101] sm:$0xff] }
 0x10b   : > { %v1569_v29 = vmul.f32 %v4001_v30, %v1500_v16  ;;  %v12594_v53 = vmul.f32 %v4003_v26, %v1500_v16  ;;  %v12596_v18 = vmul.f32 %v4005_v58, %v1500_v16  ;;  %5661 = vperm.xlu0 %11398, %v5539_v21   ;;  %v5543_v38 = vld [vmem:[%s14495_s6 + $0xd0] sm:$0xff] }
 0x10c   : > { %14840 = vst [vmem:[#allocation100_spill] sm:$0xff] %v12590_v43  ;;  %14841 = vst [vmem:[#allocation101_spill] sm:$0xff] %v12592_v1 }
 0x10d   : > { %14842 = vst [vmem:[#allocation102_spill] sm:$0xff] %v12594_v53  ;;  %14843 = vst [vmem:[#allocation103_spill] sm:$0xff] %v12596_v18  ;;  %v1515_v24 = vpop.permute.xlu1 %1514  ;;  %10111 = vmatprep.mubr.msk.f32.mxu0 %vm311_vm0, %v1569_v29  ;;  %v5544_v53 = vld [vmem:[%s14495_s6 + $0xd8] sm:$0xff] }
 0x10e   : > { %v1510_v30 = vpop.permute.xlu0 %1509  ;;  %v12606_v16 = vmul.f32 %v4006_v50, %v1515_v24  ;;  %v12608_v21 = vmul.f32 %v4008_v20, %v1515_v24  ;;  %5676 = vperm.xlu1 %11399, %v5542_v15   ;;  %10112 = vmatmul.mubr.msk.f32.gmra.mrb[22].mxu0 %vm311_vm0, %v1570_v36  ;;  %v4009_v29 = vld [vmem:[#allocation2 + $0xf9] sm:$0xff]  ;;  %v1572_v15 = vmul.f32 %v4004_v28, %v1515_v24  ;;  %v12630_v36 = vld [vmem:[#allocation2 + $0x111] sm:$0xff]  ;;  %v12636_v28 = vld [vmem:[#allocation2 + $0x109] sm:$0xff] }
 0x10f   : > { %v1571_v1 = vmul.f32 %v4003_v26, %v1510_v30  ;;  %v12610_v18 = vmul.f32 %v4005_v58, %v1510_v30  ;;  %v12612_v43 = vmul.f32 %v4007_v22, %v1510_v30  ;;  %5671 = vperm.xlu0 %11398, %v5541_v19  }
 0x110   : > { %14844 = vst [vmem:[#allocation104_spill] sm:$0xff] %v12606_v16  ;;  %14845 = vst [vmem:[#allocation105_spill] sm:$0xff] %v12608_v21 }
 0x111   : > { %14846 = vst [vmem:[#allocation106_spill] sm:$0xff] %v12610_v18  ;;  %14847 = vst [vmem:[#allocation107_spill] sm:$0xff] %v12612_v43  ;;  %v1525_v23 = vpop.permute.xlu1 %1524  ;;  %10114 = vmatprep.mubr.msk.f32.mxu0 %vm311_vm0, %v1571_v1  ;;  %v5546_v18 = vld [vmem:[%s14495_s6 + $0xe8] sm:$0xff] }
 0x112   : > { %v1520_v26 = vpop.permute.xlu0 %1519  ;;  %v12622_v30 = vmul.f32 %v4008_v20, %v1525_v23  ;;  %v12624_v19 = vmul.f32 %v4010_v33, %v1525_v23  ;;  %5686 = vperm.xlu1 %11399, %v5544_v53   ;;  %10115 = vmatmul.mubr.msk.f32.gmra.mrb[24].mxu0 %vm311_vm0, %v1572_v15  ;;  %v1574_v24 = vmul.f32 %v4006_v50, %v1525_v23  ;;  %v5547_v50 = vld [vmem:[%s14495_s6 + $0xf0] sm:$0xff] }
 0x113   : > { %v1573_v21 = vmul.f32 %v4005_v58, %v1520_v26  ;;  %v12626_v43 = vmul.f32 %v4007_v22, %v1520_v26  ;;  %v12628_v16 = vmul.f32 %v4009_v29, %v1520_v26  ;;  %5681 = vperm.xlu0 %11398, %v5543_v38   ;;  %v5545_v58 = vld [vmem:[%s14495_s6 + $0xe0] sm:$0xff] }
 0x114   : > { %14848 = vst [vmem:[#allocation108_spill] sm:$0xff] %v12622_v30  ;;  %14849 = vst [vmem:[#allocation109_spill] sm:$0xff] %v12624_v19  ;;  %v5548_v30 = vld [vmem:[%s14495_s6 + $0xf8] sm:$0xff] }
 0x115   : > { %14850 = vst [vmem:[#allocation110_spill] sm:$0xff] %v12628_v16  ;;  %v1535_v53 = vpop.permute.xlu1 %1534  ;;  %10117 = vmatprep.mubr.msk.f32.mxu0 %vm311_vm0, %v1573_v21 }
 0x116   : > { %v1530_v1 = vpop.permute.xlu0 %1529  ;;  %v12642_v38 = vmul.f32 %v4010_v33, %v1535_v53  ;;  %v12645_v26 = vmul.f32 %v12630_v36, %v1535_v53  ;;  %5696 = vperm.xlu1 %11399, %v5546_v18   ;;  %10118 = vmatmul.mubr.msk.f32.gmra.mrb[26].mxu0 %vm311_vm0, %v1574_v24  ;;  %v1576_v18 = vmul.f32 %v4008_v20, %v1535_v53  ;;  %v14855_v53 = vld [vmem:[#allocation38_spill] sm:$0xff]  ;;  %v14856_v24 = vld [vmem:[#allocation40_spill] sm:$0xff] }
 0x117   : > { %v1575_v19 = vmul.f32 %v4007_v22, %v1530_v1  ;;  %v12647_v16 = vmul.f32 %v4009_v29, %v1530_v1  ;;  %v12650_v15 = vmul.f32 %v12636_v28, %v1530_v1  ;;  %5691 = vperm.xlu0 %11398, %v5545_v58   ;;  %v1969_v1 = vmul.f32 %v12114_v32, %v12119_v37 }
 0x118   : > { %14851 = vst [vmem:[#allocation111_spill] sm:$0xff] %v12645_v26  ;;  %v1970_v20 = vmul.f32 %v12126_v61, %v12130_v10  ;;  %v1972_v37 = vmul.f32 %v12159_v3, %v12124_v55  ;;  %v1973_v10 = vmul.f32 %v12157_v40, %v12145_v35  ;;  %v1976_v3 = vmul.f32 %v12189_v9, %v12161_v54  ;;  %v12849_v26 = vld [vmem:[#allocation2 + $0xa0] sm:$0xff] }
 0x119   : > { %14852 = vst [vmem:[#allocation112_spill] sm:$0xff] %v12650_v15  ;;  %10120 = vmatprep.mubr.msk.f32.mxu0 %vm311_vm0, %v1575_v19  ;;  %v12663_v23 = vpop.permute.xlu1 %1544  ;;  %v1977_v40 = vmul.f32 %v12191_v6, %v12179_v12  ;;  %v1980_v9 = vmul.f32 %v12221_v25, %v12193_v31  ;;  %v1981_v6 = vmul.f32 %v12223_v7, %v12211_v59  ;;  %v14854_v19 = vld [vmem:[#allocation39_spill] sm:$0xff]  ;;  %v12851_v15 = vld [vmem:[#allocation2 + $0xa8] sm:$0xff] }
 0x11a   : > { %v12659_v21 = vpop.permute.xlu0 %1539  ;;  %5706 = vperm.xlu1 %11399, %v5548_v30   ;;  %10121 = vmatmul.mubr.msk.f32.gmra.mrb[28].mxu0 %vm311_vm0, %v1576_v18  ;;  %v1578_v58 = vmul.f32 %v4010_v33, %v12663_v23  ;;  %v12679_v30 = vld [vmem:[%s14490_s1 + $0x14] sm:$0xf]  ;;  %v1984_v25 = vmul.f32 %v12253_v42, %v12225_v60  ;;  %v1985_v7 = vmul.f32 %v12255_v14, %v12243_v51  ;;  %v14853_v33 = vld [vmem:[#allocation36_spill] sm:$0xff]  ;;  %v14858_v18 = vld [vmem:[#allocation43_spill] sm:$0xff] }
 0x11b   : > { %v1577_v22 = vmul.f32 %v4009_v29, %v12659_v21  ;;  %5701 = vperm.xlu0 %11398, %v5547_v50   ;;  %v1971_v29 = vmul.f32 %v12139_v5, %v12112_v13  ;;  %v1974_v5 = vmul.f32 %v12173_v0, %v12143_v11  ;;  %v1978_v0 = vmul.f32 %v12205_v17, %v12177_v46  ;;  %v14857_v50 = vld [vmem:[#allocation37_spill] sm:$0xff] }
 0x11c   : > { %v1982_v17 = vmul.f32 %v12237_v34, %v12209_v63  ;;  %v1986_v34 = vmul.f32 %v12275_v41, %v12241_v57  ;;  %v1988_v42 = vmul.f32 %v12295_v39, %v12257_v52  ;;  %v1989_v14 = vmul.f32 %v12297_v49, %v12281_v44 }
 0x11d   : > { %10123 = vmatprep.mubr.msk.f32.mxu0 %vm311_vm0, %v1577_v22  ;;  %v1990_v41 = vmul.f32 %v14854_v19, %v14853_v33  ;;  %v1992_v39 = vmul.f32 %v14858_v18, %v14857_v50  ;;  %v14859_v22 = vld [vmem:[#allocation42_spill] sm:$0xff]  ;;  %v2359_v19 = vld [vmem:[#allocation2 + $0x18] sm:$0xff] }
 0x11e   : > { %10124 = vmatmul.mubr.msk.f32.gmra.mrb[30].mxu0 %vm311_vm0, %v1578_v58  ;;  %v14860_v58 = vld [vmem:[#allocation44_spill] sm:$0xff]  ;;  %v12791_v18 = vld [vmem:[#allocation2 + $0x30] sm:$0xff]  ;;  %14879 = vst [vmem:[#allocation42_spill] sm:$0xff] %v12849_v26 }
 0x11f   : > { %10128 = vmatprep.mubr.msk.f32.mxu0 %vm311_vm0, %v1969_v1  ;;  %v1993_v49 = vmul.f32 %v14860_v58, %v14859_v22  ;;  %v14861_v1 = vld [vmem:[#allocation41_spill] sm:$0xff]  ;;  %v12801_v58 = vld [vmem:[#allocation2 + $0x40] sm:$0xff]  ;;  %14880 = vst [vmem:[#allocation44_spill] sm:$0xff] %v12851_v15 }
 0x122   : > { %10129 = vmatmul.mubr.msk.f32.vlgmr.msra.gmra.mrb[0].mxu0 %vm311_vm0, %v1970_v20  ;;  %v14862_v20 = vld [vmem:[#allocation47_spill] sm:$0xff] }
 0x123   : > { %10177 = vmatpush3.msk.msra.mxu0 %vm770_vm1, %v12438_v27  ;;  %10131 = vmatprep.mubr.msk.f32.mxu0 %vm311_vm0, %v1971_v29  ;;  %v1975_v27 = vmul.f32 %v12175_v45, %v12163_v2  ;;  %v1979_v45 = vmul.f32 %v12207_v4, %v12195_v62  ;;  %v1983_v4 = vmul.f32 %v12239_v8, %v12227_v56 }
 0x124   : > { %10226 = vmatprep.subr.msk.mxu0 %vm770_vm1, %v12679_v30  ;;  %v1987_v8 = vmul.f32 %v12277_v48, %v12259_v47  ;;  %v1991_v48 = vmul.f32 %v14856_v24, %v14855_v53  ;;  %v1994_v29 = vmul.f32 %v14862_v20, %v14861_v1  ;;  %v12779_v24 = vld [vmem:[#allocation2 + $0x28] sm:$0xff] }
 0x126   : > { %10132 = vmatmul.mubr.msk.f32.gmra.mrb[2].mxu0 %vm311_vm0, %v1972_v37  ;;  %v14863_v37 = vld [vmem:[#allocation46_spill] sm:$0xff] }
 0x127   : > { %10134 = vmatprep.mubr.msk.f32.mxu0 %vm311_vm0, %v1973_v10  ;;  %v14864_v10 = vld [vmem:[#allocation48_spill] sm:$0xff] }
 0x12a   : > { %10135 = vmatmul.mubr.msk.f32.gmra.mrb[4].mxu0 %vm311_vm0, %v1974_v5  ;;  %v1995_v5 = vmul.f32 %v14864_v10, %v14863_v37 }
 0x12b   : > { %10137 = vmatprep.mubr.msk.f32.mxu0 %vm311_vm0, %v1975_v27  ;;  %v14865_v27 = vld [vmem:[#allocation45_spill] sm:$0xff] }
 0x12e   : > { %10138 = vmatmul.mubr.msk.f32.gmra.mrb[6].mxu0 %vm311_vm0, %v1976_v3  ;;  %v14866_v3 = vld [vmem:[#allocation51_spill] sm:$0xff] }
 0x12f   : > { %10140 = vmatprep.mubr.msk.f32.mxu0 %vm311_vm0, %v1977_v40  ;;  %v1996_v40 = vmul.f32 %v14866_v3, %v14865_v27 }
 0x132   : > { %10141 = vmatmul.mubr.msk.f32.gmra.mrb[8].mxu0 %vm311_vm0, %v1978_v0  ;;  %v14867_v0 = vld [vmem:[#allocation50_spill] sm:$0xff] }
 0x133   : > { %10143 = vmatprep.mubr.msk.f32.mxu0 %vm311_vm0, %v1979_v45  ;;  %v14868_v45 = vld [vmem:[#allocation52_spill] sm:$0xff] }
 0x136   : > { %10144 = vmatmul.mubr.msk.f32.gmra.mrb[10].mxu0 %vm311_vm0, %v1980_v9  ;;  %v1997_v9 = vmul.f32 %v14868_v45, %v14867_v0 }
 0x137   : > { %10146 = vmatprep.mubr.msk.f32.mxu0 %vm311_vm0, %v1981_v6  ;;  %v14869_v6 = vld [vmem:[#allocation49_spill] sm:$0xff] }
 0x13a   : > { %10147 = vmatmul.mubr.msk.f32.gmra.mrb[12].mxu0 %vm311_vm0, %v1982_v17  ;;  %v14870_v17 = vld [vmem:[#allocation55_spill] sm:$0xff] }
 0x13b   : > { %10149 = vmatprep.mubr.msk.f32.mxu0 %vm311_vm0, %v1983_v4  ;;  %v1998_v4 = vmul.f32 %v14870_v17, %v14869_v6 }
 0x13e   : > { %10150 = vmatmul.mubr.msk.f32.gmra.mrb[14].mxu0 %vm311_vm0, %v1984_v25  ;;  %v12767_v25 = vld [vmem:[#allocation2 + $0x107] sm:$0xff] }
 0x13f   : > { %10152 = vmatprep.mubr.msk.f32.mxu0 %vm311_vm0, %v1985_v7  ;;  %v14871_v7 = vld [vmem:[#allocation54_spill] sm:$0xff] }
 0x142   : > { %10153 = vmatmul.mubr.msk.f32.gmra.mrb[16].mxu0 %vm311_vm0, %v1986_v34  ;;  %v1999_v34 = vmul.f32 %v12767_v25, %v14871_v7 }
 0x143   : > { %10155 = vmatprep.mubr.msk.f32.mxu0 %vm311_vm0, %v1987_v8  ;;  %v12772_v8 = vld [vmem:[#allocation2 + $0x10f] sm:$0xff] }
 0x146   : > { %10156 = vmatmul.mubr.msk.f32.gmra.mrb[18].mxu0 %vm311_vm0, %v1988_v42  ;;  %v14872_v42 = vld [vmem:[#allocation53_spill] sm:$0xff] }
 0x147   : > { %10158 = vmatprep.mubr.msk.f32.mxu0 %vm311_vm0, %v1989_v14  ;;  %v2000_v14 = vmul.f32 %v12772_v8, %v14872_v42 }
 0x14a   : > { %10159 = vmatmul.mubr.msk.f32.gmra.mrb[20].mxu0 %vm311_vm0, %v1990_v41  ;;  %v2360_v41 = vld [vmem:[#allocation2 + $0x20] sm:$0xff] }
 0x14b   : > { %10161 = vmatprep.mubr.msk.f32.mxu0 %vm311_vm0, %v1991_v48  ;;  %v12784_v48 = vld [vmem:[%s14490_s1 + $0x18] sm:$0xf] }
 0x14e   : > { %10162 = vmatmul.mubr.msk.f32.gmra.mrb[22].mxu0 %vm311_vm0, %v1992_v39  ;;  %v12793_v39 = vld [vmem:[#allocation2 + $0x38] sm:$0xff] }
 0x14f   : > { %10164 = vmatprep.mubr.msk.f32.mxu0 %vm311_vm0, %v1993_v49  ;;  %v12803_v49 = vld [vmem:[#allocation2 + $0x48] sm:$0xff] }
 0x152   : > { %10165 = vmatmul.mubr.msk.f32.gmra.mrb[24].mxu0 %vm311_vm0, %v1994_v29  ;;  %v12811_v29 = vld [vmem:[#allocation2 + $0x58] sm:$0xff] }
 0x153   : > { %10167 = vmatprep.mubr.msk.f32.mxu0 %vm311_vm0, %v1995_v5  ;;  %v12817_v5 = vld [vmem:[#allocation2 + $0x60] sm:$0xff] }
 0x156   : > { %10168 = vmatmul.mubr.msk.f32.gmra.mrb[26].mxu0 %vm311_vm0, %v1996_v40  ;;  %v12819_v40 = vld [vmem:[#allocation2 + $0x68] sm:$0xff] }
 0x157   : > { %10170 = vmatprep.mubr.msk.f32.mxu0 %vm311_vm0, %v1997_v9  ;;  %v12825_v9 = vld [vmem:[#allocation2 + $0x70] sm:$0xff] }
 0x158   : > { %14873 = vst [vmem:[#allocation36_spill] sm:$0xff] %v12825_v9 }
 0x15a   : > { %10171 = vmatmul.mubr.msk.f32.gmra.mrb[28].mxu0 %vm311_vm0, %v1998_v4  ;;  %v12827_v4 = vld [vmem:[#allocation2 + $0x78] sm:$0xff] }
 0x15b   : > { %10173 = vmatprep.mubr.msk.f32.mxu0 %vm311_vm0, %v1999_v34  ;;  %14874 = vst [vmem:[#allocation39_spill] sm:$0xff] %v12827_v4  ;;  %v12833_v34 = vld [vmem:[#allocation2 + $0x80] sm:$0xff] }
 0x15c   : > { %14875 = vst [vmem:[#allocation38_spill] sm:$0xff] %v12833_v34 }
 0x15e   : > { %10174 = vmatmul.mubr.msk.f32.gmra.mrb[30].mxu0 %vm311_vm0, %v2000_v14  ;;  %v12835_v14 = vld [vmem:[#allocation2 + $0x88] sm:$0xff] }
 0x15f   : > { %10178 = vmatprep.mubr.msk.f32.mxu0 %vm311_vm0, %v2359_v19  ;;  %14876 = vst [vmem:[#allocation40_spill] sm:$0xff] %v12835_v14  ;;  %v12841_v19 = vld [vmem:[#allocation2 + $0x90] sm:$0xff] }
 0x160   : > { %14877 = vst [vmem:[#allocation37_spill] sm:$0xff] %v12841_v19 }
 0x162   : > { %10179 = vmatmul.mubr.msk.f32.vlgmr.msra.gmra.mrb[0].mxu0 %vm311_vm0, %v2360_v41  ;;  %v12843_v41 = vld [vmem:[#allocation2 + $0x98] sm:$0xff] }
 0x163   : > { %10227 = vmatpush3.msk.msra.mxu0 %vm770_vm1, %v12679_v30  ;;  %10181 = vmatprep.mubr.msk.f32.mxu0 %vm311_vm0, %v12779_v24  ;;  %v12809_v30 = vld [vmem:[#allocation2 + $0x50] sm:$0xff]  ;;  %14878 = vst [vmem:[#allocation43_spill] sm:$0xff] %v12843_v41 }
 0x164   : > { %10276 = vmatprep.subr.msk.mxu0 %vm770_vm1, %v12784_v48 }
 0x166   : > { %10182 = vmatmul.mubr.msk.f32.gmra.mrb[2].mxu0 %vm311_vm0, %v12791_v18 }
 0x167   : > { %10184 = vmatprep.mubr.msk.f32.mxu0 %vm311_vm0, %v12793_v39 }
 0x16a   : > { %10185 = vmatmul.mubr.msk.f32.gmra.mrb[4].mxu0 %vm311_vm0, %v12801_v58 }
 0x16b   : > { %10187 = vmatprep.mubr.msk.f32.mxu0 %vm311_vm0, %v12803_v49 }
 0x16e   : > { %10188 = vmatmul.mubr.msk.f32.gmra.mrb[6].mxu0 %vm311_vm0, %v12809_v30 }
 0x16f   : > { %10190 = vmatprep.mubr.msk.f32.mxu0 %vm311_vm0, %v12811_v29 }
 0x172   : > { %10191 = vmatmul.mubr.msk.f32.gmra.mrb[8].mxu0 %vm311_vm0, %v12817_v5 }
 0x173   : > { %10193 = vmatprep.mubr.msk.f32.mxu0 %vm311_vm0, %v12819_v40 }
 0x176   : > { %10194 = vmatmul.mubr.msk.f32.gmra.mrb[10].mxu0 %vm311_vm0, %v12825_v9  ;;  %v14904_v9 = vld [vmem:[#allocation78_spill] sm:$0xff] }
 0x177   : > { %10196 = vmatprep.mubr.msk.f32.mxu0 %vm311_vm0, %v12827_v4  ;;  %v14900_v4 = vld [vmem:[#allocation70_spill] sm:$0xff] }
 0x17a   : > { %10197 = vmatmul.mubr.msk.f32.gmra.mrb[12].mxu0 %vm311_vm0, %v12833_v34  ;;  %v12859_v34 = vld [vmem:[#allocation2 + $0xb8] sm:$0xff] }
 0x17b   : > { %10199 = vmatprep.mubr.msk.f32.mxu0 %vm311_vm0, %v12835_v14  ;;  %v12857_v14 = vld [vmem:[#allocation2 + $0xb0] sm:$0xff]  ;;  %14882 = vst [vmem:[#allocation47_spill] sm:$0xff] %v12859_v34 }
 0x17c   : > { %14881 = vst [vmem:[#allocation41_spill] sm:$0xff] %v12857_v14 }
 0x17e   : > { %10200 = vmatmul.mubr.msk.f32.gmra.mrb[14].mxu0 %vm311_vm0, %v12841_v19  ;;  %v12867_v19 = vld [vmem:[#allocation2 + $0xc8] sm:$0xff] }
 0x17f   : > { %10202 = vmatprep.mubr.msk.f32.mxu0 %vm311_vm0, %v12843_v41  ;;  %v12865_v41 = vld [vmem:[#allocation2 + $0xc0] sm:$0xff]  ;;  %14884 = vst [vmem:[#allocation48_spill] sm:$0xff] %v12867_v19 }
 0x180   : > { %14883 = vst [vmem:[#allocation46_spill] sm:$0xff] %v12865_v41 }
 0x182   : > { %10203 = vmatmul.mubr.msk.f32.gmra.mrb[16].mxu0 %vm311_vm0, %v12849_v26  ;;  %v12875_v26 = vld [vmem:[#allocation2 + $0xd8] sm:$0xff] }
 0x183   : > { %10205 = vmatprep.mubr.msk.f32.mxu0 %vm311_vm0, %v12851_v15  ;;  %v12873_v15 = vld [vmem:[#allocation2 + $0xd0] sm:$0xff]  ;;  %14886 = vst [vmem:[#allocation51_spill] sm:$0xff] %v12875_v26 }
 0x184   : > { %14885 = vst [vmem:[#allocation45_spill] sm:$0xff] %v12873_v15 }
 0x186   : > { %10206 = vmatmul.mubr.msk.f32.gmra.mrb[18].mxu0 %vm311_vm0, %v12857_v14  ;;  %v12883_v14 = vld [vmem:[#allocation2 + $0xe8] sm:$0xff] }
 0x187   : > { %10208 = vmatprep.mubr.msk.f32.mxu0 %vm311_vm0, %v12859_v34  ;;  %v12881_v34 = vld [vmem:[#allocation2 + $0xe0] sm:$0xff]  ;;  %14888 = vst [vmem:[#allocation52_spill] sm:$0xff] %v12883_v14 }
 0x188   : > { %14887 = vst [vmem:[#allocation50_spill] sm:$0xff] %v12881_v34 }
 0x18a   : > { %10209 = vmatmul.mubr.msk.f32.gmra.mrb[20].mxu0 %vm311_vm0, %v12865_v41  ;;  %v12891_v41 = vld [vmem:[#allocation2 + $0xf8] sm:$0xff] }
 0x18b   : > { %10211 = vmatprep.mubr.msk.f32.mxu0 %vm311_vm0, %v12867_v19  ;;  %v12889_v19 = vld [vmem:[#allocation2 + $0xf0] sm:$0xff]  ;;  %14890 = vst [vmem:[#allocation55_spill] sm:$0xff] %v12891_v41 }
 0x18c   : > { %14889 = vst [vmem:[#allocation49_spill] sm:$0xff] %v12889_v19 }
 0x18e   : > { %10212 = vmatmul.mubr.msk.f32.gmra.mrb[22].mxu0 %vm311_vm0, %v12873_v15  ;;  %v12899_v15 = vld [vmem:[#allocation2 + $0x108] sm:$0xff] }
 0x18f   : > { %10214 = vmatprep.mubr.msk.f32.mxu0 %vm311_vm0, %v12875_v26  ;;  %v12897_v26 = vld [vmem:[#allocation2 + $0x100] sm:$0xff]  ;;  %14892 = vst [vmem:[#allocation53_spill] sm:$0xff] %v12899_v15 }
 0x190   : > { %14891 = vst [vmem:[#allocation54_spill] sm:$0xff] %v12897_v26 }
 0x192   : > { %10215 = vmatmul.mubr.msk.f32.gmra.mrb[24].mxu0 %vm311_vm0, %v12881_v34  ;;  %v14894_v34 = vld [vmem:[#allocation58_spill] sm:$0xff] }
 0x193   : > { %10217 = vmatprep.mubr.msk.f32.mxu0 %vm311_vm0, %v12883_v14  ;;  %v12905_v14 = vld [vmem:[#allocation2 + $0x110] sm:$0xff] }
 0x194   : > { %14893 = vst [vmem:[#allocation113_spill] sm:$0xff] %v12905_v14 }
 0x196   : > { %10218 = vmatmul.mubr.msk.f32.gmra.mrb[26].mxu0 %vm311_vm0, %v12889_v19  ;;  %v14895_v19 = vld [vmem:[#allocation56_spill] sm:$0xff] }
 0x197   : > { %10220 = vmatprep.mubr.msk.f32.mxu0 %vm311_vm0, %v12891_v41  ;;  %v9003_v41 = vld [vmem:[%s14490_s1 + $0x1c] sm:$0xf] }
 0x19a   : > { %10221 = vmatmul.mubr.msk.f32.gmra.mrb[28].mxu0 %vm311_vm0, %v12897_v26  ;;  %v14896_v26 = vld [vmem:[#allocation62_spill] sm:$0xff] }
 0x19b   : > { %10223 = vmatprep.mubr.msk.f32.mxu0 %vm311_vm0, %v12899_v15  ;;  %v14897_v15 = vld [vmem:[#allocation60_spill] sm:$0xff] }
 0x19e   : > { %10224 = vmatmul.mubr.msk.f32.gmra.mrb[30].mxu0 %vm311_vm0, %v12905_v14  ;;  %v14898_v14 = vld [vmem:[#allocation66_spill] sm:$0xff] }
 0x19f   : > { %10228 = vmatprep.mubr.msk.f32.mxu0 %vm311_vm0, %v14894_v34  ;;  %v14899_v34 = vld [vmem:[#allocation64_spill] sm:$0xff] }
 0x1a2   : > { %10229 = vmatmul.mubr.msk.f32.vlgmr.msra.gmra.mrb[0].mxu0 %vm311_vm0, %v14895_v19  ;;  %v14901_v19 = vld [vmem:[#allocation68_spill] sm:$0xff] }
 0x1a3   : > { %10277 = vmatpush3.msk.msra.mxu0 %vm770_vm1, %v12784_v48  ;;  %10231 = vmatprep.mubr.msk.f32.mxu0 %vm311_vm0, %v14896_v26  ;;  %v14902_v48 = vld [vmem:[#allocation74_spill] sm:$0xff]  ;;  %v14903_v26 = vld [vmem:[#allocation72_spill] sm:$0xff] }
 0x1a4   : > { %10326 = vmatprep.subr.msk.mxu0 %vm770_vm1, %v9003_v41 }
 0x1a6   : > { %10232 = vmatmul.mubr.msk.f32.gmra.mrb[2].mxu0 %vm311_vm0, %v14897_v15  ;;  %v14905_v15 = vld [vmem:[#allocation76_spill] sm:$0xff] }
 0x1a7   : > { %10234 = vmatprep.mubr.msk.f32.mxu0 %vm311_vm0, %v14898_v14  ;;  %v14906_v14 = vld [vmem:[#allocation82_spill] sm:$0xff] }
 0x1aa   : > { %10235 = vmatmul.mubr.msk.f32.gmra.mrb[4].mxu0 %vm311_vm0, %v14899_v34  ;;  %v14907_v34 = vld [vmem:[#allocation80_spill] sm:$0xff] }
 0x1ab   : > { %10237 = vmatprep.mubr.msk.f32.mxu0 %vm311_vm0, %v14900_v4  ;;  %v14908_v4 = vld [vmem:[#allocation86_spill] sm:$0xff] }
 0x1ae   : > { %10238 = vmatmul.mubr.msk.f32.gmra.mrb[6].mxu0 %vm311_vm0, %v14901_v19  ;;  %v14909_v19 = vld [vmem:[#allocation84_spill] sm:$0xff] }
 0x1af   : > { %10240 = vmatprep.mubr.msk.f32.mxu0 %vm311_vm0, %v14902_v48  ;;  %v14910_v48 = vld [vmem:[#allocation90_spill] sm:$0xff] }
 0x1b2   : > { %10241 = vmatmul.mubr.msk.f32.gmra.mrb[8].mxu0 %vm311_vm0, %v14903_v26  ;;  %v14911_v26 = vld [vmem:[#allocation88_spill] sm:$0xff] }
 0x1b3   : > { %10243 = vmatprep.mubr.msk.f32.mxu0 %vm311_vm0, %v14904_v9  ;;  %v14912_v9 = vld [vmem:[#allocation94_spill] sm:$0xff] }
 0x1b6   : > { %10244 = vmatmul.mubr.msk.f32.gmra.mrb[10].mxu0 %vm311_vm0, %v14905_v15  ;;  %v14913_v15 = vld [vmem:[#allocation92_spill] sm:$0xff] }
 0x1b7   : > { %10246 = vmatprep.mubr.msk.f32.mxu0 %vm311_vm0, %v14906_v14  ;;  %v14914_v14 = vld [vmem:[#allocation98_spill] sm:$0xff] }
 0x1ba   : > { %10247 = vmatmul.mubr.msk.f32.gmra.mrb[12].mxu0 %vm311_vm0, %v14907_v34  ;;  %v14915_v34 = vld [vmem:[#allocation96_spill] sm:$0xff] }
 0x1bb   : > { %10249 = vmatprep.mubr.msk.f32.mxu0 %vm311_vm0, %v14908_v4  ;;  %v14916_v4 = vld [vmem:[#allocation102_spill] sm:$0xff] }
 0x1be   : > { %10250 = vmatmul.mubr.msk.f32.gmra.mrb[14].mxu0 %vm311_vm0, %v14909_v19  ;;  %v14917_v19 = vld [vmem:[#allocation100_spill] sm:$0xff] }
 0x1bf   : > { %10252 = vmatprep.mubr.msk.f32.mxu0 %vm311_vm0, %v14910_v48  ;;  %v14918_v48 = vld [vmem:[#allocation106_spill] sm:$0xff] }
 0x1c2   : > { %10253 = vmatmul.mubr.msk.f32.gmra.mrb[16].mxu0 %vm311_vm0, %v14911_v26  ;;  %v14919_v26 = vld [vmem:[#allocation104_spill] sm:$0xff] }
 0x1c3   : > { %10255 = vmatprep.mubr.msk.f32.mxu0 %vm311_vm0, %v14912_v9  ;;  %v14920_v9 = vld [vmem:[#allocation108_spill] sm:$0xff] }
 0x1c6   : > { %10256 = vmatmul.mubr.msk.f32.gmra.mrb[18].mxu0 %vm311_vm0, %v14913_v15  ;;  %v2811_v15 = vmul.f32 %v12636_v28, %v12659_v21 }
 0x1c7   : > { %10258 = vmatprep.mubr.msk.f32.mxu0 %vm311_vm0, %v14914_v14  ;;  %v2812_v14 = vmul.f32 %v12630_v36, %v12663_v23 }
 0x1ca   : > { %10259 = vmatmul.mubr.msk.f32.gmra.mrb[20].mxu0 %vm311_vm0, %v14915_v34  ;;  %v11400_v34 = vld [vmem:[#allocation2 + $0x27] sm:$0xff] }
 0x1cb   : > { %10261 = vmatprep.mubr.msk.f32.mxu0 %vm311_vm0, %v14916_v4  ;;  %v11401_v4 = vld [vmem:[#allocation2 + $0x2f] sm:$0xff] }
 0x1ce   : > { %10262 = vmatmul.mubr.msk.f32.gmra.mrb[22].mxu0 %vm311_vm0, %v14917_v19  ;;  %v11402_v19 = vld [vmem:[#allocation2 + $0x37] sm:$0xff] }
 0x1cf   : > { %10264 = vmatprep.mubr.msk.f32.mxu0 %vm311_vm0, %v14918_v48  ;;  %v3205_v28 = vmul.f32 %v11402_v19, %v12112_v13  ;;  %v11405_v48 = vld [vmem:[#allocation2 + $0x4f] sm:$0xff] }
 0x1d0   : > { %v11413_v19 = vld [vmem:[#allocation2 + $0x8f] sm:$0xff] }
 0x1d2   : > { %10265 = vmatmul.mubr.msk.f32.gmra.mrb[24].mxu0 %vm311_vm0, %v14919_v26  ;;  %v3208_v26 = vmul.f32 %v11405_v48, %v12143_v11  ;;  %v11419_v48 = vld [vmem:[#allocation2 + $0xbf] sm:$0xff] }
 0x1d3   : > { %10267 = vmatprep.mubr.msk.f32.mxu0 %vm311_vm0, %v12626_v43  ;;  %v3203_v43 = vmul.f32 %v11400_v34, %v12114_v32  ;;  %v11403_v32 = vld [vmem:[#allocation2 + $0x3f] sm:$0xff]  ;;  %v11409_v34 = vld [vmem:[#allocation2 + $0x6f] sm:$0xff] }
 0x1d4   : > { %v3206_v36 = vmul.f32 %v11403_v32, %v12124_v55  ;;  %v11407_v55 = vld [vmem:[#allocation2 + $0x5f] sm:$0xff]  ;;  %v3212_v11 = vmul.f32 %v11409_v34, %v12177_v46  ;;  %v3216_v46 = vmul.f32 %v11413_v19, %v12209_v63 }
 0x1d5   : > { %v11415_v32 = vld [vmem:[#allocation2 + $0x9f] sm:$0xff] }
 0x1d6   : > { %10268 = vmatmul.mubr.msk.f32.gmra.mrb[26].mxu0 %vm311_vm0, %v14920_v9  ;;  %v11406_v9 = vld [vmem:[#allocation2 + $0x57] sm:$0xff] }
 0x1d7   : > { %10270 = vmatprep.mubr.msk.f32.mxu0 %vm311_vm0, %v12647_v16  ;;  %v3204_v16 = vmul.f32 %v11401_v4, %v12126_v61  ;;  %v11404_v61 = vld [vmem:[#allocation2 + $0x47] sm:$0xff]  ;;  %v11411_v4 = vld [vmem:[#allocation2 + $0x7f] sm:$0xff] }
 0x1d8   : > { %v3207_v13 = vmul.f32 %v11404_v61, %v12145_v35  ;;  %v11417_v61 = vld [vmem:[#allocation2 + $0xaf] sm:$0xff]  ;;  %v14942_v34 = vld [vmem:[#allocation59_spill] sm:$0xff] }
 0x1d9   : > { %v3220_v63 = vmul.f32 %v11417_v61, %v12241_v57  ;;  %v14950_v19 = vld [vmem:[#allocation75_spill] sm:$0xff] }
 0x1da   : > { %10271 = vmatmul.mubr.msk.f32.gmra.mrb[28].mxu0 %vm311_vm0, %v12642_v38  ;;  %v12988_v38 = vld [vmem:[%s14490_s1 + $0x20] sm:$0xf]  ;;  %v14958_v61 = vld [vmem:[#allocation91_spill] sm:$0xff] }
 0x1db   : > { %10273 = vmatprep.mubr.msk.f32.mxu0 %vm311_vm0, %v2811_v15  ;;  %v3210_v15 = vmul.f32 %v11407_v55, %v12161_v54  ;;  %v3214_v54 = vmul.f32 %v11411_v4, %v12193_v31  ;;  %v3218_v31 = vmul.f32 %v11415_v32, %v12225_v60  ;;  %v3222_v60 = vmul.f32 %v11419_v48, %v12257_v52  ;;  %v14940_v55 = vld [vmem:[#allocation53_spill] sm:$0xff]  ;;  %v14946_v4 = vld [vmem:[#allocation67_spill] sm:$0xff] }
 0x1dc   : > { %v3226_v52 = vmul.f32 %v14862_v20, %v14857_v50  ;;  %v3230_v50 = vmul.f32 %v14870_v17, %v14865_v27  ;;  %v3201_v20 = vld [vmem:[#allocation2 + $0x117] sm:$0xff]  ;;  %v14925_v17 = vld [vmem:[#allocation37_spill] sm:$0xff] }
 0x1dd   : > { %v14954_v32 = vld [vmem:[#allocation83_spill] sm:$0xff] }
 0x1de   : > { %10274 = vmatmul.mubr.msk.f32.gmra.mrb[30].mxu0 %vm311_vm0, %v2812_v14  ;;  %v11408_v14 = vld [vmem:[#allocation2 + $0x67] sm:$0xff]  ;;  %v14962_v48 = vld [vmem:[#allocation99_spill] sm:$0xff] }
 0x1df   : > { %10278 = vmatprep.mubr.msk.f32.mxu0 %vm311_vm0, %v3203_v43  ;;  %v3211_v35 = vmul.f32 %v11408_v14, %v12179_v12  ;;  %v11410_v43 = vld [vmem:[#allocation2 + $0x77] sm:$0xff]  ;;  %v14941_v14 = vld [vmem:[#allocation113_spill] sm:$0xff] }
 0x1e2   : > { %10279 = vmatmul.mubr.msk.f32.vlgmr.msra.gmra.mrb[0].mxu0 %vm311_vm0, %v3204_v16  ;;  %v11412_v16 = vld [vmem:[#allocation2 + $0x87] sm:$0xff] }
 0x1e3   : > { %10327 = vmatpush3.msk.msra.mxu0 %vm770_vm1, %v9003_v41  ;;  %10281 = vmatprep.mubr.msk.f32.mxu0 %vm311_vm0, %v3205_v28  ;;  %v3209_v41 = vmul.f32 %v11406_v9, %v12163_v2  ;;  %v3213_v2 = vmul.f32 %v11410_v43, %v12195_v62  ;;  %v3215_v12 = vmul.f32 %v11412_v16, %v12211_v59  ;;  %v11414_v28 = vld [vmem:[#allocation2 + $0x97] sm:$0xff]  ;;  %v11421_v9 = vld [vmem:[#allocation2 + $0xcf] sm:$0xff] }
 0x1e4   : > { %10376 = vmatprep.subr.msk.mxu0 %vm770_vm1, %v12988_v38  ;;  %v3217_v62 = vmul.f32 %v11414_v28, %v12227_v56  ;;  %v3224_v57 = vmul.f32 %v11421_v9, %v14853_v33  ;;  %v3228_v33 = vmul.f32 %v14866_v3, %v14861_v1  ;;  %v3232_v1 = vmul.f32 %v12772_v8, %v14869_v6  ;;  %v14921_v3 = vld [vmem:[#allocation36_spill] sm:$0xff]  ;;  %v14944_v43 = vld [vmem:[#allocation63_spill] sm:$0xff] }
 0x1e5   : > { %v14924_v6 = vld [vmem:[#allocation40_spill] sm:$0xff]  ;;  %v14948_v16 = vld [vmem:[#allocation71_spill] sm:$0xff] }
 0x1e6   : > { %10282 = vmatmul.mubr.msk.f32.gmra.mrb[2].mxu0 %vm311_vm0, %v3206_v36  ;;  %v11416_v36 = vld [vmem:[#allocation2 + $0xa7] sm:$0xff]  ;;  %v14952_v28 = vld [vmem:[#allocation79_spill] sm:$0xff] }
 0x1e7   : > { %10284 = vmatprep.mubr.msk.f32.mxu0 %vm311_vm0, %v3207_v13  ;;  %v3219_v59 = vmul.f32 %v11416_v36, %v12243_v51  ;;  %v11418_v13 = vld [vmem:[#allocation2 + $0xb7] sm:$0xff]  ;;  %v14928_v8 = vld [vmem:[#allocation44_spill] sm:$0xff] }
 0x1e8   : > { %v3221_v56 = vmul.f32 %v11418_v13, %v12259_v47  ;;  %v14956_v36 = vld [vmem:[#allocation87_spill] sm:$0xff] }
 0x1e9   : > { %v14960_v13 = vld [vmem:[#allocation95_spill] sm:$0xff] }
 0x1ea   : > { %10285 = vmatmul.mubr.msk.f32.gmra.mrb[4].mxu0 %vm311_vm0, %v3208_v26  ;;  %v11420_v26 = vld [vmem:[#allocation2 + $0xc7] sm:$0xff]  ;;  %v14966_v9 = vld [vmem:[#allocation107_spill] sm:$0xff] }
 0x1eb   : > { %10287 = vmatprep.mubr.msk.f32.mxu0 %vm311_vm0, %v3209_v41  ;;  %v3223_v51 = vmul.f32 %v11420_v26, %v12281_v44  ;;  %v11422_v41 = vld [vmem:[#allocation2 + $0xd7] sm:$0xff]  ;;  %v3227_v44 = vmul.f32 %v14864_v10, %v14859_v22  ;;  %v3231_v22 = vmul.f32 %v12767_v25, %v14867_v0  ;;  %v3202_v10 = vld [vmem:[#allocation2 + $0x11f] sm:$0xff] }
 0x1ec   : > { %v3225_v47 = vmul.f32 %v11422_v41, %v14855_v53  ;;  %v3229_v53 = vmul.f32 %v14868_v45, %v14863_v37  ;;  %v3233_v37 = vmul.f32 %v3201_v20, %v14871_v7  ;;  %v3234_v27 = vmul.f32 %v3202_v10, %v14872_v42  ;;  %v14922_v0 = vld [vmem:[#allocation39_spill] sm:$0xff]  ;;  %v14923_v45 = vld [vmem:[#allocation38_spill] sm:$0xff]  ;;  %v14929_v42 = vld [vmem:[#allocation41_spill] sm:$0xff] }
 0x1ed   : > { %v14926_v25 = vld [vmem:[#allocation43_spill] sm:$0xff]  ;;  %v14927_v7 = vld [vmem:[#allocation42_spill] sm:$0xff]  ;;  %v9072_v20 = vld [vmem:[%s14492_s3 + $0x4] sm:$0xf] }
 0x1ee   : > { %10288 = vmatmul.mubr.msk.f32.gmra.mrb[6].mxu0 %vm311_vm0, %v3210_v15  ;;  %v3623_v15 = vld [vmem:[#allocation2 + $0x118] sm:$0xff]  ;;  %v14968_v41 = vld [vmem:[#allocation110_spill] sm:$0xff]  ;;  %10426 = vmatprep.subr.msk.mxu1 %vm770_vm1, %v9072_v20  ;;  %v13203_v10 = vld [vmem:[%s14492_s3 + $0x8] sm:$0xf] }
 0x1ef   : > { %10290 = vmatprep.mubr.msk.f32.mxu0 %vm311_vm0, %v3211_v35  ;;  %v3624_v35 = vld [vmem:[#allocation2 + $0x120] sm:$0xff]  ;;  %v14964_v26 = vld [vmem:[#allocation103_spill] sm:$0xff]  ;;  %10427 = vmatpush3.msk.msra.mxu1 %vm770_vm1, %v9072_v20 }
 0x1f2   : > { %10291 = vmatmul.mubr.msk.f32.gmra.mrb[8].mxu0 %vm311_vm0, %v3212_v11  ;;  %v14943_v11 = vld [vmem:[#allocation57_spill] sm:$0xff] }
 0x1f3   : > { %10293 = vmatprep.mubr.msk.f32.mxu0 %vm311_vm0, %v3213_v2  ;;  %v14945_v2 = vld [vmem:[#allocation61_spill] sm:$0xff] }
 0x1f6   : > { %10294 = vmatmul.mubr.msk.f32.gmra.mrb[10].mxu0 %vm311_vm0, %v3214_v54  ;;  %v14947_v54 = vld [vmem:[#allocation65_spill] sm:$0xff] }
 0x1f7   : > { %10296 = vmatprep.mubr.msk.f32.mxu0 %vm311_vm0, %v3215_v12  ;;  %v14949_v12 = vld [vmem:[#allocation69_spill] sm:$0xff] }
 0x1fa   : > { %10297 = vmatmul.mubr.msk.f32.gmra.mrb[12].mxu0 %vm311_vm0, %v3216_v46  ;;  %v14951_v46 = vld [vmem:[#allocation73_spill] sm:$0xff] }
 0x1fb   : > { %10299 = vmatprep.mubr.msk.f32.mxu0 %vm311_vm0, %v3217_v62  ;;  %v14953_v62 = vld [vmem:[#allocation77_spill] sm:$0xff] }
 0x1fe   : > { %10300 = vmatmul.mubr.msk.f32.gmra.mrb[14].mxu0 %vm311_vm0, %v3218_v31  ;;  %v14955_v31 = vld [vmem:[#allocation81_spill] sm:$0xff] }
 0x1ff   : > { %10302 = vmatprep.mubr.msk.f32.mxu0 %vm311_vm0, %v3219_v59  ;;  %v14957_v59 = vld [vmem:[#allocation85_spill] sm:$0xff] }
 0x202   : > { %10303 = vmatmul.mubr.msk.f32.gmra.mrb[16].mxu0 %vm311_vm0, %v3220_v63  ;;  %v14959_v63 = vld [vmem:[#allocation89_spill] sm:$0xff] }
 0x203   : > { %10305 = vmatprep.mubr.msk.f32.mxu0 %vm311_vm0, %v3221_v56  ;;  %v14961_v56 = vld [vmem:[#allocation93_spill] sm:$0xff] }
 0x206   : > { %10306 = vmatmul.mubr.msk.f32.gmra.mrb[18].mxu0 %vm311_vm0, %v3222_v60  ;;  %v14963_v60 = vld [vmem:[#allocation97_spill] sm:$0xff] }
 0x207   : > { %10308 = vmatprep.mubr.msk.f32.mxu0 %vm311_vm0, %v3223_v51  ;;  %v14965_v51 = vld [vmem:[#allocation101_spill] sm:$0xff] }
 0x20a   : > { %10309 = vmatmul.mubr.msk.f32.gmra.mrb[20].mxu0 %vm311_vm0, %v3224_v57  ;;  %v14967_v57 = vld [vmem:[#allocation105_spill] sm:$0xff] }
 0x20b   : > { %10311 = vmatprep.mubr.msk.f32.mxu0 %vm311_vm0, %v3225_v47  ;;  %v4013_v47 = vld [vmem:[#allocation2 + $0x119] sm:$0xff] }
 0x20e   : > { %10312 = vmatmul.mubr.msk.f32.gmra.mrb[22].mxu0 %vm311_vm0, %v3226_v52  ;;  %v14969_v52 = vld [vmem:[#allocation109_spill] sm:$0xff] }
 0x20f   : > { %10314 = vmatprep.mubr.msk.f32.mxu0 %vm311_vm0, %v3227_v44  ;;  %v14970_v44 = vld [vmem:[#allocation112_spill] sm:$0xff] }
 0x212   : > { %10315 = vmatmul.mubr.msk.f32.gmra.mrb[24].mxu0 %vm311_vm0, %v3228_v33  ;;  %v4014_v33 = vld [vmem:[#allocation2 + $0x121] sm:$0xff] }
 0x213   : > { %10317 = vmatprep.mubr.msk.f32.mxu0 %vm311_vm0, %v3229_v53  ;;  %v4045_v53 = vmul.f32 %v4013_v47, %v12659_v21  ;;  %v4804_v21 = vld [vmem:[#allocation3 + $0x10] sm:$0xff] }
 0x216   : > { %10318 = vmatmul.mubr.msk.f32.gmra.mrb[26].mxu0 %vm311_vm0, %v3230_v50  ;;  %v14971_v50 = vld [vmem:[#allocation111_spill] sm:$0xff] }
 0x217   : > { %10320 = vmatprep.mubr.msk.f32.mxu0 %vm311_vm0, %v3231_v22  ;;  %v4046_v22 = vmul.f32 %v4014_v33, %v12663_v23  ;;  %v4802_v23 = vld [vmem:[%s14492_s3] sm:$0xf] }
 0x218   : > { %10476 = vmatprep.subr.msk.mxu1 %vm770_vm1, %v4802_v23 }
 0x21a   : > { %10321 = vmatmul.mubr.msk.f32.gmra.mrb[28].mxu0 %vm311_vm0, %v3232_v1  ;;  %v4803_v1 = vld [vmem:[#allocation3 + $0x8] sm:$0xff] }
 0x21b   : > { %10323 = vmatprep.mubr.msk.f32.mxu0 %vm311_vm0, %v3233_v37  ;;  %10428 = vmatprep.mubr.msk.f32.mxu1 %vm311_vm0, %v4803_v1  ;;  %v13210_v37 = vld [vmem:[%s14491_s2] ss:$0 sm:$0xff] }
 0x21c   : > { %10429 = vmatmul.mubr.msk.f32.vlgmr.msra.gmra.mrb[0].mxu1 %vm311_vm0, %v4804_v21 }
 0x21d   : > { %10477 = vmatpush3.msk.msra.mxu1 %vm770_vm1, %v4802_v23 }
 0x21e   : > { %10324 = vmatmul.mubr.msk.f32.gmra.mrb[30].mxu0 %vm311_vm0, %v3234_v27  ;;  %10526 = vmatprep.subr.msk.mxu1 %vm770_vm1, %v13203_v10 }
 0x21f   : > { %10328 = vmatprep.mubr.msk.f32.mxu0 %vm311_vm0, %v12779_v24  ;;  %v14930_v24 = vld [vmem:[#allocation47_spill] sm:$0xff] }
 0x222   : > { %10329 = vmatmul.mubr.msk.f32.vlgmr.msra.gmra.mrb[0].mxu0 %vm311_vm0, %v12791_v18  ;;  %v14931_v18 = vld [vmem:[#allocation46_spill] sm:$0xff] }
 0x223   : > { %10377 = vmatpush3.msk.msra.mxu0 %vm770_vm1, %v12988_v38  ;;  %10331 = vmatprep.mubr.msk.f32.mxu0 %vm311_vm0, %v12793_v39  ;;  %v14932_v39 = vld [vmem:[#allocation48_spill] sm:$0xff]  ;;  %v14939_v38 = vld [vmem:[#allocation54_spill] sm:$0xff] }
 0x226   : > { %10332 = vmatmul.mubr.msk.f32.gmra.mrb[2].mxu0 %vm311_vm0, %v12801_v58  ;;  %v14933_v58 = vld [vmem:[#allocation45_spill] sm:$0xff] }
 0x227   : > { %10334 = vmatprep.mubr.msk.f32.mxu0 %vm311_vm0, %v12803_v49  ;;  %v14934_v49 = vld [vmem:[#allocation51_spill] sm:$0xff] }
 0x22a   : > { %10335 = vmatmul.mubr.msk.f32.gmra.mrb[4].mxu0 %vm311_vm0, %v12809_v30  ;;  %v14935_v30 = vld [vmem:[#allocation50_spill] sm:$0xff] }
 0x22b   : > { %10337 = vmatprep.mubr.msk.f32.mxu0 %vm311_vm0, %v12811_v29  ;;  %v14936_v29 = vld [vmem:[#allocation52_spill] sm:$0xff] }
 0x22e   : > { %10338 = vmatmul.mubr.msk.f32.gmra.mrb[6].mxu0 %vm311_vm0, %v12817_v5  ;;  %v14937_v5 = vld [vmem:[#allocation49_spill] sm:$0xff] }
 0x22f   : > { %10340 = vmatprep.mubr.msk.f32.mxu0 %vm311_vm0, %v12819_v40  ;;  %v14938_v40 = vld [vmem:[#allocation55_spill] sm:$0xff] }
 0x232   : > { %10341 = vmatmul.mubr.msk.f32.gmra.mrb[8].mxu0 %vm311_vm0, %v14921_v3 }
 0x233   : > { %10343 = vmatprep.mubr.msk.f32.mxu0 %vm311_vm0, %v14922_v0 }
 0x236   : > { %10344 = vmatmul.mubr.msk.f32.gmra.mrb[10].mxu0 %vm311_vm0, %v14923_v45 }
 0x237   : > { %10346 = vmatprep.mubr.msk.f32.mxu0 %vm311_vm0, %v14924_v6 }
 0x23a   : > { %10347 = vmatmul.mubr.msk.f32.gmra.mrb[12].mxu0 %vm311_vm0, %v14925_v17 }
 0x23b   : > { %10349 = vmatprep.mubr.msk.f32.mxu0 %vm311_vm0, %v14926_v25 }
 0x23e   : > { %10350 = vmatmul.mubr.msk.f32.gmra.mrb[14].mxu0 %vm311_vm0, %v14927_v7 }
 0x23f   : > { %10352 = vmatprep.mubr.msk.f32.mxu0 %vm311_vm0, %v14928_v8 }
 0x242   : > { %10353 = vmatmul.mubr.msk.f32.gmra.mrb[16].mxu0 %vm311_vm0, %v14929_v42 }
 0x243   : > { %10355 = vmatprep.mubr.msk.f32.mxu0 %vm311_vm0, %v14930_v24  ;;  %v13218_v24 = vpop.permute.xlu0 %4612 }
 0x246   : > { %10356 = vmatmul.mubr.msk.f32.gmra.mrb[18].mxu0 %vm311_vm0, %v14931_v18 }
 0x247   : > { %10358 = vmatprep.mubr.msk.f32.mxu0 %vm311_vm0, %v14932_v39 }
 0x24a   : > { %10359 = vmatmul.mubr.msk.f32.gmra.mrb[20].mxu0 %vm311_vm0, %v14933_v58 }
 0x24b   : > { %10361 = vmatprep.mubr.msk.f32.mxu0 %vm311_vm0, %v14934_v49 }
 0x24e   : > { %10362 = vmatmul.mubr.msk.f32.gmra.mrb[22].mxu0 %vm311_vm0, %v14935_v30 }
 0x24f   : > { %10364 = vmatprep.mubr.msk.f32.mxu0 %vm311_vm0, %v14936_v29  ;;  %v13222_v29 = vpop.permute.xlu1 %4617 }
 0x252   : > { %10365 = vmatmul.mubr.msk.f32.gmra.mrb[24].mxu0 %vm311_vm0, %v14937_v5 }
 0x253   : > { %10367 = vmatprep.mubr.msk.f32.mxu0 %vm311_vm0, %v14938_v40 }
 0x256   : > { %10368 = vmatmul.mubr.msk.f32.gmra.mrb[26].mxu0 %vm311_vm0, %v14939_v38 }
 0x257   : > { %10370 = vmatprep.mubr.msk.f32.mxu0 %vm311_vm0, %v14940_v55 }
 0x25a   : > { %10371 = vmatmul.mubr.msk.f32.gmra.mrb[28].mxu0 %vm311_vm0, %v14941_v14 }
 0x25b   : > { %10373 = vmatprep.mubr.msk.f32.mxu0 %vm311_vm0, %v3623_v15  ;;  %v13226_v15 = vpop.permute.xlu0 %4622 }
 0x25e   : > { %10374 = vmatmul.mubr.msk.f32.gmra.mrb[30].mxu0 %vm311_vm0, %v3624_v35 }
 0x25f   : > { %10378 = vmatprep.mubr.msk.f32.mxu0 %vm311_vm0, %v14942_v34 }
 0x262   : > { %10379 = vmatmul.mubr.msk.f32.vlgmr.msra.gmra.mrb[0].mxu0 %vm311_vm0, %v14943_v11 }
 0x263   : > { %10381 = vmatprep.mubr.msk.f32.mxu0 %vm311_vm0, %v14944_v43 }
 0x266   : > { %10382 = vmatmul.mubr.msk.f32.gmra.mrb[2].mxu0 %vm311_vm0, %v14945_v2 }
 0x267   : > { %10384 = vmatprep.mubr.msk.f32.mxu0 %vm311_vm0, %v14946_v4  ;;  %v13240_v4 = vpop.permute.xlu1 %4627 }
 0x26a   : > { %10385 = vmatmul.mubr.msk.f32.gmra.mrb[4].mxu0 %vm311_vm0, %v14947_v54 }
 0x26b   : > { %10387 = vmatprep.mubr.msk.f32.mxu0 %vm311_vm0, %v14948_v16 }
 0x26e   : > { %10388 = vmatmul.mubr.msk.f32.gmra.mrb[6].mxu0 %vm311_vm0, %v14949_v12 }
 0x26f   : > { %10390 = vmatprep.mubr.msk.f32.mxu0 %vm311_vm0, %v14950_v19 }
 0x272   : > { %10391 = vmatmul.mubr.msk.f32.gmra.mrb[8].mxu0 %vm311_vm0, %v14951_v46 }
 0x273   : > { %10393 = vmatprep.mubr.msk.f32.mxu0 %vm311_vm0, %v14952_v28 }
 0x276   : > { %10394 = vmatmul.mubr.msk.f32.gmra.mrb[10].mxu0 %vm311_vm0, %v14953_v62 }
 0x277   : > { %10396 = vmatprep.mubr.msk.f32.mxu0 %vm311_vm0, %v14954_v32  ;;  %v13252_v32 = vpop.permute.xlu0 %4632 }
 0x27a   : > { %10397 = vmatmul.mubr.msk.f32.gmra.mrb[12].mxu0 %vm311_vm0, %v14955_v31 }
 0x27b   : > { %10399 = vmatprep.mubr.msk.f32.mxu0 %vm311_vm0, %v14956_v36 }
 0x27e   : > { %10400 = vmatmul.mubr.msk.f32.gmra.mrb[14].mxu0 %vm311_vm0, %v14957_v59 }
 0x27f   : > { %10402 = vmatprep.mubr.msk.f32.mxu0 %vm311_vm0, %v14958_v61 }
 0x282   : > { %10403 = vmatmul.mubr.msk.f32.gmra.mrb[16].mxu0 %vm311_vm0, %v14959_v63 }
 0x283   : > { %10405 = vmatprep.mubr.msk.f32.mxu0 %vm311_vm0, %v14960_v13 }
 0x286   : > { %10406 = vmatmul.mubr.msk.f32.gmra.mrb[18].mxu0 %vm311_vm0, %v14961_v56  ;;  %v13260_v56 = vpop.permute.xlu1 %4637 }
 0x287   : > { %10408 = vmatprep.mubr.msk.f32.mxu0 %vm311_vm0, %v14962_v48 }
 0x28a   : > { %10409 = vmatmul.mubr.msk.f32.gmra.mrb[20].mxu0 %vm311_vm0, %v14963_v60 }
 0x28b   : > { %10411 = vmatprep.mubr.msk.f32.mxu0 %vm311_vm0, %v14964_v26 }
 0x28e   : > { %10412 = vmatmul.mubr.msk.f32.gmra.mrb[22].mxu0 %vm311_vm0, %v14965_v51 }
 0x28f   : > { %10414 = vmatprep.mubr.msk.f32.mxu0 %vm311_vm0, %v14966_v9 }
 0x292   : > { %10415 = vmatmul.mubr.msk.f32.gmra.mrb[24].mxu0 %vm311_vm0, %v14967_v57  ;;  %v13270_v57 = vpop.permute.xlu0 %4642 }
 0x293   : > { %10417 = vmatprep.mubr.msk.f32.mxu0 %vm311_vm0, %v14968_v41 }
 0x296   : > { %10418 = vmatmul.mubr.msk.f32.gmra.mrb[26].mxu0 %vm311_vm0, %v14969_v52 }
 0x297   : > { %10420 = vmatprep.mubr.msk.f32.mxu0 %vm311_vm0, %v14970_v44 }
 0x29a   : > { %10421 = vmatmul.mubr.msk.f32.gmra.mrb[28].mxu0 %vm311_vm0, %v14971_v50  ;;  %v13284_v50 = vpop.permute.xlu1 %4647 }
 0x29b   : > { %10423 = vmatprep.mubr.msk.f32.mxu0 %vm311_vm0, %v4045_v53 }
 0x29e   : > { %10424 = vmatmul.mubr.msk.f32.gmra.mrb[30].mxu0 %vm311_vm0, %v4046_v22 }
 0x335   : > { %v10380_v27 = vpop.f32.mrb[0].mxu0 }
 0x336   : > { %v4413_v3 = vadd.f32 %v10380_v27, %v13210_v37  ;;  %v4214_v0 = vpop.f32.mrb[1].mxu0 }
 0x337   : > { %v4412_v45 = vadd.f32 %v13210_v37, %v4214_v0  ;;  %v13296_v0 = vpop.permute.xlu0 %4652 }
 0x338   : > { %v4445_v6 = vmax.f32 %v4413_v3, 0.0 }
 0x339   : > { %v4444_v17 = vmax.f32 %v4412_v45, 0.0  ;;  %v10383_v25 = vpop.f32.mrb[2].mxu0 }
 0x33a   : > { %4515 = vst.msk [vmem:[#allocation3 + $0x20] sm:$0xff] %vm311_vm0, %v4445_v6  ;;  %v4415_v7 = vadd.f32 %v10383_v25, %v13210_v37  ;;  %v4224_v8 = vpop.f32.mrb[3].mxu0 }
 0x33b   : > { %4514 = vst.msk [vmem:[#allocation3 + $0x18] sm:$0xff] %vm311_vm0, %v4444_v17  ;;  %v4414_v42 = vadd.f32 %v13210_v37, %v4224_v8 }
 0x33c   : > { %v4447_v18 = vmax.f32 %v4415_v7, 0.0 }
 0x33d   : > { %v4446_v39 = vmax.f32 %v4414_v42, 0.0  ;;  %v10386_v58 = vpop.f32.mrb[4].mxu0  ;;  %v13304_v42 = vpop.permute.xlu1 %4657 }
 0x33e   : > { %4517 = vst.msk [vmem:[#allocation3 + $0x30] sm:$0xff] %vm311_vm0, %v4447_v18  ;;  %v4417_v49 = vadd.f32 %v10386_v58, %v13210_v37  ;;  %v4234_v30 = vpop.f32.mrb[5].mxu0 }
 0x33f   : > { %4516 = vst.msk [vmem:[#allocation3 + $0x28] sm:$0xff] %vm311_vm0, %v4446_v39  ;;  %v4416_v5 = vadd.f32 %v13210_v37, %v4234_v30 }
 0x340   : > { %v4449_v40 = vmax.f32 %v4417_v49, 0.0 }
 0x341   : > { %v4448_v38 = vmax.f32 %v4416_v5, 0.0  ;;  %v10389_v55 = vpop.f32.mrb[6].mxu0  ;;  %v13236_v43 = vld [vmem:[#allocation3 + $0x20] sm:$0xff]  ;;  %v13314_v5 = vpop.permute.xlu0 %4662 }
 0x342   : > { %4519 = vst.msk [vmem:[#allocation3 + $0x40] sm:$0xff] %vm311_vm0, %v4449_v40  ;;  %v4419_v14 = vadd.f32 %v10389_v55, %v13210_v37  ;;  %v4244_v35 = vpop.f32.mrb[7].mxu0  ;;  %v13230_v34 = vld [vmem:[#allocation3 + $0x18] sm:$0xff]  ;;  %14973 = vst [vmem:[#allocation56_spill] sm:$0xff] %v13236_v43 }
 0x343   : > { %14972 = vst [vmem:[#allocation58_spill] sm:$0xff] %v13230_v34  ;;  %4518 = vst.msk [vmem:[#allocation3 + $0x38] sm:$0xff] %vm311_vm0, %v4448_v38  ;;  %v4418_v11 = vadd.f32 %v13210_v37, %v4244_v35  ;;  %10431 = vmatprep.mubr.msk.f32.mxu1 %vm311_vm0, %v13230_v34 }
 0x344   : > { %v4451_v2 = vmax.f32 %v4419_v14, 0.0  ;;  %10432 = vmatmul.mubr.msk.f32.gmra.mrb[2].mxu1 %vm311_vm0, %v13236_v43 }
 0x345   : > { %v4450_v54 = vmax.f32 %v4418_v11, 0.0  ;;  %v10392_v16 = vpop.f32.mrb[8].mxu0  ;;  %v13250_v62 = vld [vmem:[#allocation3 + $0x30] sm:$0xff] }
 0x346   : > { %4521 = vst.msk [vmem:[#allocation3 + $0x50] sm:$0xff] %vm311_vm0, %v4451_v2  ;;  %v4421_v12 = vadd.f32 %v10392_v16, %v13210_v37  ;;  %v4254_v19 = vpop.f32.mrb[9].mxu0  ;;  %v13244_v46 = vld [vmem:[#allocation3 + $0x28] sm:$0xff]  ;;  %14975 = vst [vmem:[#allocation60_spill] sm:$0xff] %v13250_v62  ;;  %v13328_v2 = vpop.permute.xlu1 %4667 }
 0x347   : > { %14974 = vst [vmem:[#allocation62_spill] sm:$0xff] %v13244_v46  ;;  %4520 = vst.msk [vmem:[#allocation3 + $0x48] sm:$0xff] %vm311_vm0, %v4450_v54  ;;  %v4420_v28 = vadd.f32 %v13210_v37, %v4254_v19  ;;  %10434 = vmatprep.mubr.msk.f32.mxu1 %vm311_vm0, %v13244_v46 }
 0x348   : > { %v4453_v31 = vmax.f32 %v4421_v12, 0.0  ;;  %10435 = vmatmul.mubr.msk.f32.gmra.mrb[4].mxu1 %vm311_vm0, %v13250_v62 }
 0x349   : > { %v4452_v36 = vmax.f32 %v4420_v28, 0.0  ;;  %v10395_v59 = vpop.f32.mrb[10].mxu0  ;;  %v13266_v60 = vld [vmem:[#allocation3 + $0x40] sm:$0xff] }
 0x34a   : > { %4523 = vst.msk [vmem:[#allocation3 + $0x60] sm:$0xff] %vm311_vm0, %v4453_v31  ;;  %v4423_v61 = vadd.f32 %v10395_v59, %v13210_v37  ;;  %v4264_v63 = vpop.f32.mrb[11].mxu0  ;;  %v13258_v13 = vld [vmem:[#allocation3 + $0x38] sm:$0xff]  ;;  %14977 = vst [vmem:[#allocation64_spill] sm:$0xff] %v13266_v60  ;;  %v13340_v59 = vpop.permute.xlu0 %4672 }
 0x34b   : > { %14976 = vst [vmem:[#allocation66_spill] sm:$0xff] %v13258_v13  ;;  %4522 = vst.msk [vmem:[#allocation3 + $0x58] sm:$0xff] %vm311_vm0, %v4452_v36  ;;  %v4422_v48 = vadd.f32 %v13210_v37, %v4264_v63  ;;  %10437 = vmatprep.mubr.msk.f32.mxu1 %vm311_vm0, %v13258_v13 }
 0x34c   : > { %v4455_v26 = vmax.f32 %v4423_v61, 0.0  ;;  %10438 = vmatmul.mubr.msk.f32.gmra.mrb[6].mxu1 %vm311_vm0, %v13266_v60 }
 0x34d   : > { %v4454_v51 = vmax.f32 %v4422_v48, 0.0  ;;  %v10398_v9 = vpop.f32.mrb[12].mxu0  ;;  %v13280_v33 = vld [vmem:[#allocation3 + $0x50] sm:$0xff] }
 0x34e   : > { %4525 = vst.msk [vmem:[#allocation3 + $0x70] sm:$0xff] %vm311_vm0, %v4455_v26  ;;  %v4425_v41 = vadd.f32 %v10398_v9, %v13210_v37  ;;  %v4274_v47 = vpop.f32.mrb[13].mxu0  ;;  %v13274_v52 = vld [vmem:[#allocation3 + $0x48] sm:$0xff]  ;;  %14979 = vst [vmem:[#allocation68_spill] sm:$0xff] %v13280_v33 }
 0x34f   : > { %14978 = vst [vmem:[#allocation70_spill] sm:$0xff] %v13274_v52  ;;  %4524 = vst.msk [vmem:[#allocation3 + $0x68] sm:$0xff] %vm311_vm0, %v4454_v51  ;;  %v4424_v44 = vadd.f32 %v13210_v37, %v4274_v47  ;;  %10440 = vmatprep.mubr.msk.f32.mxu1 %vm311_vm0, %v13274_v52 }
 0x350   : > { %v4457_v53 = vmax.f32 %v4425_v41, 0.0  ;;  %10441 = vmatmul.mubr.msk.f32.gmra.mrb[8].mxu1 %vm311_vm0, %v13280_v33  ;;  %v13348_v41 = vpop.permute.xlu1 %4677 }
 0x351   : > { %v4456_v22 = vmax.f32 %v4424_v44, 0.0  ;;  %v10401_v20 = vpop.f32.mrb[14].mxu0  ;;  %v13294_v3 = vld [vmem:[#allocation3 + $0x60] sm:$0xff] }
 0x352   : > { %4527 = vst.msk [vmem:[#allocation3 + $0x80] sm:$0xff] %vm311_vm0, %v4457_v53  ;;  %v4427_v1 = vadd.f32 %v10401_v20, %v13210_v37  ;;  %v4284_v21 = vpop.f32.mrb[15].mxu0  ;;  %v13288_v23 = vld [vmem:[#allocation3 + $0x58] sm:$0xff]  ;;  %14981 = vst [vmem:[#allocation72_spill] sm:$0xff] %v13294_v3 }
 0x353   : > { %14980 = vst [vmem:[#allocation74_spill] sm:$0xff] %v13288_v23  ;;  %4526 = vst.msk [vmem:[#allocation3 + $0x78] sm:$0xff] %vm311_vm0, %v4456_v22  ;;  %v4426_v27 = vadd.f32 %v13210_v37, %v4284_v21  ;;  %10443 = vmatprep.mubr.msk.f32.mxu1 %vm311_vm0, %v13288_v23 }
 0x354   : > { %v4459_v45 = vmax.f32 %v4427_v1, 0.0  ;;  %10444 = vmatmul.mubr.msk.f32.gmra.mrb[10].mxu1 %vm311_vm0, %v13294_v3  ;;  %v13358_v1 = vpop.permute.xlu0 %4682 }
 0x355   : > { %v4458_v6 = vmax.f32 %v4426_v27, 0.0  ;;  %v10404_v17 = vpop.f32.mrb[16].mxu0  ;;  %v13310_v39 = vld [vmem:[#allocation3 + $0x70] sm:$0xff] }
 0x356   : > { %4529 = vst.msk [vmem:[#allocation3 + $0x90] sm:$0xff] %vm311_vm0, %v4459_v45  ;;  %v4429_v25 = vadd.f32 %v10404_v17, %v13210_v37  ;;  %v4294_v7 = vpop.f32.mrb[17].mxu0  ;;  %v13302_v8 = vld [vmem:[#allocation3 + $0x68] sm:$0xff]  ;;  %14983 = vst [vmem:[#allocation76_spill] sm:$0xff] %v13310_v39 }
 0x357   : > { %14982 = vst [vmem:[#allocation78_spill] sm:$0xff] %v13302_v8  ;;  %4528 = vst.msk [vmem:[#allocation3 + $0x88] sm:$0xff] %vm311_vm0, %v4458_v6  ;;  %v4428_v18 = vadd.f32 %v13210_v37, %v4294_v7  ;;  %10446 = vmatprep.mubr.msk.f32.mxu1 %vm311_vm0, %v13302_v8  ;;  %v13372_v7 = vpop.permute.xlu1 %4687 }
 0x358   : > { %v4461_v58 = vmax.f32 %v4429_v25, 0.0  ;;  %10447 = vmatmul.mubr.msk.f32.gmra.mrb[12].mxu1 %vm311_vm0, %v13310_v39  ;;  %14992 = vst [vmem:[#allocation98_spill] sm:$0xff] %v13372_v7 }
 0x359   : > { %v4460_v49 = vmax.f32 %v4428_v18, 0.0  ;;  %v10407_v30 = vpop.f32.mrb[18].mxu0  ;;  %v13324_v35 = vld [vmem:[#allocation3 + $0x80] sm:$0xff] }
 0x35a   : > { %4531 = vst.msk [vmem:[#allocation3 + $0xa0] sm:$0xff] %vm311_vm0, %v4461_v58  ;;  %v4431_v40 = vadd.f32 %v10407_v30, %v13210_v37  ;;  %v4304_v38 = vpop.f32.mrb[19].mxu0  ;;  %v13318_v55 = vld [vmem:[#allocation3 + $0x78] sm:$0xff]  ;;  %14985 = vst [vmem:[#allocation80_spill] sm:$0xff] %v13324_v35 }
 0x35b   : > { %14984 = vst [vmem:[#allocation82_spill] sm:$0xff] %v13318_v55  ;;  %4530 = vst.msk [vmem:[#allocation3 + $0x98] sm:$0xff] %vm311_vm0, %v4460_v49  ;;  %v4430_v14 = vadd.f32 %v13210_v37, %v4304_v38  ;;  %10449 = vmatprep.mubr.msk.f32.mxu1 %vm311_vm0, %v13318_v55 }
 0x35c   : > { %v4463_v11 = vmax.f32 %v4431_v40, 0.0  ;;  %10450 = vmatmul.mubr.msk.f32.gmra.mrb[14].mxu1 %vm311_vm0, %v13324_v35 }
 0x35d   : > { %v4462_v54 = vmax.f32 %v4430_v14, 0.0  ;;  %v10410_v16 = vpop.f32.mrb[20].mxu0  ;;  %v13338_v36 = vld [vmem:[#allocation3 + $0x90] sm:$0xff] }
 0x35e   : > { %4533 = vst.msk [vmem:[#allocation3 + $0xb0] sm:$0xff] %vm311_vm0, %v4463_v11  ;;  %v4433_v12 = vadd.f32 %v10410_v16, %v13210_v37  ;;  %v4314_v19 = vpop.f32.mrb[21].mxu0  ;;  %v13332_v28 = vld [vmem:[#allocation3 + $0x88] sm:$0xff]  ;;  %14987 = vst [vmem:[#allocation84_spill] sm:$0xff] %v13338_v36  ;;  %v13384_v11 = vpop.permute.xlu0 %4692 }
 0x35f   : > { %14986 = vst [vmem:[#allocation86_spill] sm:$0xff] %v13332_v28  ;;  %4532 = vst.msk [vmem:[#allocation3 + $0xa8] sm:$0xff] %vm311_vm0, %v4462_v54  ;;  %v4432_v31 = vadd.f32 %v13210_v37, %v4314_v19  ;;  %10452 = vmatprep.mubr.msk.f32.mxu1 %vm311_vm0, %v13332_v28  ;;  %v13534_v28 = vld [vmem:[#allocation3 + $0x7f] sm:$0xff]  ;;  %v13537_v35 = vld [vmem:[#allocation3 + $0x87] sm:$0xff] }
 0x360   : > { %v4465_v61 = vmax.f32 %v4433_v12, 0.0  ;;  %10453 = vmatmul.mubr.msk.f32.gmra.mrb[16].mxu1 %vm311_vm0, %v13338_v36  ;;  %14995 = vst [vmem:[#allocation100_spill] sm:$0xff] %v13384_v11  ;;  %v13546_v39 = vld [vmem:[#allocation3 + $0x8f] sm:$0xff] }
 0x361   : > { %v4464_v63 = vmax.f32 %v4432_v31, 0.0  ;;  %v10413_v48 = vpop.f32.mrb[22].mxu0  ;;  %v13354_v44 = vld [vmem:[#allocation3 + $0xa0] sm:$0xff] }
 0x362   : > { %4535 = vst.msk [vmem:[#allocation3 + $0xc0] sm:$0xff] %vm311_vm0, %v4465_v61  ;;  %v4435_v26 = vadd.f32 %v10413_v48, %v13210_v37  ;;  %v4324_v51 = vpop.f32.mrb[23].mxu0  ;;  %v13346_v9 = vld [vmem:[#allocation3 + $0x98] sm:$0xff]  ;;  %14989 = vst [vmem:[#allocation88_spill] sm:$0xff] %v13354_v44 }
 0x363   : > { %14988 = vst [vmem:[#allocation90_spill] sm:$0xff] %v13346_v9  ;;  %4534 = vst.msk [vmem:[#allocation3 + $0xb8] sm:$0xff] %vm311_vm0, %v4464_v63  ;;  %v4434_v47 = vadd.f32 %v13210_v37, %v4324_v51  ;;  %10455 = vmatprep.mubr.msk.f32.mxu1 %vm311_vm0, %v13346_v9  ;;  %v13392_v63 = vpop.permute.xlu1 %4697  ;;  %v13525_v9 = vld [vmem:[#allocation3 + $0x77] sm:$0xff]  ;;  %v13560_v33 = vld [vmem:[#allocation3 + $0x9f] sm:$0xff] }
 0x364   : > { %v4467_v53 = vmax.f32 %v4435_v26, 0.0  ;;  %10456 = vmatmul.mubr.msk.f32.gmra.mrb[18].mxu1 %vm311_vm0, %v13354_v44  ;;  %14997 = vst [vmem:[#allocation104_spill] sm:$0xff] %v13392_v63  ;;  %v13522_v44 = vld [vmem:[#allocation3 + $0x6f] sm:$0xff]  ;;  %v4784_v36 = vmul.f32 %v13358_v1, %v13525_v9  ;;  %v13551_v3 = vld [vmem:[#allocation3 + $0x97] sm:$0xff]  ;;  %15021 = vst [vmem:[#allocation57_spill] sm:$0xff] %v13560_v33 }
 0x365   : > { %v4466_v22 = vmax.f32 %v4434_v47, 0.0  ;;  %v10416_v20 = vpop.f32.mrb[24].mxu0  ;;  %v13368_v17 = vld [vmem:[#allocation3 + $0xb0] sm:$0xff] }
 0x366   : > { %4537 = vst.msk [vmem:[#allocation3 + $0xd0] sm:$0xff] %vm311_vm0, %v4467_v53  ;;  %v4437_v21 = vadd.f32 %v10416_v20, %v13210_v37  ;;  %v4334_v27 = vpop.f32.mrb[25].mxu0  ;;  %v13362_v45 = vld [vmem:[#allocation3 + $0xa8] sm:$0xff]  ;;  %14991 = vst [vmem:[#allocation92_spill] sm:$0xff] %v13368_v17 }
 0x367   : > { %14990 = vst [vmem:[#allocation94_spill] sm:$0xff] %v13362_v45  ;;  %4536 = vst.msk [vmem:[#allocation3 + $0xc8] sm:$0xff] %vm311_vm0, %v4466_v22  ;;  %v4436_v6 = vadd.f32 %v13210_v37, %v4334_v27  ;;  %10458 = vmatprep.mubr.msk.f32.mxu1 %vm311_vm0, %v13362_v45  ;;  %v13402_v22 = vpop.permute.xlu0 %4702  ;;  %v13563_v52 = vld [vmem:[#allocation3 + $0xa7] sm:$0xff]  ;;  %v13572_v13 = vld [vmem:[#allocation3 + $0xaf] sm:$0xff] }
 0x368   : > { %v4469_v25 = vmax.f32 %v4437_v21, 0.0  ;;  %10459 = vmatmul.mubr.msk.f32.gmra.mrb[20].mxu1 %vm311_vm0, %v13368_v17  ;;  %14999 = vst [vmem:[#allocation36_spill] sm:$0xff] %v13402_v22  ;;  %v13513_v17 = vld [vmem:[#allocation3 + $0x67] sm:$0xff]  ;;  %v4788_v23 = vmul.f32 %v13402_v22, %v13551_v3  ;;  %15023 = vst [vmem:[#allocation61_spill] sm:$0xff] %v13572_v13 }
 0x369   : > { %v4468_v18 = vmax.f32 %v4436_v6, 0.0  ;;  %v10419_v58 = vpop.f32.mrb[26].mxu0  ;;  %v13382_v14 = vld [vmem:[#allocation3 + $0xc0] sm:$0xff]  ;;  %v4782_v45 = vmul.f32 %v13340_v59, %v13513_v17 }
 0x36a   : > { %4539 = vst.msk [vmem:[#allocation3 + $0xe0] sm:$0xff] %vm311_vm0, %v4469_v25  ;;  %v4439_v49 = vadd.f32 %v10419_v58, %v13210_v37  ;;  %v4344_v30 = vpop.f32.mrb[27].mxu0  ;;  %v13376_v40 = vld [vmem:[#allocation3 + $0xb8] sm:$0xff]  ;;  %14994 = vst [vmem:[#allocation102_spill] sm:$0xff] %v13382_v14  ;;  %v13416_v58 = vpop.permute.xlu1 %4707 }
 0x36b   : > { %14993 = vst [vmem:[#allocation96_spill] sm:$0xff] %v13376_v40  ;;  %4538 = vst.msk [vmem:[#allocation3 + $0xd8] sm:$0xff] %vm311_vm0, %v4468_v18  ;;  %v4438_v38 = vadd.f32 %v13210_v37, %v4344_v30  ;;  %10461 = vmatprep.mubr.msk.f32.mxu1 %vm311_vm0, %v13376_v40  ;;  %v13575_v62 = vld [vmem:[#allocation3 + $0xb7] sm:$0xff]  ;;  %v13584_v43 = vld [vmem:[#allocation3 + $0xbf] sm:$0xff] }
 0x36c   : > { %v4471_v54 = vmax.f32 %v4439_v49, 0.0  ;;  %10462 = vmatmul.mubr.msk.f32.gmra.mrb[22].mxu1 %vm311_vm0, %v13382_v14  ;;  %15002 = vst [vmem:[#allocation40_spill] sm:$0xff] %v13416_v58  ;;  %v13508_v14 = vld [vmem:[#allocation3 + $0x5f] sm:$0xff]  ;;  %15024 = vst [vmem:[#allocation67_spill] sm:$0xff] %v13575_v62 }
 0x36d   : > { %v4470_v16 = vmax.f32 %v4438_v38, 0.0  ;;  %v10422_v12 = vpop.f32.mrb[28].mxu0  ;;  %v13398_v26 = vld [vmem:[#allocation3 + $0xd0] sm:$0xff]  ;;  %v4546_v38 = vld [vmem:[#allocation3 + $0x7] sm:$0xff]  ;;  %15026 = vst [vmem:[#allocation71_spill] sm:$0xff] %v13584_v43 }
 0x36e   : > { %4541 = vst.msk [vmem:[#allocation3 + $0xf0] sm:$0xff] %vm311_vm0, %v4471_v54  ;;  %v4441_v19 = vadd.f32 %v10422_v12, %v13210_v37  ;;  %v4354_v31 = vpop.f32.mrb[29].mxu0  ;;  %v13390_v61 = vld [vmem:[#allocation3 + $0xc8] sm:$0xff]  ;;  %14998 = vst [vmem:[#allocation108_spill] sm:$0xff] %v13398_v26  ;;  %v13426_v54 = vpop.permute.xlu0 %4712 }
 0x36f   : > { %14996 = vst [vmem:[#allocation106_spill] sm:$0xff] %v13390_v61  ;;  %4540 = vst.msk [vmem:[#allocation3 + $0xe8] sm:$0xff] %vm311_vm0, %v4470_v16  ;;  %v4440_v48 = vadd.f32 %v13210_v37, %v4354_v31  ;;  %10464 = vmatprep.mubr.msk.f32.mxu1 %vm311_vm0, %v13390_v61  ;;  %v4547_v12 = vld [vmem:[#allocation3 + $0xf] sm:$0xff]  ;;  %v13433_v31 = vpop.permute.xlu1 %4717  ;;  %v4790_v60 = vmul.f32 %v13426_v54, %v13563_v52 }
 0x370   : > { %v4473_v51 = vmax.f32 %v4441_v19, 0.0  ;;  %10465 = vmatmul.mubr.msk.f32.gmra.mrb[24].mxu1 %vm311_vm0, %v13398_v26  ;;  %15005 = vst [vmem:[#allocation42_spill] sm:$0xff] %v13426_v54  ;;  %v4770_v19 = vmul.f32 %v13218_v24, %v4546_v38  ;;  %15007 = vst [vmem:[#allocation41_spill] sm:$0xff] %v13433_v31  ;;  %v13499_v26 = vld [vmem:[#allocation3 + $0x57] sm:$0xff]  ;;  %v13589_v54 = vld [vmem:[#allocation3 + $0xc7] sm:$0xff] }
 0x371   : > { %v4472_v47 = vmax.f32 %v4440_v48, 0.0  ;;  %v10425_v53 = vpop.f32.mrb[30].mxu0  ;;  %v13412_v25 = vld [vmem:[#allocation3 + $0xe0] sm:$0xff]  ;;  %15028 = vst [vmem:[#allocation75_spill] sm:$0xff] %v13589_v54 }
 0x372   : > { %4543 = vst.msk [vmem:[#allocation3 + $0x100] sm:$0xff] %vm311_vm0, %v4473_v51  ;;  %v4443_v20 = vadd.f32 %v10425_v53, %v13210_v37  ;;  %v4364_v21 = vpop.f32.mrb[31].mxu0  ;;  %v13406_v27 = vld [vmem:[#allocation3 + $0xd8] sm:$0xff]  ;;  %15001 = vst [vmem:[#allocation38_spill] sm:$0xff] %v13412_v25  ;;  %v13445_v53 = vpop.permute.xlu0 %4722 }
 0x373   : > { %15000 = vst [vmem:[#allocation39_spill] sm:$0xff] %v13406_v27  ;;  %4542 = vst.msk [vmem:[#allocation3 + $0xf8] sm:$0xff] %vm311_vm0, %v4472_v47  ;;  %v4442_v6 = vadd.f32 %v13210_v37, %v4364_v21  ;;  %10467 = vmatprep.mubr.msk.f32.mxu1 %vm311_vm0, %v13406_v27  ;;  %v13441_v51 = vld [vmem:[#allocation3 + $0x17] sm:$0xff]  ;;  %v4771_v47 = vmul.f32 %v13222_v29, %v4547_v12  ;;  %v13449_v21 = vld [vmem:[#allocation3 + $0x1f] sm:$0xff] }
 0x374   : > { %v4475_v18 = vmax.f32 %v4443_v20, 0.0  ;;  %10468 = vmatmul.mubr.msk.f32.gmra.mrb[26].mxu1 %vm311_vm0, %v13412_v25  ;;  %15009 = vst [vmem:[#allocation46_spill] sm:$0xff] %v13445_v53  ;;  %v4772_v20 = vmul.f32 %v13226_v15, %v13441_v51  ;;  %v4773_v38 = vmul.f32 %v13240_v4, %v13449_v21  ;;  %v13496_v27 = vld [vmem:[#allocation3 + $0x4f] sm:$0xff] }
 0x375   : > { %v4474_v49 = vmax.f32 %v4442_v6, 0.0  ;;  %v13424_v37 = vld [vmem:[#allocation3 + $0xf0] sm:$0xff]  ;;  %v13454_v6 = vld [vmem:[%s14492_s3 + $0xc] sm:$0xf] }
 0x376   : > { %4545 = vst.msk [vmem:[#allocation3 + $0x110] sm:$0xff] %vm311_vm0, %v4475_v18  ;;  %v13419_v30 = vld [vmem:[#allocation3 + $0xe8] sm:$0xff]  ;;  %15004 = vst [vmem:[#allocation43_spill] sm:$0xff] %v13424_v37 }
 0x377   : > { %15003 = vst [vmem:[#allocation37_spill] sm:$0xff] %v13419_v30  ;;  %4544 = vst.msk [vmem:[#allocation3 + $0x108] sm:$0xff] %vm311_vm0, %v4474_v49  ;;  %10470 = vmatprep.mubr.msk.f32.mxu1 %vm311_vm0, %v13419_v30  ;;  %v13457_v18 = vld [vmem:[#allocation3 + $0x27] sm:$0xff]  ;;  %v13459_v49 = vpop.permute.xlu1 %4727 }
 0x378   : > { %10471 = vmatmul.mubr.msk.f32.gmra.mrb[28].mxu1 %vm311_vm0, %v13424_v37  ;;  %15010 = vst [vmem:[#allocation48_spill] sm:$0xff] %v13459_v49  ;;  %v4774_v12 = vmul.f32 %v13252_v32, %v13457_v18  ;;  %v13484_v37 = vld [vmem:[#allocation3 + $0x3f] sm:$0xff]  ;;  %v13487_v30 = vld [vmem:[#allocation3 + $0x47] sm:$0xff] }
 0x379   : > { %v13437_v48 = vld [vmem:[#allocation3 + $0x100] sm:$0xff]  ;;  %v4778_v25 = vmul.f32 %v13296_v0, %v13487_v30 }
 0x37a   : > { %v13430_v16 = vld [vmem:[#allocation3 + $0xf8] sm:$0xff]  ;;  %15008 = vst [vmem:[#allocation47_spill] sm:$0xff] %v13437_v48 }
 0x37b   : > { %15006 = vst [vmem:[#allocation44_spill] sm:$0xff] %v13430_v16  ;;  %10473 = vmatprep.mubr.msk.f32.mxu1 %vm311_vm0, %v13430_v16 }
 0x37c   : > { %10474 = vmatmul.mubr.msk.f32.gmra.mrb[30].mxu1 %vm311_vm0, %v13437_v48  ;;  %v13475_v48 = vld [vmem:[#allocation3 + $0x37] sm:$0xff] }
 0x37d   : > { %10478 = vmatprep.mubr.msk.f32.mxu1 %vm311_vm0, %v4770_v19  ;;  %v13470_v19 = vld [vmem:[#allocation3 + $0x2f] sm:$0xff]  ;;  %v4776_v16 = vmul.f32 %v13270_v57, %v13475_v48 }
 0x380   : > { %10479 = vmatmul.mubr.msk.f32.vlgmr.msra.gmra.mrb[0].mxu1 %vm311_vm0, %v4771_v47  ;;  %v13472_v47 = vpop.permute.xlu0 %4732 }
 0x381   : > { %10527 = vmatpush3.msk.msra.mxu1 %vm770_vm1, %v13203_v10  ;;  %10481 = vmatprep.mubr.msk.f32.mxu1 %vm311_vm0, %v4772_v20  ;;  %15011 = vst [vmem:[#allocation45_spill] sm:$0xff] %v13472_v47  ;;  %v4775_v10 = vmul.f32 %v13260_v56, %v13470_v19  ;;  %v13480_v20 = vpop.permute.xlu1 %4737 }
 0x382   : > { %10576 = vmatprep.subr.msk.mxu1 %vm770_vm1, %v13454_v6  ;;  %15012 = vst [vmem:[#allocation51_spill] sm:$0xff] %v13480_v20 }
 0x384   : > { %10482 = vmatmul.mubr.msk.f32.gmra.mrb[2].mxu1 %vm311_vm0, %v4773_v38  ;;  %v13490_v38 = vpop.permute.xlu0 %4742 }
 0x385   : > { %10484 = vmatprep.mubr.msk.f32.mxu1 %vm311_vm0, %v4774_v12  ;;  %15013 = vst [vmem:[#allocation50_spill] sm:$0xff] %v13490_v38  ;;  %v4777_v12 = vmul.f32 %v13284_v50, %v13484_v37  ;;  %v13501_v61 = vpop.permute.xlu1 %4747 }
 0x386   : > { %15014 = vst [vmem:[#allocation52_spill] sm:$0xff] %v13501_v61 }
 0x388   : > { %10485 = vmatmul.mubr.msk.f32.gmra.mrb[4].mxu1 %vm311_vm0, %v4775_v10  ;;  %v4780_v10 = vmul.f32 %v13314_v5, %v13499_v26  ;;  %v13510_v40 = vpop.permute.xlu0 %4752 }
 0x389   : > { %10487 = vmatprep.mubr.msk.f32.mxu1 %vm311_vm0, %v4776_v16  ;;  %v4779_v16 = vmul.f32 %v13304_v42, %v13496_v27  ;;  %15015 = vst [vmem:[#allocation49_spill] sm:$0xff] %v13510_v40 }
 0x38c   : > { %10488 = vmatmul.mubr.msk.f32.gmra.mrb[6].mxu1 %vm311_vm0, %v4777_v12  ;;  %v4781_v12 = vmul.f32 %v13328_v2, %v13508_v14 }
 0x38d   : > { %10490 = vmatprep.mubr.msk.f32.mxu1 %vm311_vm0, %v4778_v25  ;;  %v13518_v25 = vpop.permute.xlu1 %4757 }
 0x38e   : > { %15016 = vst [vmem:[#allocation55_spill] sm:$0xff] %v13518_v25 }
 0x390   : > { %10491 = vmatmul.mubr.msk.f32.gmra.mrb[8].mxu1 %vm311_vm0, %v4779_v16  ;;  %v13528_v16 = vpop.permute.xlu0 %4762 }
 0x391   : > { %10493 = vmatprep.mubr.msk.f32.mxu1 %vm311_vm0, %v4780_v10  ;;  %15017 = vst [vmem:[#allocation54_spill] sm:$0xff] %v13528_v16  ;;  %v4783_v10 = vmul.f32 %v13348_v41, %v13522_v44  ;;  %v13539_v55 = vpop.permute.xlu1 %4767 }
 0x392   : > { %15018 = vst [vmem:[#allocation53_spill] sm:$0xff] %v13539_v55 }
 0x394   : > { %10494 = vmatmul.mubr.msk.f32.gmra.mrb[10].mxu1 %vm311_vm0, %v4781_v12  ;;  %v4786_v12 = vmul.f32 %v13384_v11, %v13537_v35  ;;  %v13548_v8 = vpop.permute.xlu0 %5551 }
 0x395   : > { %10496 = vmatprep.mubr.msk.f32.mxu1 %vm311_vm0, %v4782_v45  ;;  %v4785_v45 = vmul.f32 %v13372_v7, %v13534_v28  ;;  %15019 = vst [vmem:[#allocation113_spill] sm:$0xff] %v13548_v8 }
 0x398   : > { %10497 = vmatmul.mubr.msk.f32.gmra.mrb[12].mxu1 %vm311_vm0, %v4783_v10  ;;  %v4787_v10 = vmul.f32 %v13392_v63, %v13546_v39 }
 0x399   : > { %10499 = vmatprep.mubr.msk.f32.mxu1 %vm311_vm0, %v4784_v36  ;;  %v13556_v36 = vpop.permute.xlu1 %5556 }
 0x39a   : > { %15020 = vst [vmem:[#allocation59_spill] sm:$0xff] %v13556_v36 }
 0x39c   : > { %10500 = vmatmul.mubr.msk.f32.gmra.mrb[14].mxu1 %vm311_vm0, %v4785_v45  ;;  %v13566_v45 = vpop.permute.xlu0 %5561 }
 0x39d   : > { %10502 = vmatprep.mubr.msk.f32.mxu1 %vm311_vm0, %v4786_v12  ;;  %15022 = vst [vmem:[#allocation63_spill] sm:$0xff] %v13566_v45  ;;  %v4789_v12 = vmul.f32 %v13416_v58, %v13560_v33  ;;  %v13577_v46 = vpop.permute.xlu1 %5566  ;;  %v13598_v58 = vld [vmem:[#allocation3 + $0xcf] sm:$0xff] }
 0x39e   : > { %15025 = vst [vmem:[#allocation65_spill] sm:$0xff] %v13577_v46  ;;  %15030 = vst [vmem:[#allocation79_spill] sm:$0xff] %v13598_v58 }
 0x3a0   : > { %10503 = vmatmul.mubr.msk.f32.gmra.mrb[16].mxu1 %vm311_vm0, %v4787_v10  ;;  %v4792_v10 = vmul.f32 %v13445_v53, %v13575_v62  ;;  %v13586_v34 = vpop.permute.xlu0 %5571  ;;  %v13601_v53 = vld [vmem:[#allocation3 + $0xd7] sm:$0xff] }
 0x3a1   : > { %10505 = vmatprep.mubr.msk.f32.mxu1 %vm311_vm0, %v4788_v23  ;;  %v4791_v23 = vmul.f32 %v13433_v31, %v13572_v13  ;;  %15027 = vst [vmem:[#allocation69_spill] sm:$0xff] %v13586_v34  ;;  %v4794_v31 = vmul.f32 %v13472_v47, %v13589_v54  ;;  %v13613_v47 = vld [vmem:[#allocation3 + $0xe7] sm:$0xff] }
 0x3a2   : > { %15033 = vst [vmem:[#allocation81_spill] sm:$0xff] %v13613_v47 }
 0x3a4   : > { %10506 = vmatmul.mubr.msk.f32.gmra.mrb[18].mxu1 %vm311_vm0, %v4789_v12  ;;  %v4793_v12 = vmul.f32 %v13459_v49, %v13584_v43  ;;  %v4796_v49 = vmul.f32 %v13490_v38, %v13601_v53  ;;  %v13610_v43 = vld [vmem:[#allocation3 + $0xdf] sm:$0xff]  ;;  %v13627_v38 = vld [vmem:[#allocation3 + $0xf7] sm:$0xff] }
 0x3a5   : > { %10508 = vmatprep.mubr.msk.f32.mxu1 %vm311_vm0, %v4790_v60  ;;  %v13594_v60 = vpop.permute.xlu1 %5576  ;;  %15032 = vst [vmem:[#allocation83_spill] sm:$0xff] %v13610_v43  ;;  %15037 = vst [vmem:[#allocation89_spill] sm:$0xff] %v13627_v38 }
 0x3a6   : > { %15029 = vst [vmem:[#allocation73_spill] sm:$0xff] %v13594_v60 }
 0x3a8   : > { %10509 = vmatmul.mubr.msk.f32.gmra.mrb[20].mxu1 %vm311_vm0, %v4791_v23  ;;  %v13604_v23 = vpop.permute.xlu0 %5581 }
 0x3a9   : > { %10511 = vmatprep.mubr.msk.f32.mxu1 %vm311_vm0, %v4792_v10  ;;  %15031 = vst [vmem:[#allocation77_spill] sm:$0xff] %v13604_v23  ;;  %v4795_v10 = vmul.f32 %v13480_v20, %v13598_v58  ;;  %v13615_v54 = vpop.permute.xlu1 %5586  ;;  %v13622_v20 = vld [vmem:[#allocation3 + $0xef] sm:$0xff] }
 0x3aa   : > { %15034 = vst [vmem:[#allocation87_spill] sm:$0xff] %v13615_v54  ;;  %15035 = vst [vmem:[#allocation85_spill] sm:$0xff] %v13622_v20 }
 0x3ac   : > { %10512 = vmatmul.mubr.msk.f32.gmra.mrb[22].mxu1 %vm311_vm0, %v4793_v12  ;;  %v4798_v12 = vmul.f32 %v13510_v40, %v13613_v47  ;;  %v13624_v58 = vpop.permute.xlu0 %5591  ;;  %v5485_v40 = vld [vmem:[#allocation3 + $0x9] sm:$0xff] }
 0x3ad   : > { %10514 = vmatprep.mubr.msk.f32.mxu1 %vm311_vm0, %v4794_v31  ;;  %v4797_v31 = vmul.f32 %v13501_v61, %v13610_v43  ;;  %15036 = vst [vmem:[#allocation91_spill] sm:$0xff] %v13624_v58  ;;  %v4800_v61 = vmul.f32 %v13528_v16, %v13627_v38  ;;  %v13636_v43 = vld [vmem:[#allocation3 + $0xff] sm:$0xff]  ;;  %v5709_v47 = vmul.f32 %v13548_v8, %v5485_v40 }
 0x3ae   : > { %v13654_v38 = vld [vmem:[#allocation3 + $0x21] sm:$0xff] }
 0x3af   : > { %15041 = vst [vmem:[#allocation97_spill] sm:$0xff] %v13654_v38  ;;  %v13659_v40 = vld [vmem:[%s14492_s3 + $0x10] sm:$0xf] }
 0x3b0   : > { %10515 = vmatmul.mubr.msk.f32.gmra.mrb[24].mxu1 %vm311_vm0, %v4795_v10  ;;  %v4799_v10 = vmul.f32 %v13518_v25, %v13622_v20  ;;  %v5486_v25 = vld [vmem:[#allocation3 + $0x11] sm:$0xff]  ;;  %v13646_v20 = vld [vmem:[#allocation3 + $0x19] sm:$0xff] }
 0x3b1   : > { %10517 = vmatprep.mubr.msk.f32.mxu1 %vm311_vm0, %v4796_v49  ;;  %v13632_v49 = vpop.permute.xlu1 %5596 }
 0x3b2   : > { %15038 = vst [vmem:[#allocation95_spill] sm:$0xff] %v13632_v49 }
 0x3b4   : > { %10518 = vmatmul.mubr.msk.f32.gmra.mrb[26].mxu1 %vm311_vm0, %v4797_v31  ;;  %v13640_v31 = vpop.permute.xlu0 %5601 }
 0x3b5   : > { %10520 = vmatprep.mubr.msk.f32.mxu1 %vm311_vm0, %v4798_v12  ;;  %15039 = vst [vmem:[#allocation93_spill] sm:$0xff] %v13640_v31  ;;  %v4801_v12 = vmul.f32 %v13539_v55, %v13636_v43  ;;  %v13648_v16 = vpop.permute.xlu1 %5606 }
 0x3b6   : > { %15040 = vst [vmem:[#allocation99_spill] sm:$0xff] %v13648_v16 }
 0x3b8   : > { %10521 = vmatmul.mubr.msk.f32.gmra.mrb[28].mxu1 %vm311_vm0, %v4799_v10  ;;  %v5710_v10 = vmul.f32 %v13556_v36, %v5486_v25  ;;  %v13661_v8 = vpop.permute.xlu0 %5611  ;;  %v13677_v36 = vld [vmem:[#allocation3 + $0x31] sm:$0xff] }
 0x3b9   : > { %10523 = vmatprep.mubr.msk.f32.mxu1 %vm311_vm0, %v4800_v61  ;;  %v5711_v61 = vmul.f32 %v13566_v45, %v13646_v20  ;;  %15042 = vst [vmem:[#allocation103_spill] sm:$0xff] %v13661_v8  ;;  %v13673_v25 = vpop.permute.xlu1 %5616  ;;  %15045 = vst [vmem:[#allocation105_spill] sm:$0xff] %v13677_v36 }
 0x3ba   : > { %15044 = vst [vmem:[#allocation107_spill] sm:$0xff] %v13673_v25 }
 0x3bc   : > { %10524 = vmatmul.mubr.msk.f32.gmra.mrb[30].mxu1 %vm311_vm0, %v4801_v12  ;;  %v13664_v12 = vld [vmem:[#allocation3 + $0x29] sm:$0xff] }
 0x3bd   : > { %10528 = vmatprep.mubr.msk.f32.mxu1 %vm311_vm0, %v5709_v47  ;;  %15043 = vst [vmem:[#allocation101_spill] sm:$0xff] %v13664_v12  ;;  %v5712_v47 = vmul.f32 %v13577_v46, %v13654_v38  ;;  %v5713_v45 = vmul.f32 %v13586_v34, %v13664_v12  ;;  %v13689_v38 = vld [vmem:[#allocation3 + $0x41] sm:$0xff]  ;;  %v13692_v34 = vld [vmem:[#allocation3 + $0x49] sm:$0xff]  ;;  %v13694_v12 = vpop.permute.xlu1 %5626 }
 0x3be   : > { %15047 = vst [vmem:[#allocation109_spill] sm:$0xff] %v13689_v38  ;;  %15048 = vst [vmem:[#allocation112_spill] sm:$0xff] %v13694_v12 }
 0x3c0   : > { %10529 = vmatmul.mubr.msk.f32.vlgmr.msra.gmra.mrb[0].mxu1 %vm311_vm0, %v5710_v10  ;;  %v13680_v10 = vld [vmem:[#allocation3 + $0x39] sm:$0xff] }
 0x3c1   : > { %10577 = vmatpush3.msk.msra.mxu1 %vm770_vm1, %v13454_v6  ;;  %10531 = vmatprep.mubr.msk.f32.mxu1 %vm311_vm0, %v5711_v61  ;;  %v13683_v6 = vpop.permute.xlu0 %5621  ;;  %v5714_v61 = vmul.f32 %v13594_v60, %v13677_v36  ;;  %v5715_v46 = vmul.f32 %v13604_v23, %v13680_v10  ;;  %v13701_v60 = vld [vmem:[#allocation3 + $0x51] sm:$0xff]  ;;  %v13706_v23 = vld [vmem:[#allocation3 + $0x59] sm:$0xff] }
 0x3c2   : > { %10626 = vmatprep.subr.msk.mxu1 %vm770_vm1, %v13659_v40  ;;  %15046 = vst [vmem:[#allocation110_spill] sm:$0xff] %v13683_v6  ;;  %15049 = vst [vmem:[#allocation111_spill] sm:$0xff] %v13701_v60 }
 0x3c3   : > { %15051 = vst [vmem:[#allocation115_spill] sm:$0xff] %v13706_v23 }
 0x3c4   : > { %10532 = vmatmul.mubr.msk.f32.gmra.mrb[2].mxu1 %vm311_vm0, %v5712_v47  ;;  %v5717_v47 = vmul.f32 %v13624_v58, %v13692_v34  ;;  %v13718_v58 = vld [vmem:[#allocation3 + $0x69] sm:$0xff] }
 0x3c5   : > { %10534 = vmatprep.mubr.msk.f32.mxu1 %vm311_vm0, %v5713_v45  ;;  %v5716_v45 = vmul.f32 %v13615_v54, %v13689_v38  ;;  %v13703_v36 = vpop.permute.xlu0 %5631  ;;  %v5719_v54 = vmul.f32 %v13640_v31, %v13706_v23  ;;  %v13715_v38 = vld [vmem:[#allocation3 + $0x61] sm:$0xff]  ;;  %v13730_v31 = vld [vmem:[#allocation3 + $0x79] sm:$0xff] }
 0x3c6   : > { %15050 = vst [vmem:[#allocation114_spill] sm:$0xff] %v13703_v36  ;;  %15053 = vst [vmem:[#allocation117_spill] sm:$0xff] %v13715_v38 }
 0x3c8   : > { %10535 = vmatmul.mubr.msk.f32.gmra.mrb[4].mxu1 %vm311_vm0, %v5714_v61  ;;  %v5718_v61 = vmul.f32 %v13632_v49, %v13701_v60  ;;  %v5721_v49 = vmul.f32 %v13661_v8, %v13718_v58  ;;  %v13727_v60 = vld [vmem:[#allocation3 + $0x71] sm:$0xff]  ;;  %v13744_v8 = vld [vmem:[#allocation3 + $0x89] sm:$0xff] }
 0x3c9   : > { %10537 = vmatprep.mubr.msk.f32.mxu1 %vm311_vm0, %v5715_v46  ;;  %v13711_v46 = vpop.permute.xlu1 %5636  ;;  %15055 = vst [vmem:[#allocation119_spill] sm:$0xff] %v13727_v60  ;;  %15059 = vst [vmem:[#allocation123_spill] sm:$0xff] %v13744_v8 }
 0x3ca   : > { %15052 = vst [vmem:[#allocation116_spill] sm:$0xff] %v13711_v46 }
 0x3cc   : > { %10538 = vmatmul.mubr.msk.f32.gmra.mrb[6].mxu1 %vm311_vm0, %v5716_v45  ;;  %v13721_v45 = vpop.permute.xlu0 %5641 }
 0x3cd   : > { %10540 = vmatprep.mubr.msk.f32.mxu1 %vm311_vm0, %v5717_v47  ;;  %15054 = vst [vmem:[#allocation118_spill] sm:$0xff] %v13721_v45  ;;  %v5720_v47 = vmul.f32 %v13648_v16, %v13715_v38  ;;  %v13732_v23 = vpop.permute.xlu1 %5646  ;;  %v13739_v16 = vld [vmem:[#allocation3 + $0x81] sm:$0xff] }
 0x3ce   : > { %15056 = vst [vmem:[#allocation120_spill] sm:$0xff] %v13732_v23  ;;  %15057 = vst [vmem:[#allocation121_spill] sm:$0xff] %v13739_v16 }
 0x3d0   : > { %10541 = vmatmul.mubr.msk.f32.gmra.mrb[8].mxu1 %vm311_vm0, %v5718_v61  ;;  %v5723_v61 = vmul.f32 %v13683_v6, %v13730_v31  ;;  %v13741_v38 = vpop.permute.xlu0 %5651  ;;  %v13756_v6 = vld [vmem:[#allocation3 + $0x99] sm:$0xff] }
 0x3d1   : > { %10543 = vmatprep.mubr.msk.f32.mxu1 %vm311_vm0, %v5719_v54  ;;  %v5722_v54 = vmul.f32 %v13673_v25, %v13727_v60  ;;  %15058 = vst [vmem:[#allocation122_spill] sm:$0xff] %v13741_v38  ;;  %v5725_v25 = vmul.f32 %v13703_v36, %v13744_v8  ;;  %v13753_v60 = vld [vmem:[#allocation3 + $0x91] sm:$0xff]  ;;  %v13768_v36 = vld [vmem:[#allocation3 + $0xa9] sm:$0xff] }
 0x3d2   : > { %15061 = vst [vmem:[#allocation125_spill] sm:$0xff] %v13753_v60 }
 0x3d4   : > { %10544 = vmatmul.mubr.msk.f32.gmra.mrb[10].mxu1 %vm311_vm0, %v5720_v47  ;;  %v5724_v47 = vmul.f32 %v13694_v12, %v13739_v16  ;;  %v5727_v12 = vmul.f32 %v13721_v45, %v13756_v6  ;;  %v13765_v16 = vld [vmem:[#allocation3 + $0xa1] sm:$0xff]  ;;  %v13782_v45 = vld [vmem:[#allocation3 + $0xb9] sm:$0xff] }
 0x3d5   : > { %10546 = vmatprep.mubr.msk.f32.mxu1 %vm311_vm0, %v5721_v49  ;;  %v13749_v49 = vpop.permute.xlu1 %5656  ;;  %15063 = vst [vmem:[#allocation127_spill] sm:$0xff] %v13765_v16  ;;  %15067 = vst [vmem:[#allocation131_spill] sm:$0xff] %v13782_v45 }
 0x3d6   : > { %15060 = vst [vmem:[#allocation124_spill] sm:$0xff] %v13749_v49 }
 0x3d8   : > { %10547 = vmatmul.mubr.msk.f32.gmra.mrb[12].mxu1 %vm311_vm0, %v5722_v54  ;;  %v13759_v54 = vpop.permute.xlu0 %5661 }
 0x3d9   : > { %10549 = vmatprep.mubr.msk.f32.mxu1 %vm311_vm0, %v5723_v61  ;;  %15062 = vst [vmem:[#allocation126_spill] sm:$0xff] %v13759_v54  ;;  %v5726_v61 = vmul.f32 %v13711_v46, %v13753_v60  ;;  %v13770_v8 = vpop.permute.xlu1 %5666  ;;  %v13777_v46 = vld [vmem:[#allocation3 + $0xb1] sm:$0xff] }
 0x3da   : > { %15064 = vst [vmem:[#allocation128_spill] sm:$0xff] %v13770_v8  ;;  %15065 = vst [vmem:[#allocation129_spill] sm:$0xff] %v13777_v46 }
 0x3dc   : > { %10550 = vmatmul.mubr.msk.f32.gmra.mrb[14].mxu1 %vm311_vm0, %v5724_v47  ;;  %v5729_v47 = vmul.f32 %v13741_v38, %v13768_v36  ;;  %v13779_v60 = vpop.permute.xlu0 %5671  ;;  %v13794_v38 = vld [vmem:[#allocation3 + $0xc9] sm:$0xff] }
 0x3dd   : > { %10552 = vmatprep.mubr.msk.f32.mxu1 %vm311_vm0, %v5725_v25  ;;  %v5728_v25 = vmul.f32 %v13732_v23, %v13765_v16  ;;  %15066 = vst [vmem:[#allocation130_spill] sm:$0xff] %v13779_v60  ;;  %v5731_v23 = vmul.f32 %v13759_v54, %v13782_v45  ;;  %v13791_v16 = vld [vmem:[#allocation3 + $0xc1] sm:$0xff]  ;;  %v13806_v54 = vld [vmem:[#allocation3 + $0xd9] sm:$0xff] }
 0x3de   : > { %15069 = vst [vmem:[#allocation133_spill] sm:$0xff] %v13791_v16 }
 0x3e0   : > { %10553 = vmatmul.mubr.msk.f32.gmra.mrb[16].mxu1 %vm311_vm0, %v5726_v61  ;;  %v5730_v61 = vmul.f32 %v13749_v49, %v13777_v46  ;;  %v5733_v49 = vmul.f32 %v13779_v60, %v13794_v38  ;;  %v13803_v46 = vld [vmem:[#allocation3 + $0xd1] sm:$0xff]  ;;  %v13820_v60 = vld [vmem:[#allocation3 + $0xe9] sm:$0xff] }
 0x3e1   : > { %10555 = vmatprep.mubr.msk.f32.mxu1 %vm311_vm0, %v5727_v12  ;;  %v13787_v12 = vpop.permute.xlu1 %5676  ;;  %15071 = vst [vmem:[#allocation135_spill] sm:$0xff] %v13803_v46 }
 0x3e2   : > { %15068 = vst [vmem:[#allocation132_spill] sm:$0xff] %v13787_v12 }
 0x3e4   : > { %10556 = vmatmul.mubr.msk.f32.gmra.mrb[18].mxu1 %vm311_vm0, %v5728_v25  ;;  %v13797_v25 = vpop.permute.xlu0 %5681 }
 0x3e5   : > { %10558 = vmatprep.mubr.msk.f32.mxu1 %vm311_vm0, %v5729_v47  ;;  %15070 = vst [vmem:[#allocation134_spill] sm:$0xff] %v13797_v25  ;;  %v5732_v47 = vmul.f32 %v13770_v8, %v13791_v16  ;;  %v13808_v45 = vpop.permute.xlu1 %5686  ;;  %v13815_v8 = vld [vmem:[#allocation3 + $0xe1] sm:$0xff] }
 0x3e6   : > { %15072 = vst [vmem:[#allocation136_spill] sm:$0xff] %v13808_v45  ;;  %15073 = vst [vmem:[#allocation137_spill] sm:$0xff] %v13815_v8 }
 0x3e8   : > { %10559 = vmatmul.mubr.msk.f32.gmra.mrb[20].mxu1 %vm311_vm0, %v5730_v61  ;;  %v5735_v61 = vmul.f32 %v13797_v25, %v13806_v54  ;;  %v13817_v16 = vpop.permute.xlu0 %5691  ;;  %v13832_v25 = vld [vmem:[#allocation3 + $0xf9] sm:$0xff] }
 0x3e9   : > { %10561 = vmatprep.mubr.msk.f32.mxu1 %vm311_vm0, %v5731_v23  ;;  %v5734_v23 = vmul.f32 %v13787_v12, %v13803_v46  ;;  %15074 = vst [vmem:[#allocation138_spill] sm:$0xff] %v13817_v16  ;;  %v5737_v12 = vmul.f32 %v13817_v16, %v13820_v60  ;;  %v13829_v46 = vld [vmem:[#allocation3 + $0xf1] sm:$0xff] }
 0x3ec   : > { %10562 = vmatmul.mubr.msk.f32.gmra.mrb[22].mxu1 %vm311_vm0, %v5732_v47  ;;  %v5736_v47 = vmul.f32 %v13808_v45, %v13815_v8  ;;  %v13841_v8 = vld [vmem:[#allocation3 + $0x101] sm:$0xff] }
 0x3ed   : > { %10564 = vmatprep.mubr.msk.f32.mxu1 %vm311_vm0, %v5733_v49  ;;  %v13825_v49 = vpop.permute.xlu1 %5696 }
 0x3f0   : > { %10565 = vmatmul.mubr.msk.f32.gmra.mrb[24].mxu1 %vm311_vm0, %v5734_v23  ;;  %v13835_v23 = vpop.permute.xlu0 %5701 }
 0x3f1   : > { %10567 = vmatprep.mubr.msk.f32.mxu1 %vm311_vm0, %v5735_v61  ;;  %15075 = vst [vmem:[#allocation139_spill] sm:$0xff] %v13835_v23  ;;  %v5738_v61 = vmul.f32 %v13825_v49, %v13829_v46  ;;  %v5739_v45 = vmul.f32 %v13835_v23, %v13832_v25  ;;  %v13844_v16 = vpop.permute.xlu1 %5706  ;;  %v6132_v23 = vmul.f32 %v13222_v29, %v13449_v21 }
 0x3f2   : > { %v6135_v21 = vmul.f32 %v13252_v32, %v13475_v48 }
 0x3f4   : > { %10568 = vmatmul.mubr.msk.f32.gmra.mrb[26].mxu1 %vm311_vm0, %v5736_v47  ;;  %v5740_v47 = vmul.f32 %v13844_v16, %v13841_v8 }
 0x3f5   : > { %10570 = vmatprep.mubr.msk.f32.mxu1 %vm311_vm0, %v5737_v12  ;;  %v6131_v12 = vmul.f32 %v13218_v24, %v13441_v51  ;;  %v6134_v51 = vmul.f32 %v13240_v4, %v13470_v19 }
 0x3f8   : > { %10571 = vmatmul.mubr.msk.f32.gmra.mrb[28].mxu1 %vm311_vm0, %v5738_v61  ;;  %v6133_v61 = vmul.f32 %v13226_v15, %v13457_v18 }
 0x3f9   : > { %10573 = vmatprep.mubr.msk.f32.mxu1 %vm311_vm0, %v5739_v45  ;;  %v13860_v45 = vld [vmem:[%s14492_s3 + $0x14] sm:$0xf] }
 0x3fc   : > { %10574 = vmatmul.mubr.msk.f32.gmra.mrb[30].mxu1 %vm311_vm0, %v5740_v47  ;;  %v6138_v47 = vmul.f32 %v13284_v50, %v13496_v27 }
 0x3fd   : > { %10578 = vmatprep.mubr.msk.f32.mxu1 %vm311_vm0, %v6131_v12  ;;  %v6139_v12 = vmul.f32 %v13296_v0, %v13499_v26 }
 0x400   : > { %10579 = vmatmul.mubr.msk.f32.vlgmr.msra.gmra.mrb[0].mxu1 %vm311_vm0, %v6132_v23  ;;  %v6136_v23 = vmul.f32 %v13260_v56, %v13484_v37 }
 0x401   : > { %10627 = vmatpush3.msk.msra.mxu1 %vm770_vm1, %v13659_v40  ;;  %10581 = vmatprep.mubr.msk.f32.mxu1 %vm311_vm0, %v6133_v61  ;;  %v6137_v40 = vmul.f32 %v13270_v57, %v13487_v30  ;;  %v6140_v61 = vmul.f32 %v13304_v42, %v13508_v14 }
 0x402   : > { %10676 = vmatprep.subr.msk.mxu1 %vm770_vm1, %v13860_v45 }
 0x404   : > { %10582 = vmatmul.mubr.msk.f32.gmra.mrb[2].mxu1 %vm311_vm0, %v6134_v51  ;;  %v6141_v51 = vmul.f32 %v13314_v5, %v13513_v17 }
 0x405   : > { %10584 = vmatprep.mubr.msk.f32.mxu1 %vm311_vm0, %v6135_v21  ;;  %v6142_v21 = vmul.f32 %v13328_v2, %v13522_v44 }
 0x408   : > { %10585 = vmatmul.mubr.msk.f32.gmra.mrb[4].mxu1 %vm311_vm0, %v6136_v23  ;;  %v6143_v23 = vmul.f32 %v13340_v59, %v13525_v9 }
 0x409   : > { %10587 = vmatprep.mubr.msk.f32.mxu1 %vm311_vm0, %v6137_v40  ;;  %v6144_v40 = vmul.f32 %v13348_v41, %v13534_v28 }
 0x40c   : > { %10588 = vmatmul.mubr.msk.f32.gmra.mrb[6].mxu1 %vm311_vm0, %v6138_v47  ;;  %v6145_v47 = vmul.f32 %v13358_v1, %v13537_v35 }
 0x40d   : > { %10590 = vmatprep.mubr.msk.f32.mxu1 %vm311_vm0, %v6139_v12  ;;  %v6146_v12 = vmul.f32 %v13372_v7, %v13546_v39  ;;  %v15080_v7 = vld [vmem:[#allocation75_spill] sm:$0xff] }
 0x410   : > { %10591 = vmatmul.mubr.msk.f32.gmra.mrb[8].mxu1 %vm311_vm0, %v6140_v61  ;;  %v6147_v61 = vmul.f32 %v13384_v11, %v13551_v3 }
 0x411   : > { %10593 = vmatprep.mubr.msk.f32.mxu1 %vm311_vm0, %v6141_v51  ;;  %v6148_v51 = vmul.f32 %v13392_v63, %v13560_v33  ;;  %v15081_v33 = vld [vmem:[#allocation46_spill] sm:$0xff] }
 0x414   : > { %10594 = vmatmul.mubr.msk.f32.gmra.mrb[10].mxu1 %vm311_vm0, %v6142_v21  ;;  %v6149_v21 = vmul.f32 %v13402_v22, %v13563_v52  ;;  %v6153_v22 = vmul.f32 %v15081_v33, %v15080_v7  ;;  %v15092_v7 = vld [vmem:[#allocation49_spill] sm:$0xff] }
 0x415   : > { %10596 = vmatprep.mubr.msk.f32.mxu1 %vm311_vm0, %v6143_v23  ;;  %v15076_v23 = vld [vmem:[#allocation40_spill] sm:$0xff] }
 0x418   : > { %10597 = vmatmul.mubr.msk.f32.gmra.mrb[12].mxu1 %vm311_vm0, %v6144_v40  ;;  %v6150_v40 = vmul.f32 %v15076_v23, %v13572_v13  ;;  %v15084_v13 = vld [vmem:[#allocation45_spill] sm:$0xff] }
 0x419   : > { %10599 = vmatprep.mubr.msk.f32.mxu1 %vm311_vm0, %v6145_v47  ;;  %v15077_v47 = vld [vmem:[#allocation42_spill] sm:$0xff] }
 0x41a   : > { %v6151_v11 = vmul.f32 %v15077_v47, %v13575_v62  ;;  %v6155_v47 = vmul.f32 %v15084_v13, %v13601_v53  ;;  %v15088_v62 = vld [vmem:[#allocation50_spill] sm:$0xff] }
 0x41c   : > { %10600 = vmatmul.mubr.msk.f32.gmra.mrb[14].mxu1 %vm311_vm0, %v6146_v12  ;;  %v15078_v12 = vld [vmem:[#allocation71_spill] sm:$0xff] }
 0x41d   : > { %10602 = vmatprep.mubr.msk.f32.mxu1 %vm311_vm0, %v6147_v61  ;;  %v15079_v61 = vld [vmem:[#allocation41_spill] sm:$0xff] }
 0x41e   : > { %v6152_v63 = vmul.f32 %v15079_v61, %v15078_v12  ;;  %v15087_v12 = vld [vmem:[#allocation81_spill] sm:$0xff] }
 0x41f   : > { %v6157_v33 = vmul.f32 %v15088_v62, %v15087_v12  ;;  %v15095_v62 = vld [vmem:[#allocation54_spill] sm:$0xff]  ;;  %v13952_v12 = vld [vmem:[#allocation3 + $0x10f] sm:$0xff] }
 0x420   : > { %10603 = vmatmul.mubr.msk.f32.gmra.mrb[16].mxu1 %vm311_vm0, %v6148_v51  ;;  %v15082_v51 = vld [vmem:[#allocation79_spill] sm:$0xff] }
 0x421   : > { %10605 = vmatprep.mubr.msk.f32.mxu1 %vm311_vm0, %v6149_v21  ;;  %v15083_v21 = vld [vmem:[#allocation48_spill] sm:$0xff] }
 0x422   : > { %v6154_v23 = vmul.f32 %v15083_v21, %v15082_v51  ;;  %v15091_v51 = vld [vmem:[#allocation89_spill] sm:$0xff] }
 0x423   : > { %v6159_v13 = vmul.f32 %v15092_v7, %v15091_v51  ;;  %v15142_v7 = vld [vmem:[#allocation115_spill] sm:$0xff] }
 0x424   : > { %10606 = vmatmul.mubr.msk.f32.gmra.mrb[18].mxu1 %vm311_vm0, %v6150_v40  ;;  %v15086_v40 = vld [vmem:[#allocation51_spill] sm:$0xff] }
 0x425   : > { %10608 = vmatprep.mubr.msk.f32.mxu1 %vm311_vm0, %v6151_v11  ;;  %v15085_v11 = vld [vmem:[#allocation83_spill] sm:$0xff] }
 0x426   : > { %v6156_v61 = vmul.f32 %v15086_v40, %v15085_v11 }
 0x428   : > { %10609 = vmatmul.mubr.msk.f32.gmra.mrb[20].mxu1 %vm311_vm0, %v6152_v63  ;;  %v15089_v63 = vld [vmem:[#allocation85_spill] sm:$0xff] }
 0x429   : > { %10611 = vmatprep.mubr.msk.f32.mxu1 %vm311_vm0, %v6153_v22  ;;  %v15090_v22 = vld [vmem:[#allocation52_spill] sm:$0xff]  ;;  %15096 = vst [vmem:[#allocation85_spill] sm:$0xff] %v13952_v12 }
 0x42a   : > { %v6158_v21 = vmul.f32 %v15090_v22, %v15089_v63  ;;  %v15143_v22 = vld [vmem:[#allocation91_spill] sm:$0xff] }
 0x42c   : > { %10612 = vmatmul.mubr.msk.f32.gmra.mrb[22].mxu1 %vm311_vm0, %v6154_v23  ;;  %v13945_v23 = vld [vmem:[#allocation3 + $0x107] sm:$0xff] }
 0x42d   : > { %10614 = vmatprep.mubr.msk.f32.mxu1 %vm311_vm0, %v6155_v47  ;;  %15093 = vst [vmem:[#allocation83_spill] sm:$0xff] %v13945_v23  ;;  %v15094_v47 = vld [vmem:[#allocation55_spill] sm:$0xff] }
 0x42e   : > { %v6160_v40 = vmul.f32 %v15094_v47, %v13636_v43  ;;  %v15098_v47 = vld [vmem:[#allocation56_spill] sm:$0xff] }
 0x430   : > { %10615 = vmatmul.mubr.msk.f32.gmra.mrb[24].mxu1 %vm311_vm0, %v6156_v61  ;;  %v6161_v61 = vmul.f32 %v13945_v23, %v15095_v62  ;;  %v15107_v62 = vld [vmem:[#allocation78_spill] sm:$0xff] }
 0x431   : > { %10617 = vmatprep.mubr.msk.f32.mxu1 %vm311_vm0, %v6157_v33  ;;  %v6162_v33 = vmul.f32 %v13952_v12, %v13539_v55  ;;  %v15103_v55 = vld [vmem:[#allocation70_spill] sm:$0xff]  ;;  %v15132_v12 = vld [vmem:[#allocation101_spill] sm:$0xff] }
 0x434   : > { %10618 = vmatmul.mubr.msk.f32.gmra.mrb[26].mxu1 %vm311_vm0, %v6158_v21  ;;  %v15097_v21 = vld [vmem:[#allocation58_spill] sm:$0xff] }
 0x435   : > { %10620 = vmatprep.mubr.msk.f32.mxu1 %vm311_vm0, %v6159_v13  ;;  %v9275_v13 = vld [vmem:[%s14492_s3 + $0x18] sm:$0xf] }
 0x438   : > { %10621 = vmatmul.mubr.msk.f32.gmra.mrb[28].mxu1 %vm311_vm0, %v6160_v40  ;;  %v15099_v40 = vld [vmem:[#allocation62_spill] sm:$0xff] }
 0x439   : > { %10623 = vmatprep.mubr.msk.f32.mxu1 %vm311_vm0, %v6161_v61  ;;  %v15100_v61 = vld [vmem:[#allocation60_spill] sm:$0xff] }
 0x43c   : > { %10624 = vmatmul.mubr.msk.f32.gmra.mrb[30].mxu1 %vm311_vm0, %v6162_v33  ;;  %v15101_v33 = vld [vmem:[#allocation66_spill] sm:$0xff] }
 0x43d   : > { %10628 = vmatprep.mubr.msk.f32.mxu1 %vm311_vm0, %v15097_v21  ;;  %v15102_v21 = vld [vmem:[#allocation64_spill] sm:$0xff] }
 0x440   : > { %10629 = vmatmul.mubr.msk.f32.vlgmr.msra.gmra.mrb[0].mxu1 %vm311_vm0, %v15098_v47  ;;  %v15104_v47 = vld [vmem:[#allocation68_spill] sm:$0xff] }
 0x441   : > { %10677 = vmatpush3.msk.msra.mxu1 %vm770_vm1, %v13860_v45  ;;  %10631 = vmatprep.mubr.msk.f32.mxu1 %vm311_vm0, %v15099_v40  ;;  %v15105_v45 = vld [vmem:[#allocation74_spill] sm:$0xff]  ;;  %v15106_v40 = vld [vmem:[#allocation72_spill] sm:$0xff] }
 0x442   : > { %10726 = vmatprep.subr.msk.mxu1 %vm770_vm1, %v9275_v13 }
 0x444   : > { %10632 = vmatmul.mubr.msk.f32.gmra.mrb[2].mxu1 %vm311_vm0, %v15100_v61  ;;  %v15108_v61 = vld [vmem:[#allocation76_spill] sm:$0xff] }
 0x445   : > { %10634 = vmatprep.mubr.msk.f32.mxu1 %vm311_vm0, %v15101_v33  ;;  %v15109_v33 = vld [vmem:[#allocation82_spill] sm:$0xff] }
 0x448   : > { %10635 = vmatmul.mubr.msk.f32.gmra.mrb[4].mxu1 %vm311_vm0, %v15102_v21  ;;  %v15110_v21 = vld [vmem:[#allocation80_spill] sm:$0xff] }
 0x449   : > { %10637 = vmatprep.mubr.msk.f32.mxu1 %vm311_vm0, %v15103_v55  ;;  %v15111_v55 = vld [vmem:[#allocation86_spill] sm:$0xff] }
 0x44c   : > { %10638 = vmatmul.mubr.msk.f32.gmra.mrb[6].mxu1 %vm311_vm0, %v15104_v47  ;;  %v15112_v47 = vld [vmem:[#allocation84_spill] sm:$0xff] }
 0x44d   : > { %10640 = vmatprep.mubr.msk.f32.mxu1 %vm311_vm0, %v15105_v45  ;;  %v15113_v45 = vld [vmem:[#allocation90_spill] sm:$0xff] }
 0x450   : > { %10641 = vmatmul.mubr.msk.f32.gmra.mrb[8].mxu1 %vm311_vm0, %v15106_v40  ;;  %v15114_v40 = vld [vmem:[#allocation88_spill] sm:$0xff] }
 0x451   : > { %10643 = vmatprep.mubr.msk.f32.mxu1 %vm311_vm0, %v15107_v62  ;;  %v15115_v62 = vld [vmem:[#allocation94_spill] sm:$0xff] }
 0x454   : > { %10644 = vmatmul.mubr.msk.f32.gmra.mrb[10].mxu1 %vm311_vm0, %v15108_v61  ;;  %v15116_v61 = vld [vmem:[#allocation92_spill] sm:$0xff] }
 0x455   : > { %10646 = vmatprep.mubr.msk.f32.mxu1 %vm311_vm0, %v15109_v33  ;;  %v15117_v33 = vld [vmem:[#allocation96_spill] sm:$0xff] }
 0x458   : > { %10647 = vmatmul.mubr.msk.f32.gmra.mrb[12].mxu1 %vm311_vm0, %v15110_v21  ;;  %v15118_v21 = vld [vmem:[#allocation102_spill] sm:$0xff] }
 0x459   : > { %10649 = vmatprep.mubr.msk.f32.mxu1 %vm311_vm0, %v15111_v55  ;;  %v15119_v55 = vld [vmem:[#allocation106_spill] sm:$0xff] }
 0x45c   : > { %10650 = vmatmul.mubr.msk.f32.gmra.mrb[14].mxu1 %vm311_vm0, %v15112_v47  ;;  %v15120_v47 = vld [vmem:[#allocation108_spill] sm:$0xff] }
 0x45d   : > { %10652 = vmatprep.mubr.msk.f32.mxu1 %vm311_vm0, %v15113_v45  ;;  %v15121_v45 = vld [vmem:[#allocation39_spill] sm:$0xff] }
 0x460   : > { %10653 = vmatmul.mubr.msk.f32.gmra.mrb[16].mxu1 %vm311_vm0, %v15114_v40  ;;  %v15122_v40 = vld [vmem:[#allocation38_spill] sm:$0xff] }
 0x461   : > { %10655 = vmatprep.mubr.msk.f32.mxu1 %vm311_vm0, %v15115_v62  ;;  %v15123_v62 = vld [vmem:[#allocation37_spill] sm:$0xff] }
 0x464   : > { %10656 = vmatmul.mubr.msk.f32.gmra.mrb[18].mxu1 %vm311_vm0, %v15116_v61  ;;  %v15124_v61 = vld [vmem:[#allocation43_spill] sm:$0xff] }
 0x465   : > { %10658 = vmatprep.mubr.msk.f32.mxu1 %vm311_vm0, %v15117_v33  ;;  %v15125_v33 = vld [vmem:[#allocation44_spill] sm:$0xff] }
 0x468   : > { %10659 = vmatmul.mubr.msk.f32.gmra.mrb[20].mxu1 %vm311_vm0, %v15118_v21  ;;  %v15126_v21 = vld [vmem:[#allocation47_spill] sm:$0xff] }
 0x469   : > { %10661 = vmatprep.mubr.msk.f32.mxu1 %vm311_vm0, %v15119_v55  ;;  %v14025_v55 = vld [vmem:[#allocation3 + $0x108] sm:$0xff] }
 0x46a   : > { %15127 = vst [vmem:[#allocation89_spill] sm:$0xff] %v14025_v55 }
 0x46c   : > { %10662 = vmatmul.mubr.msk.f32.gmra.mrb[22].mxu1 %vm311_vm0, %v15120_v47  ;;  %v14029_v47 = vld [vmem:[#allocation3 + $0x110] sm:$0xff] }
 0x46d   : > { %10664 = vmatprep.mubr.msk.f32.mxu1 %vm311_vm0, %v15121_v45  ;;  %15128 = vst [vmem:[#allocation58_spill] sm:$0xff] %v14029_v47  ;;  %v15129_v45 = vld [vmem:[#allocation113_spill] sm:$0xff] }
 0x470   : > { %10665 = vmatmul.mubr.msk.f32.gmra.mrb[24].mxu1 %vm311_vm0, %v15122_v40  ;;  %v6943_v40 = vmul.f32 %v15129_v45, %v13646_v20  ;;  %v15134_v20 = vld [vmem:[#allocation105_spill] sm:$0xff] }
 0x471   : > { %10667 = vmatprep.mubr.msk.f32.mxu1 %vm311_vm0, %v15123_v62  ;;  %v15130_v62 = vld [vmem:[#allocation97_spill] sm:$0xff] }
 0x472   : > { %v15135_v45 = vld [vmem:[#allocation65_spill] sm:$0xff] }
 0x474   : > { %10668 = vmatmul.mubr.msk.f32.gmra.mrb[26].mxu1 %vm311_vm0, %v15124_v61  ;;  %v15131_v61 = vld [vmem:[#allocation59_spill] sm:$0xff] }
 0x475   : > { %10670 = vmatprep.mubr.msk.f32.mxu1 %vm311_vm0, %v15125_v33  ;;  %v6944_v33 = vmul.f32 %v15131_v61, %v15130_v62  ;;  %v15136_v62 = vld [vmem:[#allocation69_spill] sm:$0xff] }
 0x476   : > { %v15138_v61 = vld [vmem:[#allocation73_spill] sm:$0xff] }
 0x478   : > { %10671 = vmatmul.mubr.msk.f32.gmra.mrb[28].mxu1 %vm311_vm0, %v15126_v21  ;;  %v15133_v21 = vld [vmem:[#allocation63_spill] sm:$0xff] }
 0x479   : > { %10673 = vmatprep.mubr.msk.f32.mxu1 %vm311_vm0, %v14025_v55  ;;  %v6945_v23 = vmul.f32 %v15133_v21, %v15132_v12  ;;  %v14043_v55 = vld [vmem:[%s14492_s3 + $0x1c] sm:$0xf]  ;;  %v6947_v12 = vmul.f32 %v15136_v62, %v13680_v10  ;;  %v15137_v21 = vld [vmem:[#allocation109_spill] sm:$0xff]  ;;  %v6951_v10 = vmul.f32 %v15143_v22, %v15142_v7  ;;  %v15153_v22 = vld [vmem:[#allocation110_spill] sm:$0xff] }
 0x47c   : > { %10674 = vmatmul.mubr.msk.f32.gmra.mrb[30].mxu1 %vm311_vm0, %v14029_v47 }
 0x47d   : > { %10678 = vmatprep.mubr.msk.f32.mxu1 %vm311_vm0, %v6943_v40  ;;  %v6946_v40 = vmul.f32 %v15135_v45, %v15134_v20  ;;  %v15141_v20 = vld [vmem:[#allocation87_spill] sm:$0xff] }
 0x480   : > { %10679 = vmatmul.mubr.msk.f32.vlgmr.msra.gmra.mrb[0].mxu1 %vm311_vm0, %v6944_v33  ;;  %v6948_v33 = vmul.f32 %v15138_v61, %v15137_v21  ;;  %v15146_v61 = vld [vmem:[#allocation93_spill] sm:$0xff] }
 0x481   : > { %10727 = vmatpush3.msk.msra.mxu1 %vm770_vm1, %v9275_v13  ;;  %10681 = vmatprep.mubr.msk.f32.mxu1 %vm311_vm0, %v6945_v23  ;;  %v15139_v13 = vld [vmem:[#allocation77_spill] sm:$0xff]  ;;  %v15140_v23 = vld [vmem:[#allocation111_spill] sm:$0xff] }
 0x482   : > { %10776 = vmatprep.subr.msk.mxu1 %vm770_vm1, %v14043_v55  ;;  %v6949_v47 = vmul.f32 %v15139_v13, %v13692_v34  ;;  %v6950_v45 = vmul.f32 %v15141_v20, %v15140_v23  ;;  %v6953_v34 = vmul.f32 %v15146_v61, %v13718_v58  ;;  %v15149_v20 = vld [vmem:[#allocation103_spill] sm:$0xff] }
 0x483   : > { %v6955_v7 = vmul.f32 %v15149_v20, %v13730_v31 }
 0x484   : > { %10682 = vmatmul.mubr.msk.f32.gmra.mrb[2].mxu1 %vm311_vm0, %v6946_v40  ;;  %v15144_v40 = vld [vmem:[#allocation117_spill] sm:$0xff] }
 0x485   : > { %10684 = vmatprep.mubr.msk.f32.mxu1 %vm311_vm0, %v6947_v12  ;;  %v15145_v12 = vld [vmem:[#allocation95_spill] sm:$0xff] }
 0x486   : > { %v6952_v21 = vmul.f32 %v15145_v12, %v15144_v40  ;;  %v15152_v12 = vld [vmem:[#allocation123_spill] sm:$0xff] }
 0x487   : > { %v6957_v58 = vmul.f32 %v15153_v22, %v15152_v12  ;;  %v15163_v22 = vld [vmem:[#allocation122_spill] sm:$0xff] }
 0x488   : > { %10685 = vmatmul.mubr.msk.f32.gmra.mrb[4].mxu1 %vm311_vm0, %v6948_v33  ;;  %v15148_v33 = vld [vmem:[#allocation99_spill] sm:$0xff] }
 0x489   : > { %10687 = vmatprep.mubr.msk.f32.mxu1 %vm311_vm0, %v6949_v47  ;;  %v15147_v47 = vld [vmem:[#allocation119_spill] sm:$0xff] }
 0x48a   : > { %v6954_v23 = vmul.f32 %v15148_v33, %v15147_v47  ;;  %v15156_v33 = vld [vmem:[#allocation114_spill] sm:$0xff] }
 0x48b   : > { %v6959_v31 = vmul.f32 %v15156_v33, %v13756_v6 }
 0x48c   : > { %10688 = vmatmul.mubr.msk.f32.gmra.mrb[6].mxu1 %vm311_vm0, %v6950_v45  ;;  %v15150_v45 = vld [vmem:[#allocation121_spill] sm:$0xff] }
 0x48d   : > { %10690 = vmatprep.mubr.msk.f32.mxu1 %vm311_vm0, %v6951_v10  ;;  %v15151_v10 = vld [vmem:[#allocation107_spill] sm:$0xff] }
 0x48e   : > { %v6956_v40 = vmul.f32 %v15151_v10, %v15150_v45  ;;  %v15159_v10 = vld [vmem:[#allocation118_spill] sm:$0xff] }
 0x48f   : > { %v6961_v12 = vmul.f32 %v15159_v10, %v13768_v36 }
 0x490   : > { %10691 = vmatmul.mubr.msk.f32.gmra.mrb[8].mxu1 %vm311_vm0, %v6952_v21  ;;  %v15154_v21 = vld [vmem:[#allocation125_spill] sm:$0xff] }
 0x491   : > { %10693 = vmatprep.mubr.msk.f32.mxu1 %vm311_vm0, %v6953_v34  ;;  %v15155_v34 = vld [vmem:[#allocation112_spill] sm:$0xff] }
 0x492   : > { %v6958_v47 = vmul.f32 %v15155_v34, %v15154_v21  ;;  %v15162_v34 = vld [vmem:[#allocation131_spill] sm:$0xff] }
 0x493   : > { %v6963_v6 = vmul.f32 %v15163_v22, %v15162_v34 }
 0x494   : > { %10694 = vmatmul.mubr.msk.f32.gmra.mrb[10].mxu1 %vm311_vm0, %v6954_v23  ;;  %v15157_v23 = vld [vmem:[#allocation127_spill] sm:$0xff] }
 0x495   : > { %10696 = vmatprep.mubr.msk.f32.mxu1 %vm311_vm0, %v6955_v7  ;;  %v15158_v7 = vld [vmem:[#allocation116_spill] sm:$0xff] }
 0x496   : > { %v6960_v45 = vmul.f32 %v15158_v7, %v15157_v23  ;;  %v15166_v7 = vld [vmem:[#allocation126_spill] sm:$0xff] }
 0x497   : > { %v6965_v36 = vmul.f32 %v15166_v7, %v13794_v38 }
 0x498   : > { %10697 = vmatmul.mubr.msk.f32.gmra.mrb[12].mxu1 %vm311_vm0, %v6956_v40  ;;  %v15160_v40 = vld [vmem:[#allocation129_spill] sm:$0xff] }
 0x499   : > { %10699 = vmatprep.mubr.msk.f32.mxu1 %vm311_vm0, %v6957_v58  ;;  %v15161_v58 = vld [vmem:[#allocation120_spill] sm:$0xff] }
 0x49a   : > { %v6962_v21 = vmul.f32 %v15161_v58, %v15160_v40  ;;  %v15169_v58 = vld [vmem:[#allocation130_spill] sm:$0xff] }
 0x49b   : > { %v6967_v34 = vmul.f32 %v15169_v58, %v13806_v54 }
 0x49c   : > { %10700 = vmatmul.mubr.msk.f32.gmra.mrb[14].mxu1 %vm311_vm0, %v6958_v47  ;;  %v15164_v47 = vld [vmem:[#allocation133_spill] sm:$0xff] }
 0x49d   : > { %10702 = vmatprep.mubr.msk.f32.mxu1 %vm311_vm0, %v6959_v31  ;;  %v15165_v31 = vld [vmem:[#allocation124_spill] sm:$0xff] }
 0x49e   : > { %v6964_v23 = vmul.f32 %v15165_v31, %v15164_v47  ;;  %v15172_v31 = vld [vmem:[#allocation134_spill] sm:$0xff] }
 0x49f   : > { %v6969_v38 = vmul.f32 %v15172_v31, %v13820_v60  ;;  %v15175_v60 = vld [vmem:[#allocation139_spill] sm:$0xff] }
 0x4a0   : > { %10703 = vmatmul.mubr.msk.f32.gmra.mrb[16].mxu1 %vm311_vm0, %v6960_v45  ;;  %v15167_v45 = vld [vmem:[#allocation135_spill] sm:$0xff] }
 0x4a1   : > { %10705 = vmatprep.mubr.msk.f32.mxu1 %vm311_vm0, %v6961_v12  ;;  %v15168_v12 = vld [vmem:[#allocation128_spill] sm:$0xff] }
 0x4a2   : > { %v6966_v40 = vmul.f32 %v15168_v12, %v15167_v45  ;;  %v15174_v45 = vld [vmem:[#allocation138_spill] sm:$0xff] }
 0x4a3   : > { %v6971_v54 = vmul.f32 %v15174_v45, %v13832_v25  ;;  %v7365_v25 = vmul.f32 %v13218_v24, %v13457_v18  ;;  %v7368_v24 = vmul.f32 %v13240_v4, %v13484_v37  ;;  %v7372_v4 = vmul.f32 %v13284_v50, %v13508_v14  ;;  %v15182_v14 = vld [vmem:[#allocation36_spill] sm:$0xff]  ;;  %v15186_v37 = vld [vmem:[#allocation42_spill] sm:$0xff]  ;;  %v15187_v18 = vld [vmem:[#allocation79_spill] sm:$0xff] }
 0x4a4   : > { %10706 = vmatmul.mubr.msk.f32.gmra.mrb[18].mxu1 %vm311_vm0, %v6962_v21  ;;  %v15170_v21 = vld [vmem:[#allocation137_spill] sm:$0xff]  ;;  %v7376_v50 = vmul.f32 %v13328_v2, %v13534_v28  ;;  %v15178_v28 = vld [vmem:[#allocation100_spill] sm:$0xff] }
 0x4a5   : > { %10708 = vmatprep.mubr.msk.f32.mxu1 %vm311_vm0, %v6963_v6  ;;  %v15171_v6 = vld [vmem:[#allocation132_spill] sm:$0xff] }
 0x4a6   : > { %v6968_v47 = vmul.f32 %v15171_v6, %v15170_v21 }
 0x4a8   : > { %10709 = vmatmul.mubr.msk.f32.gmra.mrb[20].mxu1 %vm311_vm0, %v6964_v23  ;;  %v15173_v23 = vld [vmem:[#allocation136_spill] sm:$0xff] }
 0x4a9   : > { %10711 = vmatprep.mubr.msk.f32.mxu1 %vm311_vm0, %v6965_v36  ;;  %v6970_v36 = vmul.f32 %v15173_v23, %v13829_v46 }
 0x4ac   : > { %10712 = vmatmul.mubr.msk.f32.gmra.mrb[22].mxu1 %vm311_vm0, %v6966_v40  ;;  %v14127_v40 = vld [vmem:[#allocation3 + $0x109] sm:$0xff] }
 0x4ad   : > { %10714 = vmatprep.mubr.msk.f32.mxu1 %vm311_vm0, %v6967_v34  ;;  %v6972_v34 = vmul.f32 %v13825_v49, %v13841_v8  ;;  %v6973_v21 = vmul.f32 %v14127_v40, %v15175_v60  ;;  %v7366_v8 = vmul.f32 %v13222_v29, %v13470_v19  ;;  %v7369_v29 = vmul.f32 %v13252_v32, %v13487_v30  ;;  %v15185_v30 = vld [vmem:[#allocation75_spill] sm:$0xff]  ;;  %v15188_v19 = vld [vmem:[#allocation41_spill] sm:$0xff] }
 0x4ae   : > { %v7373_v32 = vmul.f32 %v13296_v0, %v13513_v17  ;;  %v7377_v0 = vmul.f32 %v13340_v59, %v13537_v35  ;;  %v7381_v35 = vmul.f32 %v15178_v28, %v13563_v52  ;;  %v15179_v59 = vld [vmem:[#allocation61_spill] sm:$0xff]  ;;  %v15180_v17 = vld [vmem:[#allocation104_spill] sm:$0xff]  ;;  %v7385_v52 = vmul.f32 %v15186_v37, %v15185_v30  ;;  %v7770_v37 = vld [vmem:[#allocation3 + $0xa0] sm:$0xff] }
 0x4af   : > { %v7757_v28 = vld [vmem:[#allocation3 + $0x38] sm:$0xff] }
 0x4b0   : > { %10715 = vmatmul.mubr.msk.f32.gmra.mrb[24].mxu1 %vm311_vm0, %v6968_v47  ;;  %v14134_v47 = vld [vmem:[#allocation3 + $0x111] sm:$0xff] }
 0x4b1   : > { %10717 = vmatprep.mubr.msk.f32.mxu1 %vm311_vm0, %v6969_v38  ;;  %v6974_v46 = vmul.f32 %v14134_v47, %v13844_v16  ;;  %v7367_v38 = vmul.f32 %v13226_v15, %v13475_v48  ;;  %v7370_v15 = vmul.f32 %v13260_v56, %v13496_v27  ;;  %v7371_v48 = vmul.f32 %v13270_v57, %v13499_v26  ;;  %v15184_v26 = vld [vmem:[#allocation40_spill] sm:$0xff]  ;;  %v7769_v30 = vld [vmem:[#allocation3 + $0x98] sm:$0xff] }
 0x4b2   : > { %v7374_v56 = vmul.f32 %v13304_v42, %v13522_v44  ;;  %v7375_v57 = vmul.f32 %v13314_v5, %v13525_v9  ;;  %v7378_v42 = vmul.f32 %v13348_v41, %v13546_v39  ;;  %v7379_v5 = vmul.f32 %v13358_v1, %v13551_v3  ;;  %v15176_v9 = vld [vmem:[#allocation57_spill] sm:$0xff]  ;;  %v15177_v44 = vld [vmem:[#allocation98_spill] sm:$0xff]  ;;  %v15181_v41 = vld [vmem:[#allocation67_spill] sm:$0xff] }
 0x4b3   : > { %v7380_v2 = vmul.f32 %v15177_v44, %v15176_v9  ;;  %v7382_v39 = vmul.f32 %v15180_v17, %v15179_v59  ;;  %v7383_v3 = vmul.f32 %v15182_v14, %v15181_v41  ;;  %v15183_v1 = vld [vmem:[#allocation71_spill] sm:$0xff]  ;;  %v15201_v9 = vld [vmem:[#allocation53_spill] sm:$0xff]  ;;  %v7760_v17 = vld [vmem:[#allocation3 + $0x50] sm:$0xff] }
 0x4b4   : > { %10718 = vmatmul.mubr.msk.f32.gmra.mrb[26].mxu1 %vm311_vm0, %v6970_v36  ;;  %v14151_v36 = vld [vmem:[%s14492_s3 + $0x20] sm:$0xf]  ;;  %v7384_v27 = vmul.f32 %v15184_v26, %v15183_v1  ;;  %v7755_v44 = vld [vmem:[#allocation3 + $0x28] sm:$0xff]  ;;  %v7762_v41 = vld [vmem:[#allocation3 + $0x60] sm:$0xff] }
 0x4b5   : > { %10720 = vmatprep.mubr.msk.f32.mxu1 %vm311_vm0, %v6971_v54  ;;  %v15189_v54 = vld [vmem:[#allocation46_spill] sm:$0xff]  ;;  %v7759_v59 = vld [vmem:[#allocation3 + $0x48] sm:$0xff] }
 0x4b6   : > { %v7763_v14 = vld [vmem:[#allocation3 + $0x68] sm:$0xff]  ;;  %v7766_v1 = vld [vmem:[#allocation3 + $0x80] sm:$0xff] }
 0x4b7   : > { %v7767_v26 = vld [vmem:[#allocation3 + $0x88] sm:$0xff] }
 0x4b8   : > { %10721 = vmatmul.mubr.msk.f32.gmra.mrb[28].mxu1 %vm311_vm0, %v6972_v34  ;;  %v7387_v34 = vmul.f32 %v15189_v54, %v13601_v53  ;;  %v7775_v54 = vld [vmem:[#allocation3 + $0xc8] sm:$0xff] }
 0x4b9   : > { %10723 = vmatprep.mubr.msk.f32.mxu1 %vm311_vm0, %v6973_v21  ;;  %v15190_v21 = vld [vmem:[#allocation48_spill] sm:$0xff] }
 0x4bc   : > { %10724 = vmatmul.mubr.msk.f32.gmra.mrb[30].mxu1 %vm311_vm0, %v6974_v46  ;;  %v7388_v46 = vmul.f32 %v15190_v21, %v15085_v11  ;;  %v7777_v21 = vld [vmem:[#allocation3 + $0xd8] sm:$0xff] }
 0x4bd   : > { %10728 = vmatprep.mubr.msk.f32.mxu1 %vm311_vm0, %v7365_v25  ;;  %v15191_v25 = vld [vmem:[#allocation81_spill] sm:$0xff] }
 0x4c0   : > { %10729 = vmatmul.mubr.msk.f32.vlgmr.msra.gmra.mrb[0].mxu1 %vm311_vm0, %v7366_v8  ;;  %v15192_v8 = vld [vmem:[#allocation45_spill] sm:$0xff] }
 0x4c1   : > { %10777 = vmatpush3.msk.msra.mxu1 %vm770_vm1, %v14043_v55  ;;  %10731 = vmatprep.mubr.msk.f32.mxu1 %vm311_vm0, %v7367_v38  ;;  %v7386_v55 = vmul.f32 %v15188_v19, %v15187_v18  ;;  %v7389_v38 = vmul.f32 %v15192_v8, %v15191_v25  ;;  %v7772_v18 = vld [vmem:[#allocation3 + $0xb0] sm:$0xff]  ;;  %v7773_v19 = vld [vmem:[#allocation3 + $0xb8] sm:$0xff]  ;;  %v7779_v25 = vld [vmem:[#allocation3 + $0xe8] sm:$0xff] }
 0x4c2   : > { %10826 = vmatprep.subr.msk.mxu1 %vm770_vm1, %v14151_v36  ;;  %v7780_v8 = vld [vmem:[#allocation3 + $0xf0] sm:$0xff] }
 0x4c4   : > { %10732 = vmatmul.mubr.msk.f32.gmra.mrb[2].mxu1 %vm311_vm0, %v7368_v24  ;;  %v15193_v24 = vld [vmem:[#allocation51_spill] sm:$0xff] }
 0x4c5   : > { %10734 = vmatprep.mubr.msk.f32.mxu1 %vm311_vm0, %v7369_v29  ;;  %v7390_v29 = vmul.f32 %v15193_v24, %v15089_v63  ;;  %v15199_v63 = vld [vmem:[#allocation85_spill] sm:$0xff]  ;;  %v7782_v24 = vld [vmem:[#allocation3 + $0x100] sm:$0xff] }
 0x4c8   : > { %10735 = vmatmul.mubr.msk.f32.gmra.mrb[4].mxu1 %vm311_vm0, %v7370_v15  ;;  %v15194_v15 = vld [vmem:[#allocation50_spill] sm:$0xff] }
 0x4c9   : > { %10737 = vmatprep.mubr.msk.f32.mxu1 %vm311_vm0, %v7371_v48  ;;  %v7391_v53 = vmul.f32 %v15194_v15, %v15091_v51  ;;  %v15195_v48 = vld [vmem:[#allocation52_spill] sm:$0xff]  ;;  %v15200_v51 = vld [vmem:[#allocation54_spill] sm:$0xff]  ;;  %v7785_v15 = vld [vmem:[#allocation3 + $0x118] sm:$0xff] }
 0x4ca   : > { %v7392_v11 = vmul.f32 %v15195_v48, %v13636_v43  ;;  %v8145_v48 = vld [vmem:[#allocation3 + $0x29] sm:$0xff] }
 0x4cc   : > { %10738 = vmatmul.mubr.msk.f32.gmra.mrb[6].mxu1 %vm311_vm0, %v7372_v4  ;;  %v15196_v4 = vld [vmem:[#allocation49_spill] sm:$0xff] }
 0x4cd   : > { %10740 = vmatprep.mubr.msk.f32.mxu1 %vm311_vm0, %v7373_v32  ;;  %v15197_v32 = vld [vmem:[#allocation83_spill] sm:$0xff] }
 0x4d0   : > { %10741 = vmatmul.mubr.msk.f32.gmra.mrb[8].mxu1 %vm311_vm0, %v7374_v56  ;;  %v7393_v56 = vmul.f32 %v15197_v32, %v15196_v4  ;;  %v15204_v4 = vld [vmem:[#allocation113_spill] sm:$0xff] }
 0x4d1   : > { %10743 = vmatprep.mubr.msk.f32.mxu1 %vm311_vm0, %v7375_v57  ;;  %v7363_v57 = vld [vmem:[#allocation3 + $0x117] sm:$0xff]  ;;  %v8177_v32 = vmul.f32 %v8145_v48, %v15204_v4 }
 0x4d2   : > { %v15216_v48 = vld [vmem:[#allocation116_spill] sm:$0xff] }
 0x4d4   : > { %10744 = vmatmul.mubr.msk.f32.gmra.mrb[10].mxu1 %vm311_vm0, %v7376_v50  ;;  %v15198_v50 = vld [vmem:[#allocation55_spill] sm:$0xff] }
 0x4d5   : > { %10746 = vmatprep.mubr.msk.f32.mxu1 %vm311_vm0, %v7377_v0  ;;  %v7394_v0 = vmul.f32 %v15199_v63, %v15198_v50  ;;  %v15205_v50 = vld [vmem:[#allocation59_spill] sm:$0xff] }
 0x4d8   : > { %10747 = vmatmul.mubr.msk.f32.gmra.mrb[12].mxu1 %vm311_vm0, %v7378_v42  ;;  %v7364_v42 = vld [vmem:[#allocation3 + $0x11f] sm:$0xff] }
 0x4d9   : > { %10749 = vmatprep.mubr.msk.f32.mxu1 %vm311_vm0, %v7379_v5  ;;  %v7395_v5 = vmul.f32 %v7363_v57, %v15200_v51  ;;  %v7396_v43 = vmul.f32 %v7364_v42, %v15201_v9  ;;  %v8147_v57 = vld [vmem:[#allocation3 + $0x39] sm:$0xff]  ;;  %v8148_v51 = vld [vmem:[#allocation3 + $0x41] sm:$0xff] }
 0x4da   : > { %v15207_v9 = vld [vmem:[#allocation65_spill] sm:$0xff] }
 0x4dc   : > { %10750 = vmatmul.mubr.msk.f32.gmra.mrb[14].mxu1 %vm311_vm0, %v7380_v2  ;;  %v7756_v2 = vld [vmem:[#allocation3 + $0x30] sm:$0xff] }
 0x4dd   : > { %10752 = vmatprep.mubr.msk.f32.mxu1 %vm311_vm0, %v7381_v35  ;;  %v7758_v35 = vld [vmem:[#allocation3 + $0x40] sm:$0xff] }
 0x4e0   : > { %10753 = vmatmul.mubr.msk.f32.gmra.mrb[16].mxu1 %vm311_vm0, %v7382_v39  ;;  %v7761_v39 = vld [vmem:[#allocation3 + $0x58] sm:$0xff] }
 0x4e1   : > { %10755 = vmatprep.mubr.msk.f32.mxu1 %vm311_vm0, %v7383_v3  ;;  %v7765_v3 = vld [vmem:[#allocation3 + $0x78] sm:$0xff] }
 0x4e4   : > { %10756 = vmatmul.mubr.msk.f32.gmra.mrb[18].mxu1 %vm311_vm0, %v7384_v27  ;;  %v7768_v27 = vld [vmem:[#allocation3 + $0x90] sm:$0xff] }
 0x4e5   : > { %10758 = vmatprep.mubr.msk.f32.mxu1 %vm311_vm0, %v7385_v52  ;;  %v7771_v52 = vld [vmem:[#allocation3 + $0xa8] sm:$0xff] }
 0x4e8   : > { %10759 = vmatmul.mubr.msk.f32.gmra.mrb[20].mxu1 %vm311_vm0, %v7386_v55  ;;  %v7774_v55 = vld [vmem:[#allocation3 + $0xc0] sm:$0xff] }
 0x4e9   : > { %10761 = vmatprep.mubr.msk.f32.mxu1 %vm311_vm0, %v7387_v34  ;;  %v7776_v34 = vld [vmem:[#allocation3 + $0xd0] sm:$0xff] }
 0x4ec   : > { %10762 = vmatmul.mubr.msk.f32.gmra.mrb[22].mxu1 %vm311_vm0, %v7388_v46  ;;  %v7778_v46 = vld [vmem:[#allocation3 + $0xe0] sm:$0xff] }
 0x4ed   : > { %10764 = vmatprep.mubr.msk.f32.mxu1 %vm311_vm0, %v7389_v38  ;;  %v7781_v38 = vld [vmem:[#allocation3 + $0xf8] sm:$0xff] }
 0x4f0   : > { %10765 = vmatmul.mubr.msk.f32.gmra.mrb[24].mxu1 %vm311_vm0, %v7390_v29  ;;  %v15202_v29 = vld [vmem:[#allocation89_spill] sm:$0xff] }
 0x4f1   : > { %10767 = vmatprep.mubr.msk.f32.mxu1 %vm311_vm0, %v7391_v53  ;;  %v15203_v53 = vld [vmem:[#allocation58_spill] sm:$0xff] }
 0x4f4   : > { %10768 = vmatmul.mubr.msk.f32.gmra.mrb[26].mxu1 %vm311_vm0, %v7392_v11  ;;  %v7786_v11 = vld [vmem:[#allocation3 + $0x120] sm:$0xff] }
 0x4f5   : > { %10770 = vmatprep.mubr.msk.f32.mxu1 %vm311_vm0, %v7393_v56  ;;  %v8146_v56 = vld [vmem:[#allocation3 + $0x31] sm:$0xff] }
 0x4f6   : > { %v8178_v63 = vmul.f32 %v8146_v56, %v15205_v50  ;;  %v8165_v56 = vld [vmem:[#allocation3 + $0xc9] sm:$0xff] }
 0x4f8   : > { %10771 = vmatmul.mubr.msk.f32.gmra.mrb[28].mxu1 %vm311_vm0, %v7394_v0  ;;  %v15206_v0 = vld [vmem:[#allocation63_spill] sm:$0xff] }
 0x4f9   : > { %10773 = vmatprep.mubr.msk.f32.mxu1 %vm311_vm0, %v7395_v5  ;;  %v8179_v42 = vmul.f32 %v8147_v57, %v15206_v0  ;;  %v8149_v5 = vld [vmem:[#allocation3 + $0x49] sm:$0xff]  ;;  %v8167_v0 = vld [vmem:[#allocation3 + $0xd9] sm:$0xff] }
 0x4fa   : > { %v15217_v57 = vld [vmem:[#allocation120_spill] sm:$0xff] }
 0x4fc   : > { %10774 = vmatmul.mubr.msk.f32.gmra.mrb[30].mxu1 %vm311_vm0, %v7396_v43  ;;  %v8180_v43 = vmul.f32 %v8148_v51, %v15207_v9  ;;  %v8169_v9 = vld [vmem:[#allocation3 + $0xe9] sm:$0xff] }
 0x4fd   : > { %10778 = vmatprep.mubr.msk.f32.mxu1 %vm311_vm0, %v7755_v44  ;;  %v8181_v44 = vmul.f32 %v8149_v5, %v15136_v62  ;;  %v8168_v5 = vld [vmem:[#allocation3 + $0xe1] sm:$0xff] }
 0x500   : > { %10779 = vmatmul.mubr.msk.f32.vlgmr.msra.gmra.mrb[0].mxu1 %vm311_vm0, %v7756_v2  ;;  %v8150_v2 = vld [vmem:[#allocation3 + $0x51] sm:$0xff] }
 0x501   : > { %10827 = vmatpush3.msk.msra.mxu1 %vm770_vm1, %v14151_v36  ;;  %10781 = vmatprep.mubr.msk.f32.mxu1 %vm311_vm0, %v7757_v28  ;;  %v7764_v36 = vld [vmem:[#allocation3 + $0x70] sm:$0xff]  ;;  %v8151_v28 = vld [vmem:[#allocation3 + $0x59] sm:$0xff] }
 0x504   : > { %10782 = vmatmul.mubr.msk.f32.gmra.mrb[2].mxu1 %vm311_vm0, %v7758_v35  ;;  %v15208_v35 = vld [vmem:[#allocation73_spill] sm:$0xff] }
 0x505   : > { %10784 = vmatprep.mubr.msk.f32.mxu1 %vm311_vm0, %v7759_v59  ;;  %v8182_v59 = vmul.f32 %v8150_v2, %v15208_v35  ;;  %v8171_v2 = vld [vmem:[#allocation3 + $0xf9] sm:$0xff]  ;;  %v8172_v35 = vld [vmem:[#allocation3 + $0x101] sm:$0xff] }
 0x508   : > { %10785 = vmatmul.mubr.msk.f32.gmra.mrb[4].mxu1 %vm311_vm0, %v7760_v17  ;;  %v8183_v17 = vmul.f32 %v8151_v28, %v15139_v13 }
 0x509   : > { %10787 = vmatprep.mubr.msk.f32.mxu1 %vm311_vm0, %v7761_v39  ;;  %v8152_v39 = vld [vmem:[#allocation3 + $0x61] sm:$0xff] }
 0x50c   : > { %10788 = vmatmul.mubr.msk.f32.gmra.mrb[6].mxu1 %vm311_vm0, %v7762_v41  ;;  %v8153_v41 = vld [vmem:[#allocation3 + $0x69] sm:$0xff] }
 0x50d   : > { %10790 = vmatprep.mubr.msk.f32.mxu1 %vm311_vm0, %v7763_v14  ;;  %v15209_v14 = vld [vmem:[#allocation87_spill] sm:$0xff] }
 0x510   : > { %10791 = vmatmul.mubr.msk.f32.gmra.mrb[8].mxu1 %vm311_vm0, %v7764_v36  ;;  %v8184_v36 = vmul.f32 %v8152_v39, %v15209_v14  ;;  %v15219_v14 = vld [vmem:[#allocation5_spill] sm:$0xff] }
 0x511   : > { %10793 = vmatprep.mubr.msk.f32.mxu1 %vm311_vm0, %v7765_v3  ;;  %v15210_v3 = vld [vmem:[#allocation91_spill] sm:$0xff] }
 0x512   : > { %v8185_v62 = vmul.f32 %v8153_v41, %v15210_v3 }
 0x514   : > { %10794 = vmatmul.mubr.msk.f32.gmra.mrb[10].mxu1 %vm311_vm0, %v7766_v1  ;;  %v8154_v1 = vld [vmem:[#allocation3 + $0x71] sm:$0xff] }
 0x515   : > { %10796 = vmatprep.mubr.msk.f32.mxu1 %vm311_vm0, %v7767_v26  ;;  %v8155_v26 = vld [vmem:[#allocation3 + $0x79] sm:$0xff] }
 0x516   : > { %v8187_v13 = vmul.f32 %v8155_v26, %v15146_v61 }
 0x518   : > { %10797 = vmatmul.mubr.msk.f32.gmra.mrb[12].mxu1 %vm311_vm0, %v7768_v27  ;;  %v15211_v27 = vld [vmem:[#allocation95_spill] sm:$0xff] }
 0x519   : > { %10799 = vmatprep.mubr.msk.f32.mxu1 %vm311_vm0, %v7769_v30  ;;  %v8186_v30 = vmul.f32 %v8154_v1, %v15211_v27  ;;  %v15220_v1 = vld [vmem:[#allocation4_spill] sm:$0xff] }
 0x51c   : > { %10800 = vmatmul.mubr.msk.f32.gmra.mrb[14].mxu1 %vm311_vm0, %v7770_v37  ;;  %v8156_v37 = vld [vmem:[#allocation3 + $0x81] sm:$0xff] }
 0x51d   : > { %10802 = vmatprep.mubr.msk.f32.mxu1 %vm311_vm0, %v7771_v52  ;;  %v8157_v52 = vld [vmem:[#allocation3 + $0x89] sm:$0xff] }
 0x520   : > { %10803 = vmatmul.mubr.msk.f32.gmra.mrb[16].mxu1 %vm311_vm0, %v7772_v18  ;;  %v15212_v18 = vld [vmem:[#allocation99_spill] sm:$0xff] }
 0x521   : > { %10805 = vmatprep.mubr.msk.f32.mxu1 %vm311_vm0, %v7773_v19  ;;  %v8188_v19 = vmul.f32 %v8156_v37, %v15212_v18 }
 0x524   : > { %10806 = vmatmul.mubr.msk.f32.gmra.mrb[18].mxu1 %vm311_vm0, %v7774_v55  ;;  %v8189_v55 = vmul.f32 %v8157_v52, %v15149_v20  ;;  %v15221_v52 = vld [vmem:[#allocation7_spill] sm:$0xff] }
 0x525   : > { %10808 = vmatprep.mubr.msk.f32.mxu1 %vm311_vm0, %v7775_v54  ;;  %v8158_v54 = vld [vmem:[#allocation3 + $0x91] sm:$0xff] }
 0x528   : > { %10809 = vmatmul.mubr.msk.f32.gmra.mrb[20].mxu1 %vm311_vm0, %v7776_v34  ;;  %v8159_v34 = vld [vmem:[#allocation3 + $0x99] sm:$0xff] }
 0x529   : > { %10811 = vmatprep.mubr.msk.f32.mxu1 %vm311_vm0, %v7777_v21  ;;  %v15213_v21 = vld [vmem:[#allocation107_spill] sm:$0xff] }
 0x52c   : > { %10812 = vmatmul.mubr.msk.f32.gmra.mrb[22].mxu1 %vm311_vm0, %v7778_v46  ;;  %v8190_v46 = vmul.f32 %v8158_v54, %v15213_v21  ;;  %v15222_v54 = vld [vmem:[#allocation6_spill] sm:$0xff] }
 0x52d   : > { %10814 = vmatprep.mubr.msk.f32.mxu1 %vm311_vm0, %v7779_v25  ;;  %v15214_v25 = vld [vmem:[#allocation110_spill] sm:$0xff] }
 0x52e   : > { %v8191_v61 = vmul.f32 %v8159_v34, %v15214_v25 }
 0x530   : > { %10815 = vmatmul.mubr.msk.f32.gmra.mrb[24].mxu1 %vm311_vm0, %v7780_v8  ;;  %v8160_v8 = vld [vmem:[#allocation3 + $0xa1] sm:$0xff] }
 0x531   : > { %10817 = vmatprep.mubr.msk.f32.mxu1 %vm311_vm0, %v7781_v38  ;;  %v8161_v38 = vld [vmem:[#allocation3 + $0xa9] sm:$0xff] }
 0x532   : > { %v8193_v20 = vmul.f32 %v8161_v38, %v15156_v33  ;;  %v8197_v33 = vmul.f32 %v8165_v56, %v15163_v22  ;;  %v8201_v22 = vmul.f32 %v8169_v9, %v15169_v58  ;;  %v8205_v58 = vmul.f32 %v14127_v40, %v15174_v45  ;;  %v14349_v45 = vld [vmem:[%s14493_s4] ss:$0 sm:$0xff] }
 0x534   : > { %10818 = vmatmul.mubr.msk.f32.gmra.mrb[26].mxu1 %vm311_vm0, %v7782_v24  ;;  %v15215_v24 = vld [vmem:[#allocation112_spill] sm:$0xff] }
 0x535   : > { %10820 = vmatprep.mubr.msk.f32.mxu1 %vm311_vm0, %v15202_v29  ;;  %v8192_v29 = vmul.f32 %v8160_v8, %v15215_v24  ;;  %v15223_v8 = vld [vmem:[#allocation9_spill] sm:$0xff] }
 0x538   : > { %10821 = vmatmul.mubr.msk.f32.gmra.mrb[28].mxu1 %vm311_vm0, %v15203_v53  ;;  %v8163_v53 = vld [vmem:[#allocation3 + $0xb9] sm:$0xff] }
 0x539   : > { %10823 = vmatprep.mubr.msk.f32.mxu1 %vm311_vm0, %v7785_v15  ;;  %v8162_v15 = vld [vmem:[#allocation3 + $0xb1] sm:$0xff]  ;;  %v8195_v4 = vmul.f32 %v8163_v53, %v15159_v10  ;;  %v8199_v10 = vmul.f32 %v8167_v0, %v15166_v7  ;;  %v8203_v7 = vmul.f32 %v8171_v2, %v15172_v31  ;;  %v8176_v31 = vld [vmem:[#allocation3 + $0x121] sm:$0xff] }
 0x53c   : > { %10824 = vmatmul.mubr.msk.f32.gmra.mrb[30].mxu1 %vm311_vm0, %v7786_v11  ;;  %v8194_v11 = vmul.f32 %v8162_v15, %v15216_v48 }
 0x53d   : > { %10828 = vmatprep.mubr.msk.f32.mxu1 %vm311_vm0, %v8177_v32  ;;  %v8164_v32 = vld [vmem:[#allocation3 + $0xc1] sm:$0xff] }
 0x53e   : > { %v8196_v50 = vmul.f32 %v8164_v32, %v15217_v57  ;;  %v15225_v32 = vld [vmem:[#allocation11_spill] sm:$0xff] }
 0x540   : > { %10829 = vmatmul.mubr.msk.f32.vlgmr.msra.gmra.mrb[0].mxu1 %vm311_vm0, %v8178_v63  ;;  %v8166_v63 = vld [vmem:[#allocation3 + $0xd1] sm:$0xff] }
 0x541   : > { %10831 = vmatprep.mubr.msk.f32.mxu1 %vm311_vm0, %v8179_v42  ;;  %v15218_v42 = vld [vmem:[#allocation124_spill] sm:$0xff] }
 0x542   : > { %v8198_v51 = vmul.f32 %v8166_v63, %v15218_v42 }
 0x544   : > { %10832 = vmatmul.mubr.msk.f32.gmra.mrb[2].mxu1 %vm311_vm0, %v8180_v43  ;;  %v8200_v43 = vmul.f32 %v8168_v5, %v15168_v12  ;;  %v8175_v12 = vld [vmem:[#allocation3 + $0x119] sm:$0xff] }
 0x545   : > { %10834 = vmatprep.mubr.msk.f32.mxu1 %vm311_vm0, %v8181_v44  ;;  %v8170_v44 = vld [vmem:[#allocation3 + $0xf1] sm:$0xff] }
 0x546   : > { %v8202_v28 = vmul.f32 %v8170_v44, %v15171_v6  ;;  %v8206_v6 = vmul.f32 %v14134_v47, %v13825_v49  ;;  %v15227_v5 = vld [vmem:[#allocation13_spill] sm:$0xff]  ;;  %v15228_v44 = vld [vmem:[#allocation12_spill] sm:$0xff] }
 0x548   : > { %10835 = vmatmul.mubr.msk.f32.gmra.mrb[4].mxu1 %vm311_vm0, %v8182_v59  ;;  %v8204_v59 = vmul.f32 %v8172_v35, %v15173_v23  ;;  %v8208_v23 = vmul.f32 %v8176_v31, %v13844_v16 }
 0x549   : > { %10837 = vmatprep.mubr.msk.f32.mxu1 %vm311_vm0, %v8183_v17  ;;  %v8207_v17 = vmul.f32 %v8175_v12, %v15175_v60 }
 0x54c   : > { %10838 = vmatmul.mubr.msk.f32.gmra.mrb[6].mxu1 %vm311_vm0, %v8184_v36 }
 0x54d   : > { %10840 = vmatprep.mubr.msk.f32.mxu1 %vm311_vm0, %v8185_v62 }
 0x550   : > { %10841 = vmatmul.mubr.msk.f32.gmra.mrb[8].mxu1 %vm311_vm0, %v8186_v30 }
 0x551   : > { %10843 = vmatprep.mubr.msk.f32.mxu1 %vm311_vm0, %v8187_v13 }
 0x554   : > { %10844 = vmatmul.mubr.msk.f32.gmra.mrb[10].mxu1 %vm311_vm0, %v8188_v19 }
 0x555   : > { %10846 = vmatprep.mubr.msk.f32.mxu1 %vm311_vm0, %v8189_v55 }
 0x558   : > { %10847 = vmatmul.mubr.msk.f32.gmra.mrb[12].mxu1 %vm311_vm0, %v8190_v46 }
 0x559   : > { %10849 = vmatprep.mubr.msk.f32.mxu1 %vm311_vm0, %v8191_v61 }
 0x55c   : > { %10850 = vmatmul.mubr.msk.f32.gmra.mrb[14].mxu1 %vm311_vm0, %v8192_v29 }
 0x55d   : > { %10852 = vmatprep.mubr.msk.f32.mxu1 %vm311_vm0, %v8193_v20  ;;  %v15224_v20 = vld [vmem:[#allocation8_spill] sm:$0xff] }
 0x560   : > { %10853 = vmatmul.mubr.msk.f32.gmra.mrb[16].mxu1 %vm311_vm0, %v8194_v11 }
 0x561   : > { %10855 = vmatprep.mubr.msk.f32.mxu1 %vm311_vm0, %v8195_v4 }
 0x564   : > { %10856 = vmatmul.mubr.msk.f32.gmra.mrb[18].mxu1 %vm311_vm0, %v8196_v50 }
 0x565   : > { %10858 = vmatprep.mubr.msk.f32.mxu1 %vm311_vm0, %v8197_v33  ;;  %v15226_v33 = vld [vmem:[#allocation10_spill] sm:$0xff] }
 0x568   : > { %10859 = vmatmul.mubr.msk.f32.gmra.mrb[20].mxu1 %vm311_vm0, %v8198_v51 }
 0x569   : > { %10861 = vmatprep.mubr.msk.f32.mxu1 %vm311_vm0, %v8199_v10 }
 0x56c   : > { %10862 = vmatmul.mubr.msk.f32.gmra.mrb[22].mxu1 %vm311_vm0, %v8200_v43 }
 0x56d   : > { %10864 = vmatprep.mubr.msk.f32.mxu1 %vm311_vm0, %v8201_v22 }
 0x570   : > { %10865 = vmatmul.mubr.msk.f32.gmra.mrb[24].mxu1 %vm311_vm0, %v8202_v28 }
 0x571   : > { %10867 = vmatprep.mubr.msk.f32.mxu1 %vm311_vm0, %v8203_v7 }
 0x574   : > { %10868 = vmatmul.mubr.msk.f32.gmra.mrb[26].mxu1 %vm311_vm0, %v8204_v59 }
 0x575   : > { %10870 = vmatprep.mubr.msk.f32.mxu1 %vm311_vm0, %v8205_v58  ;;  %v15229_v58 = vld [vmem:[#allocation15_spill] sm:$0xff] }
 0x578   : > { %10871 = vmatmul.mubr.msk.f32.gmra.mrb[28].mxu1 %vm311_vm0, %v8206_v6 }
 0x579   : > { %10873 = vmatprep.mubr.msk.f32.mxu1 %vm311_vm0, %v8207_v17  ;;  %v15230_v17 = vld [vmem:[#allocation14_spill] sm:$0xff] }
 0x57c   : > { %10874 = vmatmul.mubr.msk.f32.gmra.mrb[30].mxu1 %vm311_vm0, %v8208_v23 }
 0x613   : > { %v10830_v40 = vpop.f32.mrb[0].mxu1 }
 0x614   : > { %v8575_v39 = vadd.f32 %v10830_v40, %v14349_v45  ;;  %v8376_v49 = vpop.f32.mrb[1].mxu1 }
 0x615   : > { %v8574_v47 = vadd.f32 %v14349_v45, %v8376_v49 }
 0x616   : > { %v8607_v60 = vmax.f32 %v8575_v39, 0.0 }
 0x617   : > { %v8606_v16 = vmax.f32 %v8574_v47, 0.0  ;;  %v10833_v41 = vpop.f32.mrb[2].mxu1 }
 0x618   : > { %v8639_v36 = vadd.f32 %v8607_v60, %v15219_v14  ;;  %v8577_v3 = vadd.f32 %v10833_v41, %v14349_v45  ;;  %v8386_v62 = vpop.f32.mrb[3].mxu1  ;;  %v15231_v60 = vld [vmem:[#allocation17_spill] sm:$0xff] }
 0x619   : > { %v8638_v26 = vadd.f32 %v8606_v16, %v15220_v1  ;;  %v8576_v27 = vadd.f32 %v14349_v45, %v8386_v62 }
 0x61a   : > { %8671 = vst.msk [vmem:[%s14358_s30 + $0x8] sm:$0xff] %vm311_vm0, %v8639_v36  ;;  %v8609_v30 = vmax.f32 %v8577_v3, 0.0  ;;  %v15232_v36 = vld [vmem:[#allocation16_spill] sm:$0xff] }
 0x61b   : > { %8670 = vst.msk [vmem:[%s14358_s30] sm:$0xff] %vm311_vm0, %v8638_v26  ;;  %v8608_v13 = vmax.f32 %v8576_v27, 0.0  ;;  %v10836_v37 = vpop.f32.mrb[4].mxu1 }
 0x61c   : > { %v8641_v18 = vadd.f32 %v8609_v30, %v15221_v52  ;;  %v8579_v19 = vadd.f32 %v10836_v37, %v14349_v45  ;;  %v8396_v55 = vpop.f32.mrb[5].mxu1  ;;  %v15233_v30 = vld [vmem:[#allocation19_spill] sm:$0xff] }
 0x61d   : > { %v8640_v34 = vadd.f32 %v8608_v13, %v15222_v54  ;;  %v8578_v21 = vadd.f32 %v14349_v45, %v8396_v55 }
 0x61e   : > { %8673 = vst.msk [vmem:[%s14358_s30 + $0x18] sm:$0xff] %vm311_vm0, %v8641_v18  ;;  %v8611_v46 = vmax.f32 %v8579_v19, 0.0  ;;  %v15234_v18 = vld [vmem:[#allocation18_spill] sm:$0xff] }
 0x61f   : > { %8672 = vst.msk [vmem:[%s14358_s30 + $0x10] sm:$0xff] %vm311_vm0, %v8640_v34  ;;  %v8610_v25 = vmax.f32 %v8578_v21, 0.0  ;;  %v10839_v61 = vpop.f32.mrb[6].mxu1 }
 0x620   : > { %v8643_v38 = vadd.f32 %v8611_v46, %v15223_v8  ;;  %v8581_v24 = vadd.f32 %v10839_v61, %v14349_v45  ;;  %v8406_v29 = vpop.f32.mrb[7].mxu1  ;;  %v15235_v46 = vld [vmem:[#allocation21_spill] sm:$0xff] }
 0x621   : > { %v8642_v15 = vadd.f32 %v8610_v25, %v15224_v20  ;;  %v8580_v53 = vadd.f32 %v14349_v45, %v8406_v29 }
 0x622   : > { %8675 = vst.msk [vmem:[%s14358_s30 + $0x28] sm:$0xff] %vm311_vm0, %v8643_v38  ;;  %v8613_v48 = vmax.f32 %v8581_v24, 0.0  ;;  %v15236_v38 = vld [vmem:[#allocation20_spill] sm:$0xff] }
 0x623   : > { %8674 = vst.msk [vmem:[%s14358_s30 + $0x20] sm:$0xff] %vm311_vm0, %v8642_v15  ;;  %v8612_v11 = vmax.f32 %v8580_v53, 0.0  ;;  %v10842_v4 = vpop.f32.mrb[8].mxu1 }
 0x624   : > { %v8645_v56 = vadd.f32 %v8613_v48, %v15225_v32  ;;  %v8583_v57 = vadd.f32 %v10842_v4, %v14349_v45  ;;  %v8416_v50 = vpop.f32.mrb[9].mxu1  ;;  %v15237_v48 = vld [vmem:[#allocation23_spill] sm:$0xff] }
 0x625   : > { %v8644_v63 = vadd.f32 %v8612_v11, %v15226_v33  ;;  %v8582_v0 = vadd.f32 %v14349_v45, %v8416_v50 }
 0x626   : > { %8677 = vst.msk [vmem:[%s14358_s30 + $0x38] sm:$0xff] %vm311_vm0, %v8645_v56  ;;  %v8615_v42 = vmax.f32 %v8583_v57, 0.0  ;;  %v15238_v56 = vld [vmem:[#allocation22_spill] sm:$0xff] }
 0x627   : > { %8676 = vst.msk [vmem:[%s14358_s30 + $0x30] sm:$0xff] %vm311_vm0, %v8644_v63  ;;  %v8614_v51 = vmax.f32 %v8582_v0, 0.0  ;;  %v10845_v10 = vpop.f32.mrb[10].mxu1 }
 0x628   : > { %v8647_v9 = vadd.f32 %v8615_v42, %v15227_v5  ;;  %v8585_v43 = vadd.f32 %v10845_v10, %v14349_v45  ;;  %v8426_v22 = vpop.f32.mrb[11].mxu1  ;;  %v15239_v42 = vld [vmem:[#allocation25_spill] sm:$0xff] }
 0x629   : > { %v8646_v2 = vadd.f32 %v8614_v51, %v15228_v44  ;;  %v8584_v28 = vadd.f32 %v14349_v45, %v8426_v22 }
 0x62a   : > { %8679 = vst.msk [vmem:[%s14358_s30 + $0x48] sm:$0xff] %vm311_vm0, %v8647_v9  ;;  %v8617_v7 = vmax.f32 %v8585_v43, 0.0  ;;  %v15240_v9 = vld [vmem:[#allocation24_spill] sm:$0xff] }
 0x62b   : > { %8678 = vst.msk [vmem:[%s14358_s30 + $0x40] sm:$0xff] %vm311_vm0, %v8646_v2  ;;  %v8616_v35 = vmax.f32 %v8584_v28, 0.0  ;;  %v10848_v59 = vpop.f32.mrb[12].mxu1 }
 0x62c   : > { %v8649_v12 = vadd.f32 %v8617_v7, %v15229_v58  ;;  %v8587_v6 = vadd.f32 %v10848_v59, %v14349_v45  ;;  %v8436_v31 = vpop.f32.mrb[13].mxu1  ;;  %v15241_v7 = vld [vmem:[#allocation27_spill] sm:$0xff] }
 0x62d   : > { %v8648_v23 = vadd.f32 %v8616_v35, %v15230_v17  ;;  %v8586_v40 = vadd.f32 %v14349_v45, %v8436_v31 }
 0x62e   : > { %8681 = vst.msk [vmem:[%s14358_s30 + $0x58] sm:$0xff] %vm311_vm0, %v8649_v12  ;;  %v8619_v39 = vmax.f32 %v8587_v6, 0.0  ;;  %v15242_v12 = vld [vmem:[#allocation26_spill] sm:$0xff] }
 0x62f   : > { %8680 = vst.msk [vmem:[%s14358_s30 + $0x50] sm:$0xff] %vm311_vm0, %v8648_v23  ;;  %v8618_v49 = vmax.f32 %v8586_v40, 0.0  ;;  %v10851_v47 = vpop.f32.mrb[14].mxu1 }
 0x630   : > { %v8651_v16 = vadd.f32 %v8619_v39, %v15231_v60  ;;  %v8589_v41 = vadd.f32 %v10851_v47, %v14349_v45  ;;  %v8446_v14 = vpop.f32.mrb[15].mxu1  ;;  %v15243_v39 = vld [vmem:[#allocation29_spill] sm:$0xff] }
 0x631   : > { %v8650_v3 = vadd.f32 %v8618_v49, %v15232_v36  ;;  %v8588_v62 = vadd.f32 %v14349_v45, %v8446_v14 }
 0x632   : > { %8683 = vst.msk [vmem:[%s14358_s30 + $0x68] sm:$0xff] %vm311_vm0, %v8651_v16  ;;  %v8621_v1 = vmax.f32 %v8589_v41, 0.0  ;;  %v15244_v16 = vld [vmem:[#allocation28_spill] sm:$0xff] }
 0x633   : > { %8682 = vst.msk [vmem:[%s14358_s30 + $0x60] sm:$0xff] %vm311_vm0, %v8650_v3  ;;  %v8620_v26 = vmax.f32 %v8588_v62, 0.0  ;;  %v10854_v27 = vpop.f32.mrb[16].mxu1 }
 0x634   : > { %v8653_v13 = vadd.f32 %v8621_v1, %v15233_v30  ;;  %v8591_v37 = vadd.f32 %v10854_v27, %v14349_v45  ;;  %v8456_v52 = vpop.f32.mrb[17].mxu1  ;;  %v15245_v1 = vld [vmem:[#allocation31_spill] sm:$0xff] }
 0x635   : > { %v8652_v19 = vadd.f32 %v8620_v26, %v15234_v18  ;;  %v8590_v55 = vadd.f32 %v14349_v45, %v8456_v52 }
 0x636   : > { %8685 = vst.msk [vmem:[%s14358_s30 + $0x78] sm:$0xff] %vm311_vm0, %v8653_v13  ;;  %v8623_v54 = vmax.f32 %v8591_v37, 0.0  ;;  %v15246_v13 = vld [vmem:[#allocation30_spill] sm:$0xff] }
 0x637   : > { %8684 = vst.msk [vmem:[%s14358_s30 + $0x70] sm:$0xff] %vm311_vm0, %v8652_v19  ;;  %v8622_v34 = vmax.f32 %v8590_v55, 0.0  ;;  %v10857_v21 = vpop.f32.mrb[18].mxu1 }
 0x638   : > { %v8655_v25 = vadd.f32 %v8623_v54, %v15235_v46  ;;  %v8593_v61 = vadd.f32 %v10857_v21, %v14349_v45  ;;  %v8466_v8 = vpop.f32.mrb[19].mxu1  ;;  %v15247_v54 = vld [vmem:[#allocation33_spill] sm:$0xff] }
 0x639   : > { %v8654_v24 = vadd.f32 %v8622_v34, %v15236_v38  ;;  %v8592_v29 = vadd.f32 %v14349_v45, %v8466_v8 }
 0x63a   : > { %8687 = vst.msk [vmem:[%s14358_s30 + $0x88] sm:$0xff] %vm311_vm0, %v8655_v25  ;;  %v8625_v20 = vmax.f32 %v8593_v61, 0.0  ;;  %v15248_v25 = vld [vmem:[#allocation32_spill] sm:$0xff] }
 0x63b   : > { %8686 = vst.msk [vmem:[%s14358_s30 + $0x80] sm:$0xff] %vm311_vm0, %v8654_v24  ;;  %v8624_v15 = vmax.f32 %v8592_v29, 0.0  ;;  %v10860_v53 = vpop.f32.mrb[20].mxu1  ;;  %v15249_v29 = vld [vmem:[#allocation35_spill] sm:$0xff] }
 0x63c   : > { %v8657_v11 = vadd.f32 %v8625_v20, %v15237_v48  ;;  %v8595_v4 = vadd.f32 %v10860_v53, %v14349_v45  ;;  %v8476_v32 = vpop.f32.mrb[21].mxu1 }
 0x63d   : > { %v8656_v57 = vadd.f32 %v8624_v15, %v15238_v56  ;;  %v8594_v50 = vadd.f32 %v14349_v45, %v8476_v32  ;;  %v15250_v15 = vld [vmem:[#allocation34_spill] sm:$0xff] }
 0x63e   : > { %8689 = vst.msk [vmem:[%s14358_s30 + $0x98] sm:$0xff] %vm311_vm0, %v8657_v11  ;;  %v8627_v33 = vmax.f32 %v8595_v4, 0.0 }
 0x63f   : > { %8688 = vst.msk [vmem:[%s14358_s30 + $0x90] sm:$0xff] %vm311_vm0, %v8656_v57  ;;  %v8626_v63 = vmax.f32 %v8594_v50, 0.0  ;;  %v10863_v0 = vpop.f32.mrb[22].mxu1 }
 0x640   : > { %v8659_v51 = vadd.f32 %v8627_v33, %v15239_v42  ;;  %v8597_v10 = vadd.f32 %v10863_v0, %v14349_v45  ;;  %v8486_v5 = vpop.f32.mrb[23].mxu1 }
 0x641   : > { %v8658_v43 = vadd.f32 %v8626_v63, %v15240_v9  ;;  %v8596_v22 = vadd.f32 %v14349_v45, %v8486_v5 }
 0x642   : > { %8691 = vst.msk [vmem:[%s14358_s30 + $0xa8] sm:$0xff] %vm311_vm0, %v8659_v51  ;;  %v8629_v44 = vmax.f32 %v8597_v10, 0.0 }
 0x643   : > { %8690 = vst.msk [vmem:[%s14358_s30 + $0xa0] sm:$0xff] %vm311_vm0, %v8658_v43  ;;  %v8628_v2 = vmax.f32 %v8596_v22, 0.0  ;;  %v10866_v28 = vpop.f32.mrb[24].mxu1 }
 0x644   : > { %v8661_v35 = vadd.f32 %v8629_v44, %v15241_v7  ;;  %v8599_v59 = vadd.f32 %v10866_v28, %v14349_v45  ;;  %v8496_v58 = vpop.f32.mrb[25].mxu1 }
 0x645   : > { %v8660_v6 = vadd.f32 %v8628_v2, %v15242_v12  ;;  %v8598_v31 = vadd.f32 %v14349_v45, %v8496_v58 }
 0x646   : > { %8693 = vst.msk [vmem:[%s14358_s30 + $0xb8] sm:$0xff] %vm311_vm0, %v8661_v35  ;;  %v8631_v17 = vmax.f32 %v8599_v59, 0.0 }
 0x647   : > { %8692 = vst.msk [vmem:[%s14358_s30 + $0xb0] sm:$0xff] %vm311_vm0, %v8660_v6  ;;  %v8630_v23 = vmax.f32 %v8598_v31, 0.0  ;;  %v10869_v40 = vpop.f32.mrb[26].mxu1 }
 0x648   : > { %v8663_v49 = vadd.f32 %v8631_v17, %v15243_v39  ;;  %v8601_v47 = vadd.f32 %v10869_v40, %v14349_v45  ;;  %v8506_v60 = vpop.f32.mrb[27].mxu1 }
 0x649   : > { %v8662_v41 = vadd.f32 %v8630_v23, %v15244_v16  ;;  %v8600_v14 = vadd.f32 %v14349_v45, %v8506_v60 }
 0x64a   : > { %8695 = vst.msk [vmem:[%s14358_s30 + $0xc8] sm:$0xff] %vm311_vm0, %v8663_v49  ;;  %v8633_v36 = vmax.f32 %v8601_v47, 0.0 }
 0x64b   : > { %8694 = vst.msk [vmem:[%s14358_s30 + $0xc0] sm:$0xff] %vm311_vm0, %v8662_v41  ;;  %v8632_v3 = vmax.f32 %v8600_v14, 0.0  ;;  %v10872_v62 = vpop.f32.mrb[28].mxu1 }
 0x64c   : > { %v8665_v26 = vadd.f32 %v8633_v36, %v15245_v1  ;;  %v8603_v27 = vadd.f32 %v10872_v62, %v14349_v45  ;;  %v8516_v30 = vpop.f32.mrb[29].mxu1 }
 0x64d   : > { %v8664_v37 = vadd.f32 %v8632_v3, %v15246_v13  ;;  %v8602_v52 = vadd.f32 %v14349_v45, %v8516_v30 }
 0x64e   : > { %8697 = vst.msk [vmem:[%s14358_s30 + $0xd8] sm:$0xff] %vm311_vm0, %v8665_v26  ;;  %v8635_v18 = vmax.f32 %v8603_v27, 0.0 }
 0x64f   : > { %8696 = vst.msk [vmem:[%s14358_s30 + $0xd0] sm:$0xff] %vm311_vm0, %v8664_v37  ;;  %v8634_v19 = vmax.f32 %v8602_v52, 0.0  ;;  %v10875_v55 = vpop.f32.mrb[30].mxu1 }
 0x650   : > { %v8667_v34 = vadd.f32 %v8635_v18, %v15247_v54  ;;  %v8605_v21 = vadd.f32 %v10875_v55, %v14349_v45  ;;  %v8526_v46 = vpop.f32.mrb[31].mxu1 }
 0x651   : > { %v8666_v61 = vadd.f32 %v8634_v19, %v15248_v25  ;;  %v8604_v8 = vadd.f32 %v14349_v45, %v8526_v46 }
 0x652   : > { %8699 = vst.msk [vmem:[%s14358_s30 + $0xe8] sm:$0xff] %vm311_vm0, %v8667_v34  ;;  %v8637_v38 = vmax.f32 %v8605_v21, 0.0 }
 0x653   : > { %8698 = vst.msk [vmem:[%s14358_s30 + $0xe0] sm:$0xff] %vm311_vm0, %v8666_v61  ;;  %v8636_v24 = vmax.f32 %v8604_v8, 0.0 }
 0x654   : > { %v8669_v20 = vadd.f32 %v8637_v38, %v15249_v29 }
 0x655   : > { %v8668_v53 = vadd.f32 %v8636_v24, %v15250_v15 }
 0x656   : > { %8701 = vst.msk [vmem:[%s14358_s30 + $0xf8] sm:$0xff] %vm311_vm0, %v8669_v20 }
 0x657   : > { %8700 = vst.msk [vmem:[%s14358_s30 + $0xf0] sm:$0xff] %vm311_vm0, %v8668_v53 }
 0x658 PF: > { %s17_s24 = sadd.s32 1, %s11429_s24  }
 0x659   : > { %p14_p4 = scmp.ge.s32.totalorder %s17_s24, 4  }
 0x65b   :  { %16 = sbr.rel (!%p14_p4) target bundleno = 1 (0x1), region = 94 }

</bundles_post_ra>
